<compile_context>
chip_gen: v6e
topology: v6e:2x2x1
jax: 0.10.0
libtpu: 0.0.40
codegen_flags: <defaults>
</compile_context>

<pallas_src>
import jax
import jax.numpy as jnp
from jax.experimental import pallas as pl
from jax.experimental.pallas import tpu as pltpu

D_MODEL = 128
N_HEAD = 8
HEAD_DIM = D_MODEL // N_HEAD
DIM_FF = 512
N_KEYS = 9           # 3x3 neighbourhood -> 9 key tokens per detection
N_MEM = N_KEYS + 1   # encoder memory = [q, k0..k8]
LN_EPS = 1e-5

LAYER_KEYS = ("w_attn", "b_attn", "wkv", "bkv", "w1", "b1", "w2", "b2", "ln")


def _round_up(x, m):
    return ((x + m - 1) // m) * m


# ---------------------------------------------------------------------------
# In-kernel helpers (traced inline inside the Pallas kernel)
# ---------------------------------------------------------------------------
def _layer_norm(x, gamma, beta):
    mu = jnp.mean(x, axis=-1, keepdims=True)
    xc = x - mu
    var = jnp.mean(xc * xc, axis=-1, keepdims=True)
    return xc * jax.lax.rsqrt(var + LN_EPS) * gamma + beta


def _mha(tgt_b, mem_b, s, tq, wa_ref, ba_ref, wkv_ref, bkv_ref, mhead):
    """nn.MultiheadAttention with one query token per detection.

    tgt_b: (TQ, D) bf16 query features.
    mem_b: (s*TQ, D) bf16 -- the s key/value tokens per detection stacked
           along the row (sublane) axis.
    K/V projections use one batched matmul with the concatenated (D, 2D)
    weight; per-head logits use one lane-dense block-diagonal matmul; the
    softmax over the s tokens is exact (single max / single exp per token).
    The 1/sqrt(head_dim) scale is already folded into wq / bq.
    """
    f32, bf16 = jnp.float32, jnp.bfloat16

    wq = wa_ref[0]                                   # (D, D) bf16, scale folded
    wo = wa_ref[1]                                   # (D, D) bf16
    bq = ba_ref[0:1, :]                              # (1, D) f32, scale folded
    bo = ba_ref[1:2, :]                              # (1, D) f32

    qp = jnp.dot(tgt_b, wq, preferred_element_type=f32) + bq            # (TQ, D)
    kv = jnp.dot(mem_b, wkv_ref[...], preferred_element_type=f32) + bkv_ref[...]
    kp = kv[:, :D_MODEL]                                                 # (s*TQ, D)
    vp = kv[:, D_MODEL:]                                                 # (s*TQ, D)

    # per-head <q,k>, replicated across each head's 16 lanes (lane-dense)
    qp_rep = jnp.concatenate([qp] * s, axis=0)                           # (s*TQ, D)
    sc = jnp.dot((qp_rep * kp).astype(bf16), mhead,
                 preferred_element_type=f32)                             # (s*TQ, D)

    # exact softmax over the s memory tokens (s <= 10, fully unrolled)
    mx = sc[0:tq]
    for j in range(1, s):
        mx = jnp.maximum(mx, sc[j * tq:(j + 1) * tq])
    den = jnp.zeros((tq, D_MODEL), f32)
    num = jnp.zeros((tq, D_MODEL), f32)
    for j in range(s):
        e = jnp.exp(sc[j * tq:(j + 1) * tq] - mx)
        den = den + e
        num = num + e * vp[j * tq:(j + 1) * tq]

    ctx = num * pl.reciprocal(den, approx=True)                          # (TQ, D)
    return jnp.dot(ctx.astype(bf16), wo, preferred_element_type=f32) + bo


def _ffn_block(tgt, attn_out, w1_ref, b1_ref, w2_ref, b2_ref, ln_ref):
    """residual + LN, 128->512->128 FFN (relu), residual + LN (forward_post)."""
    f32, bf16 = jnp.float32, jnp.bfloat16
    t1 = _layer_norm(tgt + attn_out, ln_ref[0:1, :], ln_ref[1:2, :])
    h = jnp.dot(t1.astype(bf16), w1_ref[...], preferred_element_type=f32) + b1_ref[...]
    h = jnp.maximum(h, 0.0)
    h2 = jnp.dot(h.astype(bf16), w2_ref[...], preferred_element_type=f32) + b2_ref[...]
    return _layer_norm(t1 + h2, ln_ref[2:3, :], ln_ref[3:4, :])


# ---------------------------------------------------------------------------
# Fused Pallas kernel: encoder(token-0 path) + decoder + fusion layer
# ---------------------------------------------------------------------------
def _embed_refine_kernel(q_ref, mem_ref, mhead_ref,
                         e_wa, e_ba, e_wkv, e_bkv, e_w1, e_b1, e_w2, e_b2, e_ln,
                         d_wa, d_ba, d_wkv, d_bkv, d_w1, d_b1, d_w2, d_b2, d_ln,
                         f_wa, f_ba, f_wkv, f_bkv, f_w1, f_b1, f_w2, f_b2, f_ln,
                         o_ref):
    f32, bf16 = jnp.float32, jnp.bfloat16
    tq = q_ref.shape[0]
    q_b = q_ref[...]                                     # (TQ, D) bf16
    q = q_b.astype(f32)
    mhead = mhead_ref[...]                               # (D, D) block-diag bf16
    n_mem = mem_ref.shape[0]                             # 10 = [q, k0..k8]
    mem_all = mem_ref[...].reshape(n_mem * tq, D_MODEL)  # (10*TQ, D) bf16

    # --- encoder layer: self-attn over [q, k0..k8]; only token 0 is consumed
    #     downstream, so only token 0's query path is evaluated. -------------
    attn_e = _mha(q_b, mem_all, n_mem, tq, e_wa, e_ba, e_wkv, e_bkv, mhead)
    en_out = _ffn_block(q, attn_e, e_w1, e_b1, e_w2, e_b2, e_ln)

    # --- decoder layer: cross-attn of q over the 9 neighbour tokens ---------
    attn_d = _mha(q_b, mem_all[tq:], n_mem - 1, tq, d_wa, d_ba, d_wkv, d_bkv, mhead)
    de_out = _ffn_block(q, attn_d, d_w1, d_b1, d_w2, d_b2, d_ln)

    # --- fusion layer: cross-attn of de_out over [de_out, en_out] -----------
    de_b = de_out.astype(bf16)
    fu_mem = jnp.concatenate([de_b, en_out.astype(bf16)], axis=0)        # (2*TQ, D)
    attn_f = _mha(de_b, fu_mem, 2, tq, f_wa, f_ba, f_wkv, f_bkv, mhead)
    fu_out = _ffn_block(de_out, attn_f, f_w1, f_b1, f_w2, f_b2, f_ln)

    o_ref[...] = fu_out.astype(o_ref.dtype)


def _run_kernel(q, mem, params, tq):
    """q: (T_pad, D) bf16, mem: (10, T_pad, D) bf16 -> (T_pad, D) f32."""
    t_pad, d = q.shape
    n_mem = mem.shape[0]
    grid = (t_pad // tq,)

    weight_arrays = [params["mhead"]]
    for name in ("encoder", "decoder", "fusion"):
        lp = params[name]
        weight_arrays += [lp[k] for k in LAYER_KEYS]

    def wspec(a):
        return pl.BlockSpec(a.shape, lambda i, _nd=a.ndim: (0,) * _nd)

    in_specs = [
        pl.BlockSpec((tq, d), lambda i: (i, 0)),               # q block
        pl.BlockSpec((n_mem, tq, d), lambda i: (0, i, 0)),     # memory block (10 tokens)
    ] + [wspec(a) for a in weight_arrays]

    return pl.pallas_call(
        _embed_refine_kernel,
        out_shape=jax.ShapeDtypeStruct((t_pad, d), jnp.float32),
        grid=grid,
        in_specs=in_specs,
        out_specs=pl.BlockSpec((tq, d), lambda i: (i, 0)),
        compiler_params=pltpu.CompilerParams(
            dimension_semantics=("parallel",)),
    )(q, mem, *weight_arrays)


# ---------------------------------------------------------------------------
# Plain-JAX glue: gathers, padding, scatter-back
# ---------------------------------------------------------------------------
def embed_refine_forward(x, ind, params, *, tq=256):
    """x: (b, d, h, w) NCHW float32, ind: (b, N) flat detection-center indices."""
    b, d, h, w = x.shape
    n = ind.shape[1]
    t = b * n
    hw = h * w

    # 3x3 neighbourhood flat indices, clamped (mirrors inds0..inds8).
    offs = jnp.array([-w - 1, -w, -w + 1, -1, 0, 1, w - 1, w, w + 1], jnp.int32)
    ind3 = jnp.clip(ind[:, :, None] + offs[None, None, :], 0, hw - 1)   # (b, n, 9)

    x_flat = x.transpose(0, 2, 3, 1).reshape(b, hw, d)                   # (b, hw, d)
    q = jnp.take_along_axis(x_flat, ind.reshape(b, n, 1), axis=1)        # (b, n, d)
    q = q.reshape(t, d)
    k = jnp.take_along_axis(x_flat, ind3.reshape(b, n * N_KEYS, 1), axis=1)
    k = k.reshape(t, N_KEYS, d).transpose(1, 0, 2)                        # (9, T, d)

    # memory handed to the kernel: token 0 = q itself, tokens 1..9 = neighbours
    mem = jnp.concatenate([q[None], k], axis=0)                           # (10, T, d)

    # pad the detection axis to a multiple of the block size (bf16 tile = 16)
    tq_eff = min(tq, _round_up(t, 16))
    t_pad = _round_up(t, tq_eff)
    q_pad = jnp.zeros((t_pad, d), jnp.bfloat16).at[:t].set(q.astype(jnp.bfloat16))
    mem_pad = jnp.zeros((N_MEM, t_pad, d), jnp.bfloat16).at[:, :t].set(
        mem.astype(jnp.bfloat16))

    out = _run_kernel(q_pad, mem_pad, params, tq_eff)                     # (T_pad, d)
    out = out[:t].reshape(b, n, d).astype(x.dtype)

    # scatter refined embeddings back into the feature map at `ind`
    x_flat = x_flat.at[jnp.arange(b)[:, None], ind, :].set(out)
    return x_flat.reshape(b, h, w, d).transpose(0, 3, 1, 2)


# ---------------------------------------------------------------------------
# Parameter construction (three transformer layers + head-selection matrix)
# ---------------------------------------------------------------------------
def _init_layer(key, d=D_MODEL, ff=DIM_FF):
    ks = jax.random.split(key, 8)
    std = 0.05
    in_w = jax.random.normal(ks[0], (3 * d, d), jnp.float32) * std
    in_b = jax.random.normal(ks[1], (3 * d,), jnp.float32) * std
    out_w = jax.random.normal(ks[2], (d, d), jnp.float32) * std
    out_b = jax.random.normal(ks[3], (d,), jnp.float32) * std
    w1 = jax.random.normal(ks[4], (ff, d), jnp.float32) * std
    b1 = jax.random.normal(ks[5], (ff,), jnp.float32) * std
    w2 = jax.random.normal(ks[6], (d, ff), jnp.float32) * std
    b2 = jax.random.normal(ks[7], (d,), jnp.float32) * std

    # PyTorch nn.Linear computes x @ W.T + b -> pre-transpose the weights.
    # The 1/sqrt(head_dim) attention scale is folded into Wq/bq here (free).
    scale = 1.0 / (HEAD_DIM ** 0.5)
    wq = in_w[0:d].T * scale
    wk = in_w[d:2 * d].T
    wv = in_w[2 * d:].T
    bq = in_b[0:d] * scale
    bk = in_b[d:2 * d]
    bv = in_b[2 * d:]

    ln = jnp.stack([jnp.ones((d,)), jnp.zeros((d,)),
                    jnp.ones((d,)), jnp.zeros((d,))]).astype(jnp.float32)
    return dict(
        w_attn=jnp.stack([wq, out_w.T]).astype(jnp.bfloat16),         # (2, D, D) [wq*s, wo]
        b_attn=jnp.stack([bq, out_b]).astype(jnp.float32),            # (2, D)    [bq*s, bo]
        wkv=jnp.concatenate([wk, wv], axis=1).astype(jnp.bfloat16),   # (D, 2D)   [wk || wv]
        bkv=jnp.concatenate([bk, bv]).reshape(1, 2 * d).astype(jnp.float32),
        w1=w1.T.astype(jnp.bfloat16),                                 # (D, FF)
        b1=b1.reshape(1, ff).astype(jnp.float32),
        w2=w2.T.astype(jnp.bfloat16),                                 # (FF, D)
        b2=b2.reshape(1, d).astype(jnp.float32),
        ln=ln,                                                        # (4, D) [g_a,b_a,g_b,b_b]
    )


def init_params(key):
    ke, kd, kf = jax.random.split(key, 3)
    head_ids = jnp.arange(D_MODEL) // HEAD_DIM
    mhead = (head_ids[:, None] == head_ids[None, :]).astype(jnp.bfloat16)
    return dict(
        encoder=_init_layer(ke),
        decoder=_init_layer(kd),
        fusion=_init_layer(kf),
        mhead=mhead,
    )


if __name__ == "__main__":
    B, N, H, W = 2, 8, 24, 32          # D_MODEL is fixed to 128 by the module
    key = jax.random.PRNGKey(0)
    kx, ki, kp = jax.random.split(key, 3)

    x = jax.random.normal(kx, (B, D_MODEL, H, W), jnp.float32)
    ind = jax.random.randint(ki, (B, N), 0, H * W, dtype=jnp.int32)
    params = init_params(kp)

    fwd = jax.jit(lambda xx, ii: embed_refine_forward(xx, ii, params))
    out = fwd(x, ind)
    out = jax.block_until_ready(out)

    assert out.shape == (B, D_MODEL, H, W)
    assert bool(jnp.all(jnp.isfinite(out)))
    print("KERNEL_OK")
</pallas_src>

<mosaic_0001>
module attributes {stable_mosaic.version = 11 : i64} {
  func.func @_embed_refine_kernel(%arg0: i32, %arg1: memref<16x128xbf16, #tpu.memory_space<vmem>>, %arg2: memref<10x16x128xbf16, #tpu.memory_space<vmem>>, %arg3: memref<128x128xbf16, #tpu.memory_space<vmem>>, %arg4: memref<2x128x128xbf16, #tpu.memory_space<vmem>>, %arg5: memref<2x128xf32, #tpu.memory_space<vmem>>, %arg6: memref<128x256xbf16, #tpu.memory_space<vmem>>, %arg7: memref<1x256xf32, #tpu.memory_space<vmem>>, %arg8: memref<128x512xbf16, #tpu.memory_space<vmem>>, %arg9: memref<1x512xf32, #tpu.memory_space<vmem>>, %arg10: memref<512x128xbf16, #tpu.memory_space<vmem>>, %arg11: memref<1x128xf32, #tpu.memory_space<vmem>>, %arg12: memref<4x128xf32, #tpu.memory_space<vmem>>, %arg13: memref<2x128x128xbf16, #tpu.memory_space<vmem>>, %arg14: memref<2x128xf32, #tpu.memory_space<vmem>>, %arg15: memref<128x256xbf16, #tpu.memory_space<vmem>>, %arg16: memref<1x256xf32, #tpu.memory_space<vmem>>, %arg17: memref<128x512xbf16, #tpu.memory_space<vmem>>, %arg18: memref<1x512xf32, #tpu.memory_space<vmem>>, %arg19: memref<512x128xbf16, #tpu.memory_space<vmem>>, %arg20: memref<1x128xf32, #tpu.memory_space<vmem>>, %arg21: memref<4x128xf32, #tpu.memory_space<vmem>>, %arg22: memref<2x128x128xbf16, #tpu.memory_space<vmem>>, %arg23: memref<2x128xf32, #tpu.memory_space<vmem>>, %arg24: memref<128x256xbf16, #tpu.memory_space<vmem>>, %arg25: memref<1x256xf32, #tpu.memory_space<vmem>>, %arg26: memref<128x512xbf16, #tpu.memory_space<vmem>>, %arg27: memref<1x512xf32, #tpu.memory_space<vmem>>, %arg28: memref<512x128xbf16, #tpu.memory_space<vmem>>, %arg29: memref<1x128xf32, #tpu.memory_space<vmem>>, %arg30: memref<4x128xf32, #tpu.memory_space<vmem>>, %arg31: memref<16x128xf32, #tpu.memory_space<vmem>>) attributes {dimension_semantics = [#tpu.dimension_semantics<parallel>], iteration_bounds = array<i64: 1>, scalar_prefetch = 0 : i64, scratch_operands = 0 : i64, tpu.core_type = #tpu.core_type<tc>, window_params = [{transform_indices = @transform_0, window_bounds = array<i64: 16, 128>}, {transform_indices = @transform_1, window_bounds = array<i64: 10, 16, 128>}, {pipeline_mode = #tpu.pipeline_mode<synchronous>, transform_indices = @transform_2, window_bounds = array<i64: 128, 128>}, {pipeline_mode = #tpu.pipeline_mode<synchronous>, transform_indices = @transform_3, window_bounds = array<i64: 2, 128, 128>}, {pipeline_mode = #tpu.pipeline_mode<synchronous>, transform_indices = @transform_4, window_bounds = array<i64: 2, 128>}, {pipeline_mode = #tpu.pipeline_mode<synchronous>, transform_indices = @transform_5, window_bounds = array<i64: 128, 256>}, {pipeline_mode = #tpu.pipeline_mode<synchronous>, transform_indices = @transform_6, window_bounds = array<i64: 1, 256>}, {pipeline_mode = #tpu.pipeline_mode<synchronous>, transform_indices = @transform_7, window_bounds = array<i64: 128, 512>}, {pipeline_mode = #tpu.pipeline_mode<synchronous>, transform_indices = @transform_8, window_bounds = array<i64: 1, 512>}, {pipeline_mode = #tpu.pipeline_mode<synchronous>, transform_indices = @transform_9, window_bounds = array<i64: 512, 128>}, {pipeline_mode = #tpu.pipeline_mode<synchronous>, transform_indices = @transform_10, window_bounds = array<i64: 1, 128>}, {pipeline_mode = #tpu.pipeline_mode<synchronous>, transform_indices = @transform_11, window_bounds = array<i64: 4, 128>}, {pipeline_mode = #tpu.pipeline_mode<synchronous>, transform_indices = @transform_12, window_bounds = array<i64: 2, 128, 128>}, {pipeline_mode = #tpu.pipeline_mode<synchronous>, transform_indices = @transform_13, window_bounds = array<i64: 2, 128>}, {pipeline_mode = #tpu.pipeline_mode<synchronous>, transform_indices = @transform_14, window_bounds = array<i64: 128, 256>}, {pipeline_mode = #tpu.pipeline_mode<synchronous>, transform_indices = @transform_15, window_bounds = array<i64: 1, 256>}, {pipeline_mode = #tpu.pipeline_mode<synchronous>, transform_indices = @transform_16, window_bounds = array<i64: 128, 512>}, {pipeline_mode = #tpu.pipeline_mode<synchronous>, transform_indices = @transform_17, window_bounds = array<i64: 1, 512>}, {pipeline_mode = #tpu.pipeline_mode<synchronous>, transform_indices = @transform_18, window_bounds = array<i64: 512, 128>}, {pipeline_mode = #tpu.pipeline_mode<synchronous>, transform_indices = @transform_19, window_bounds = array<i64: 1, 128>}, {pipeline_mode = #tpu.pipeline_mode<synchronous>, transform_indices = @transform_20, window_bounds = array<i64: 4, 128>}, {pipeline_mode = #tpu.pipeline_mode<synchronous>, transform_indices = @transform_21, window_bounds = array<i64: 2, 128, 128>}, {pipeline_mode = #tpu.pipeline_mode<synchronous>, transform_indices = @transform_22, window_bounds = array<i64: 2, 128>}, {pipeline_mode = #tpu.pipeline_mode<synchronous>, transform_indices = @transform_23, window_bounds = array<i64: 128, 256>}, {pipeline_mode = #tpu.pipeline_mode<synchronous>, transform_indices = @transform_24, window_bounds = array<i64: 1, 256>}, {pipeline_mode = #tpu.pipeline_mode<synchronous>, transform_indices = @transform_25, window_bounds = array<i64: 128, 512>}, {pipeline_mode = #tpu.pipeline_mode<synchronous>, transform_indices = @transform_26, window_bounds = array<i64: 1, 512>}, {pipeline_mode = #tpu.pipeline_mode<synchronous>, transform_indices = @transform_27, window_bounds = array<i64: 512, 128>}, {pipeline_mode = #tpu.pipeline_mode<synchronous>, transform_indices = @transform_28, window_bounds = array<i64: 1, 128>}, {pipeline_mode = #tpu.pipeline_mode<synchronous>, transform_indices = @transform_29, window_bounds = array<i64: 4, 128>}, {transform_indices = @transform_30, window_bounds = array<i64: 16, 128>}]} {
    %c0 = arith.constant 0 : index
    %c0_0 = arith.constant 0 : index
    %0 = vector.load %arg1[%c0, %c0_0] : memref<16x128xbf16, #tpu.memory_space<vmem>>, vector<16x128xbf16>
    %1 = arith.extf %0 : vector<16x128xbf16> to vector<16x128xf32>
    %c0_1 = arith.constant 0 : index
    %c0_2 = arith.constant 0 : index
    %2 = vector.load %arg3[%c0_1, %c0_2] : memref<128x128xbf16, #tpu.memory_space<vmem>>, vector<128x128xbf16>
    %c0_3 = arith.constant 0 : index
    %c0_4 = arith.constant 0 : index
    %c0_5 = arith.constant 0 : index
    %3 = vector.load %arg2[%c0_3, %c0_4, %c0_5] : memref<10x16x128xbf16, #tpu.memory_space<vmem>>, vector<10x16x128xbf16>
    %4 = vector.shape_cast %3 : vector<10x16x128xbf16> to vector<160x128xbf16>
    %c0_6 = arith.constant 0 : index
    %c0_7 = arith.constant 0 : index
    %c0_8 = arith.constant 0 : index
    %5 = vector.load %arg4[%c0_6, %c0_7, %c0_8] : memref<2x128x128xbf16, #tpu.memory_space<vmem>>, vector<1x128x128xbf16>
    %6 = vector.shape_cast %5 : vector<1x128x128xbf16> to vector<128x128xbf16>
    %c1 = arith.constant 1 : index
    %c0_9 = arith.constant 0 : index
    %c0_10 = arith.constant 0 : index
    %7 = vector.load %arg4[%c1, %c0_9, %c0_10] : memref<2x128x128xbf16, #tpu.memory_space<vmem>>, vector<1x128x128xbf16>
    %8 = vector.shape_cast %7 : vector<1x128x128xbf16> to vector<128x128xbf16>
    %c0_11 = arith.constant 0 : index
    %c0_12 = arith.constant 0 : index
    %9 = vector.load %arg5[%c0_11, %c0_12] : memref<2x128xf32, #tpu.memory_space<vmem>>, vector<1x128xf32>
    %c1_13 = arith.constant 1 : index
    %c0_14 = arith.constant 0 : index
    %10 = vector.load %arg5[%c1_13, %c0_14] : memref<2x128xf32, #tpu.memory_space<vmem>>, vector<1x128xf32>
    %cst = arith.constant dense<0.000000e+00> : vector<16x128xf32>
    %11 = tpu.matmul %0, %6, %cst {dimension_numbers = #tpu.dot_dimension_numbers<[1], [0], [0], [1], [0, 0, 1, 1], [], []>} : vector<16x128xbf16>, vector<128x128xbf16>, vector<16x128xf32> -> vector<16x128xf32>
    %12 = vector.broadcast %9 : vector<1x128xf32> to vector<16x128xf32>
    %13 = arith.addf %11, %12 : vector<16x128xf32>
    %c0_15 = arith.constant 0 : index
    %c0_16 = arith.constant 0 : index
    %14 = vector.load %arg6[%c0_15, %c0_16] : memref<128x256xbf16, #tpu.memory_space<vmem>>, vector<128x256xbf16>
    %cst_17 = arith.constant dense<0.000000e+00> : vector<160x256xf32>
    %15 = tpu.matmul %4, %14, %cst_17 {dimension_numbers = #tpu.dot_dimension_numbers<[1], [0], [0], [1], [0, 0, 1, 1], [], []>} : vector<160x128xbf16>, vector<128x256xbf16>, vector<160x256xf32> -> vector<160x256xf32>
    %c0_18 = arith.constant 0 : index
    %c0_19 = arith.constant 0 : index
    %16 = vector.load %arg7[%c0_18, %c0_19] : memref<1x256xf32, #tpu.memory_space<vmem>>, vector<1x256xf32>
    %17 = vector.broadcast %16 : vector<1x256xf32> to vector<160x256xf32>
    %18 = arith.addf %15, %17 : vector<160x256xf32>
    %19 = vector.extract_strided_slice %18 {offsets = [0, 0], sizes = [160, 128], strides = [1, 1]} : vector<160x256xf32> to vector<160x128xf32>
    %20 = vector.extract_strided_slice %18 {offsets = [0, 128], sizes = [160, 128], strides = [1, 1]} : vector<160x256xf32> to vector<160x128xf32>
    %21 = tpu.concatenate %13, %13, %13, %13, %13, %13, %13, %13, %13, %13 in 0 : vector<16x128xf32>, vector<16x128xf32>, vector<16x128xf32>, vector<16x128xf32>, vector<16x128xf32>, vector<16x128xf32>, vector<16x128xf32>, vector<16x128xf32>, vector<16x128xf32>, vector<16x128xf32> -> vector<160x128xf32>
    %22 = arith.mulf %21, %19 : vector<160x128xf32>
    %23 = arith.truncf %22 : vector<160x128xf32> to vector<160x128xbf16>
    %cst_20 = arith.constant dense<0.000000e+00> : vector<160x128xf32>
    %24 = tpu.matmul %23, %2, %cst_20 {dimension_numbers = #tpu.dot_dimension_numbers<[1], [0], [0], [1], [0, 0, 1, 1], [], []>} : vector<160x128xbf16>, vector<128x128xbf16>, vector<160x128xf32> -> vector<160x128xf32>
    %25 = vector.extract_strided_slice %24 {offsets = [0, 0], sizes = [16, 128], strides = [1, 1]} : vector<160x128xf32> to vector<16x128xf32>
    %26 = vector.extract_strided_slice %24 {offsets = [16, 0], sizes = [16, 128], strides = [1, 1]} : vector<160x128xf32> to vector<16x128xf32>
    %27 = arith.maximumf %25, %26 : vector<16x128xf32>
    %28 = vector.extract_strided_slice %24 {offsets = [32, 0], sizes = [16, 128], strides = [1, 1]} : vector<160x128xf32> to vector<16x128xf32>
    %29 = arith.maximumf %27, %28 : vector<16x128xf32>
    %30 = vector.extract_strided_slice %24 {offsets = [48, 0], sizes = [16, 128], strides = [1, 1]} : vector<160x128xf32> to vector<16x128xf32>
    %31 = arith.maximumf %29, %30 : vector<16x128xf32>
    %32 = vector.extract_strided_slice %24 {offsets = [64, 0], sizes = [16, 128], strides = [1, 1]} : vector<160x128xf32> to vector<16x128xf32>
    %33 = arith.maximumf %31, %32 : vector<16x128xf32>
    %34 = vector.extract_strided_slice %24 {offsets = [80, 0], sizes = [16, 128], strides = [1, 1]} : vector<160x128xf32> to vector<16x128xf32>
    %35 = arith.maximumf %33, %34 : vector<16x128xf32>
    %36 = vector.extract_strided_slice %24 {offsets = [96, 0], sizes = [16, 128], strides = [1, 1]} : vector<160x128xf32> to vector<16x128xf32>
    %37 = arith.maximumf %35, %36 : vector<16x128xf32>
    %38 = vector.extract_strided_slice %24 {offsets = [112, 0], sizes = [16, 128], strides = [1, 1]} : vector<160x128xf32> to vector<16x128xf32>
    %39 = arith.maximumf %37, %38 : vector<16x128xf32>
    %40 = vector.extract_strided_slice %24 {offsets = [128, 0], sizes = [16, 128], strides = [1, 1]} : vector<160x128xf32> to vector<16x128xf32>
    %41 = arith.maximumf %39, %40 : vector<16x128xf32>
    %42 = vector.extract_strided_slice %24 {offsets = [144, 0], sizes = [16, 128], strides = [1, 1]} : vector<160x128xf32> to vector<16x128xf32>
    %43 = arith.maximumf %41, %42 : vector<16x128xf32>
    %cst_21 = arith.constant 0.000000e+00 : f32
    %44 = vector.broadcast %cst_21 : f32 to vector<16x128xf32>
    %cst_22 = arith.constant 0.000000e+00 : f32
    %45 = vector.broadcast %cst_22 : f32 to vector<16x128xf32>
    %46 = vector.extract_strided_slice %24 {offsets = [0, 0], sizes = [16, 128], strides = [1, 1]} : vector<160x128xf32> to vector<16x128xf32>
    %47 = arith.subf %46, %43 : vector<16x128xf32>
    %48 = math.exp %47 : vector<16x128xf32>
    %49 = arith.addf %44, %48 : vector<16x128xf32>
    %50 = vector.extract_strided_slice %20 {offsets = [0, 0], sizes = [16, 128], strides = [1, 1]} : vector<160x128xf32> to vector<16x128xf32>
    %51 = arith.mulf %48, %50 : vector<16x128xf32>
    %52 = arith.addf %45, %51 : vector<16x128xf32>
    %53 = vector.extract_strided_slice %24 {offsets = [16, 0], sizes = [16, 128], strides = [1, 1]} : vector<160x128xf32> to vector<16x128xf32>
    %54 = arith.subf %53, %43 : vector<16x128xf32>
    %55 = math.exp %54 : vector<16x128xf32>
    %56 = arith.addf %49, %55 : vector<16x128xf32>
    %57 = vector.extract_strided_slice %20 {offsets = [16, 0], sizes = [16, 128], strides = [1, 1]} : vector<160x128xf32> to vector<16x128xf32>
    %58 = arith.mulf %55, %57 : vector<16x128xf32>
    %59 = arith.addf %52, %58 : vector<16x128xf32>
    %60 = vector.extract_strided_slice %24 {offsets = [32, 0], sizes = [16, 128], strides = [1, 1]} : vector<160x128xf32> to vector<16x128xf32>
    %61 = arith.subf %60, %43 : vector<16x128xf32>
    %62 = math.exp %61 : vector<16x128xf32>
    %63 = arith.addf %56, %62 : vector<16x128xf32>
    %64 = vector.extract_strided_slice %20 {offsets = [32, 0], sizes = [16, 128], strides = [1, 1]} : vector<160x128xf32> to vector<16x128xf32>
    %65 = arith.mulf %62, %64 : vector<16x128xf32>
    %66 = arith.addf %59, %65 : vector<16x128xf32>
    %67 = vector.extract_strided_slice %24 {offsets = [48, 0], sizes = [16, 128], strides = [1, 1]} : vector<160x128xf32> to vector<16x128xf32>
    %68 = arith.subf %67, %43 : vector<16x128xf32>
    %69 = math.exp %68 : vector<16x128xf32>
    %70 = arith.addf %63, %69 : vector<16x128xf32>
    %71 = vector.extract_strided_slice %20 {offsets = [48, 0], sizes = [16, 128], strides = [1, 1]} : vector<160x128xf32> to vector<16x128xf32>
    %72 = arith.mulf %69, %71 : vector<16x128xf32>
    %73 = arith.addf %66, %72 : vector<16x128xf32>
    %74 = vector.extract_strided_slice %24 {offsets = [64, 0], sizes = [16, 128], strides = [1, 1]} : vector<160x128xf32> to vector<16x128xf32>
    %75 = arith.subf %74, %43 : vector<16x128xf32>
    %76 = math.exp %75 : vector<16x128xf32>
    %77 = arith.addf %70, %76 : vector<16x128xf32>
    %78 = vector.extract_strided_slice %20 {offsets = [64, 0], sizes = [16, 128], strides = [1, 1]} : vector<160x128xf32> to vector<16x128xf32>
    %79 = arith.mulf %76, %78 : vector<16x128xf32>
    %80 = arith.addf %73, %79 : vector<16x128xf32>
    %81 = vector.extract_strided_slice %24 {offsets = [80, 0], sizes = [16, 128], strides = [1, 1]} : vector<160x128xf32> to vector<16x128xf32>
    %82 = arith.subf %81, %43 : vector<16x128xf32>
    %83 = math.exp %82 : vector<16x128xf32>
    %84 = arith.addf %77, %83 : vector<16x128xf32>
    %85 = vector.extract_strided_slice %20 {offsets = [80, 0], sizes = [16, 128], strides = [1, 1]} : vector<160x128xf32> to vector<16x128xf32>
    %86 = arith.mulf %83, %85 : vector<16x128xf32>
    %87 = arith.addf %80, %86 : vector<16x128xf32>
    %88 = vector.extract_strided_slice %24 {offsets = [96, 0], sizes = [16, 128], strides = [1, 1]} : vector<160x128xf32> to vector<16x128xf32>
    %89 = arith.subf %88, %43 : vector<16x128xf32>
    %90 = math.exp %89 : vector<16x128xf32>
    %91 = arith.addf %84, %90 : vector<16x128xf32>
    %92 = vector.extract_strided_slice %20 {offsets = [96, 0], sizes = [16, 128], strides = [1, 1]} : vector<160x128xf32> to vector<16x128xf32>
    %93 = arith.mulf %90, %92 : vector<16x128xf32>
    %94 = arith.addf %87, %93 : vector<16x128xf32>
    %95 = vector.extract_strided_slice %24 {offsets = [112, 0], sizes = [16, 128], strides = [1, 1]} : vector<160x128xf32> to vector<16x128xf32>
    %96 = arith.subf %95, %43 : vector<16x128xf32>
    %97 = math.exp %96 : vector<16x128xf32>
    %98 = arith.addf %91, %97 : vector<16x128xf32>
    %99 = vector.extract_strided_slice %20 {offsets = [112, 0], sizes = [16, 128], strides = [1, 1]} : vector<160x128xf32> to vector<16x128xf32>
    %100 = arith.mulf %97, %99 : vector<16x128xf32>
    %101 = arith.addf %94, %100 : vector<16x128xf32>
    %102 = vector.extract_strided_slice %24 {offsets = [128, 0], sizes = [16, 128], strides = [1, 1]} : vector<160x128xf32> to vector<16x128xf32>
    %103 = arith.subf %102, %43 : vector<16x128xf32>
    %104 = math.exp %103 : vector<16x128xf32>
    %105 = arith.addf %98, %104 : vector<16x128xf32>
    %106 = vector.extract_strided_slice %20 {offsets = [128, 0], sizes = [16, 128], strides = [1, 1]} : vector<160x128xf32> to vector<16x128xf32>
    %107 = arith.mulf %104, %106 : vector<16x128xf32>
    %108 = arith.addf %101, %107 : vector<16x128xf32>
    %109 = vector.extract_strided_slice %24 {offsets = [144, 0], sizes = [16, 128], strides = [1, 1]} : vector<160x128xf32> to vector<16x128xf32>
    %110 = arith.subf %109, %43 : vector<16x128xf32>
    %111 = math.exp %110 : vector<16x128xf32>
    %112 = arith.addf %105, %111 : vector<16x128xf32>
    %113 = vector.extract_strided_slice %20 {offsets = [144, 0], sizes = [16, 128], strides = [1, 1]} : vector<160x128xf32> to vector<16x128xf32>
    %114 = arith.mulf %111, %113 : vector<16x128xf32>
    %115 = arith.addf %108, %114 : vector<16x128xf32>
    %116 = tpu.reciprocal %112 {approx = true} : vector<16x128xf32> -> vector<16x128xf32>
    %117 = arith.mulf %115, %116 : vector<16x128xf32>
    %118 = arith.truncf %117 : vector<16x128xf32> to vector<16x128xbf16>
    %cst_23 = arith.constant dense<0.000000e+00> : vector<16x128xf32>
    %119 = tpu.matmul %118, %8, %cst_23 {dimension_numbers = #tpu.dot_dimension_numbers<[1], [0], [0], [1], [0, 0, 1, 1], [], []>} : vector<16x128xbf16>, vector<128x128xbf16>, vector<16x128xf32> -> vector<16x128xf32>
    %120 = vector.broadcast %10 : vector<1x128xf32> to vector<16x128xf32>
    %121 = arith.addf %119, %120 : vector<16x128xf32>
    %122 = arith.addf %1, %121 : vector<16x128xf32>
    %c0_24 = arith.constant 0 : index
    %c0_25 = arith.constant 0 : index
    %123 = vector.load %arg12[%c0_24, %c0_25] : memref<4x128xf32, #tpu.memory_space<vmem>>, vector<1x128xf32>
    %c1_26 = arith.constant 1 : index
    %c0_27 = arith.constant 0 : index
    %124 = vector.load %arg12[%c1_26, %c0_27] : memref<4x128xf32, #tpu.memory_space<vmem>>, vector<1x128xf32>
    %cst_28 = arith.constant dense<0.000000e+00> : vector<16xf32>
    %125 = vector.multi_reduction <add>, %122, %cst_28 [1] : vector<16x128xf32> to vector<16xf32>
    %126 = vector.shape_cast %125 : vector<16xf32> to vector<16x1xf32>
    %cst_29 = arith.constant 1.280000e+02 : f32
    %127 = vector.broadcast %cst_29 : f32 to vector<16x1xf32>
    %128 = arith.divf %126, %127 : vector<16x1xf32>
    %129 = vector.broadcast %128 : vector<16x1xf32> to vector<16x128xf32>
    %130 = arith.subf %122, %129 : vector<16x128xf32>
    %131 = arith.mulf %130, %130 : vector<16x128xf32>
    %cst_30 = arith.constant dense<0.000000e+00> : vector<16xf32>
    %132 = vector.multi_reduction <add>, %131, %cst_30 [1] : vector<16x128xf32> to vector<16xf32>
    %133 = vector.shape_cast %132 : vector<16xf32> to vector<16x1xf32>
    %cst_31 = arith.constant 1.280000e+02 : f32
    %134 = vector.broadcast %cst_31 : f32 to vector<16x1xf32>
    %135 = arith.divf %133, %134 : vector<16x1xf32>
    %cst_32 = arith.constant 9.99999974E-6 : f32
    %136 = vector.broadcast %cst_32 : f32 to vector<16x1xf32>
    %137 = arith.addf %135, %136 : vector<16x1xf32>
    %138 = math.rsqrt %137 : vector<16x1xf32>
    %139 = vector.broadcast %138 : vector<16x1xf32> to vector<16x128xf32>
    %140 = arith.mulf %130, %139 : vector<16x128xf32>
    %141 = vector.broadcast %123 : vector<1x128xf32> to vector<16x128xf32>
    %142 = arith.mulf %140, %141 : vector<16x128xf32>
    %143 = vector.broadcast %124 : vector<1x128xf32> to vector<16x128xf32>
    %144 = arith.addf %142, %143 : vector<16x128xf32>
    %145 = arith.truncf %144 : vector<16x128xf32> to vector<16x128xbf16>
    %c0_33 = arith.constant 0 : index
    %c0_34 = arith.constant 0 : index
    %146 = vector.load %arg8[%c0_33, %c0_34] : memref<128x512xbf16, #tpu.memory_space<vmem>>, vector<128x512xbf16>
    %cst_35 = arith.constant dense<0.000000e+00> : vector<16x512xf32>
    %147 = tpu.matmul %145, %146, %cst_35 {dimension_numbers = #tpu.dot_dimension_numbers<[1], [0], [0], [1], [0, 0, 1, 1], [], []>} : vector<16x128xbf16>, vector<128x512xbf16>, vector<16x512xf32> -> vector<16x512xf32>
    %c0_36 = arith.constant 0 : index
    %c0_37 = arith.constant 0 : index
    %148 = vector.load %arg9[%c0_36, %c0_37] : memref<1x512xf32, #tpu.memory_space<vmem>>, vector<1x512xf32>
    %149 = vector.broadcast %148 : vector<1x512xf32> to vector<16x512xf32>
    %150 = arith.addf %147, %149 : vector<16x512xf32>
    %cst_38 = arith.constant 0.000000e+00 : f32
    %151 = vector.broadcast %cst_38 : f32 to vector<16x512xf32>
    %152 = arith.maximumf %150, %151 : vector<16x512xf32>
    %153 = arith.truncf %152 : vector<16x512xf32> to vector<16x512xbf16>
    %c0_39 = arith.constant 0 : index
    %c0_40 = arith.constant 0 : index
    %154 = vector.load %arg10[%c0_39, %c0_40] : memref<512x128xbf16, #tpu.memory_space<vmem>>, vector<512x128xbf16>
    %cst_41 = arith.constant dense<0.000000e+00> : vector<16x128xf32>
    %155 = tpu.matmul %153, %154, %cst_41 {dimension_numbers = #tpu.dot_dimension_numbers<[1], [0], [0], [1], [0, 0, 1, 1], [], []>} : vector<16x512xbf16>, vector<512x128xbf16>, vector<16x128xf32> -> vector<16x128xf32>
    %c0_42 = arith.constant 0 : index
    %c0_43 = arith.constant 0 : index
    %156 = vector.load %arg11[%c0_42, %c0_43] : memref<1x128xf32, #tpu.memory_space<vmem>>, vector<1x128xf32>
    %157 = vector.broadcast %156 : vector<1x128xf32> to vector<16x128xf32>
    %158 = arith.addf %155, %157 : vector<16x128xf32>
    %159 = arith.addf %144, %158 : vector<16x128xf32>
    %c2 = arith.constant 2 : index
    %c0_44 = arith.constant 0 : index
    %160 = vector.load %arg12[%c2, %c0_44] : memref<4x128xf32, #tpu.memory_space<vmem>>, vector<1x128xf32>
    %c3 = arith.constant 3 : index
    %c0_45 = arith.constant 0 : index
    %161 = vector.load %arg12[%c3, %c0_45] : memref<4x128xf32, #tpu.memory_space<vmem>>, vector<1x128xf32>
    %cst_46 = arith.constant dense<0.000000e+00> : vector<16xf32>
    %162 = vector.multi_reduction <add>, %159, %cst_46 [1] : vector<16x128xf32> to vector<16xf32>
    %163 = vector.shape_cast %162 : vector<16xf32> to vector<16x1xf32>
    %cst_47 = arith.constant 1.280000e+02 : f32
    %164 = vector.broadcast %cst_47 : f32 to vector<16x1xf32>
    %165 = arith.divf %163, %164 : vector<16x1xf32>
    %166 = vector.broadcast %165 : vector<16x1xf32> to vector<16x128xf32>
    %167 = arith.subf %159, %166 : vector<16x128xf32>
    %168 = arith.mulf %167, %167 : vector<16x128xf32>
    %cst_48 = arith.constant dense<0.000000e+00> : vector<16xf32>
    %169 = vector.multi_reduction <add>, %168, %cst_48 [1] : vector<16x128xf32> to vector<16xf32>
    %170 = vector.shape_cast %169 : vector<16xf32> to vector<16x1xf32>
    %cst_49 = arith.constant 1.280000e+02 : f32
    %171 = vector.broadcast %cst_49 : f32 to vector<16x1xf32>
    %172 = arith.divf %170, %171 : vector<16x1xf32>
    %cst_50 = arith.constant 9.99999974E-6 : f32
    %173 = vector.broadcast %cst_50 : f32 to vector<16x1xf32>
    %174 = arith.addf %172, %173 : vector<16x1xf32>
    %175 = math.rsqrt %174 : vector<16x1xf32>
    %176 = vector.broadcast %175 : vector<16x1xf32> to vector<16x128xf32>
    %177 = arith.mulf %167, %176 : vector<16x128xf32>
    %178 = vector.broadcast %160 : vector<1x128xf32> to vector<16x128xf32>
    %179 = arith.mulf %177, %178 : vector<16x128xf32>
    %180 = vector.broadcast %161 : vector<1x128xf32> to vector<16x128xf32>
    %181 = arith.addf %179, %180 : vector<16x128xf32>
    %182 = vector.extract_strided_slice %4 {offsets = [16, 0], sizes = [144, 128], strides = [1, 1]} : vector<160x128xbf16> to vector<144x128xbf16>
    %c0_51 = arith.constant 0 : index
    %c0_52 = arith.constant 0 : index
    %c0_53 = arith.constant 0 : index
    %183 = vector.load %arg13[%c0_51, %c0_52, %c0_53] : memref<2x128x128xbf16, #tpu.memory_space<vmem>>, vector<1x128x128xbf16>
    %184 = vector.shape_cast %183 : vector<1x128x128xbf16> to vector<128x128xbf16>
    %c1_54 = arith.constant 1 : index
    %c0_55 = arith.constant 0 : index
    %c0_56 = arith.constant 0 : index
    %185 = vector.load %arg13[%c1_54, %c0_55, %c0_56] : memref<2x128x128xbf16, #tpu.memory_space<vmem>>, vector<1x128x128xbf16>
    %186 = vector.shape_cast %185 : vector<1x128x128xbf16> to vector<128x128xbf16>
    %c0_57 = arith.constant 0 : index
    %c0_58 = arith.constant 0 : index
    %187 = vector.load %arg14[%c0_57, %c0_58] : memref<2x128xf32, #tpu.memory_space<vmem>>, vector<1x128xf32>
    %c1_59 = arith.constant 1 : index
    %c0_60 = arith.constant 0 : index
    %188 = vector.load %arg14[%c1_59, %c0_60] : memref<2x128xf32, #tpu.memory_space<vmem>>, vector<1x128xf32>
    %cst_61 = arith.constant dense<0.000000e+00> : vector<16x128xf32>
    %189 = tpu.matmul %0, %184, %cst_61 {dimension_numbers = #tpu.dot_dimension_numbers<[1], [0], [0], [1], [0, 0, 1, 1], [], []>} : vector<16x128xbf16>, vector<128x128xbf16>, vector<16x128xf32> -> vector<16x128xf32>
    %190 = vector.broadcast %187 : vector<1x128xf32> to vector<16x128xf32>
    %191 = arith.addf %189, %190 : vector<16x128xf32>
    %c0_62 = arith.constant 0 : index
    %c0_63 = arith.constant 0 : index
    %192 = vector.load %arg15[%c0_62, %c0_63] : memref<128x256xbf16, #tpu.memory_space<vmem>>, vector<128x256xbf16>
    %cst_64 = arith.constant dense<0.000000e+00> : vector<144x256xf32>
    %193 = tpu.matmul %182, %192, %cst_64 {dimension_numbers = #tpu.dot_dimension_numbers<[1], [0], [0], [1], [0, 0, 1, 1], [], []>} : vector<144x128xbf16>, vector<128x256xbf16>, vector<144x256xf32> -> vector<144x256xf32>
    %c0_65 = arith.constant 0 : index
    %c0_66 = arith.constant 0 : index
    %194 = vector.load %arg16[%c0_65, %c0_66] : memref<1x256xf32, #tpu.memory_space<vmem>>, vector<1x256xf32>
    %195 = vector.broadcast %194 : vector<1x256xf32> to vector<144x256xf32>
    %196 = arith.addf %193, %195 : vector<144x256xf32>
    %197 = vector.extract_strided_slice %196 {offsets = [0, 0], sizes = [144, 128], strides = [1, 1]} : vector<144x256xf32> to vector<144x128xf32>
    %198 = vector.extract_strided_slice %196 {offsets = [0, 128], sizes = [144, 128], strides = [1, 1]} : vector<144x256xf32> to vector<144x128xf32>
    %199 = tpu.concatenate %191, %191, %191, %191, %191, %191, %191, %191, %191 in 0 : vector<16x128xf32>, vector<16x128xf32>, vector<16x128xf32>, vector<16x128xf32>, vector<16x128xf32>, vector<16x128xf32>, vector<16x128xf32>, vector<16x128xf32>, vector<16x128xf32> -> vector<144x128xf32>
    %200 = arith.mulf %199, %197 : vector<144x128xf32>
    %201 = arith.truncf %200 : vector<144x128xf32> to vector<144x128xbf16>
    %cst_67 = arith.constant dense<0.000000e+00> : vector<144x128xf32>
    %202 = tpu.matmul %201, %2, %cst_67 {dimension_numbers = #tpu.dot_dimension_numbers<[1], [0], [0], [1], [0, 0, 1, 1], [], []>} : vector<144x128xbf16>, vector<128x128xbf16>, vector<144x128xf32> -> vector<144x128xf32>
    %203 = vector.extract_strided_slice %202 {offsets = [0, 0], sizes = [16, 128], strides = [1, 1]} : vector<144x128xf32> to vector<16x128xf32>
    %204 = vector.extract_strided_slice %202 {offsets = [16, 0], sizes = [16, 128], strides = [1, 1]} : vector<144x128xf32> to vector<16x128xf32>
    %205 = arith.maximumf %203, %204 : vector<16x128xf32>
    %206 = vector.extract_strided_slice %202 {offsets = [32, 0], sizes = [16, 128], strides = [1, 1]} : vector<144x128xf32> to vector<16x128xf32>
    %207 = arith.maximumf %205, %206 : vector<16x128xf32>
    %208 = vector.extract_strided_slice %202 {offsets = [48, 0], sizes = [16, 128], strides = [1, 1]} : vector<144x128xf32> to vector<16x128xf32>
    %209 = arith.maximumf %207, %208 : vector<16x128xf32>
    %210 = vector.extract_strided_slice %202 {offsets = [64, 0], sizes = [16, 128], strides = [1, 1]} : vector<144x128xf32> to vector<16x128xf32>
    %211 = arith.maximumf %209, %210 : vector<16x128xf32>
    %212 = vector.extract_strided_slice %202 {offsets = [80, 0], sizes = [16, 128], strides = [1, 1]} : vector<144x128xf32> to vector<16x128xf32>
    %213 = arith.maximumf %211, %212 : vector<16x128xf32>
    %214 = vector.extract_strided_slice %202 {offsets = [96, 0], sizes = [16, 128], strides = [1, 1]} : vector<144x128xf32> to vector<16x128xf32>
    %215 = arith.maximumf %213, %214 : vector<16x128xf32>
    %216 = vector.extract_strided_slice %202 {offsets = [112, 0], sizes = [16, 128], strides = [1, 1]} : vector<144x128xf32> to vector<16x128xf32>
    %217 = arith.maximumf %215, %216 : vector<16x128xf32>
    %218 = vector.extract_strided_slice %202 {offsets = [128, 0], sizes = [16, 128], strides = [1, 1]} : vector<144x128xf32> to vector<16x128xf32>
    %219 = arith.maximumf %217, %218 : vector<16x128xf32>
    %cst_68 = arith.constant 0.000000e+00 : f32
    %220 = vector.broadcast %cst_68 : f32 to vector<16x128xf32>
    %cst_69 = arith.constant 0.000000e+00 : f32
    %221 = vector.broadcast %cst_69 : f32 to vector<16x128xf32>
    %222 = vector.extract_strided_slice %202 {offsets = [0, 0], sizes = [16, 128], strides = [1, 1]} : vector<144x128xf32> to vector<16x128xf32>
    %223 = arith.subf %222, %219 : vector<16x128xf32>
    %224 = math.exp %223 : vector<16x128xf32>
    %225 = arith.addf %220, %224 : vector<16x128xf32>
    %226 = vector.extract_strided_slice %198 {offsets = [0, 0], sizes = [16, 128], strides = [1, 1]} : vector<144x128xf32> to vector<16x128xf32>
    %227 = arith.mulf %224, %226 : vector<16x128xf32>
    %228 = arith.addf %221, %227 : vector<16x128xf32>
    %229 = vector.extract_strided_slice %202 {offsets = [16, 0], sizes = [16, 128], strides = [1, 1]} : vector<144x128xf32> to vector<16x128xf32>
    %230 = arith.subf %229, %219 : vector<16x128xf32>
    %231 = math.exp %230 : vector<16x128xf32>
    %232 = arith.addf %225, %231 : vector<16x128xf32>
    %233 = vector.extract_strided_slice %198 {offsets = [16, 0], sizes = [16, 128], strides = [1, 1]} : vector<144x128xf32> to vector<16x128xf32>
    %234 = arith.mulf %231, %233 : vector<16x128xf32>
    %235 = arith.addf %228, %234 : vector<16x128xf32>
    %236 = vector.extract_strided_slice %202 {offsets = [32, 0], sizes = [16, 128], strides = [1, 1]} : vector<144x128xf32> to vector<16x128xf32>
    %237 = arith.subf %236, %219 : vector<16x128xf32>
    %238 = math.exp %237 : vector<16x128xf32>
    %239 = arith.addf %232, %238 : vector<16x128xf32>
    %240 = vector.extract_strided_slice %198 {offsets = [32, 0], sizes = [16, 128], strides = [1, 1]} : vector<144x128xf32> to vector<16x128xf32>
    %241 = arith.mulf %238, %240 : vector<16x128xf32>
    %242 = arith.addf %235, %241 : vector<16x128xf32>
    %243 = vector.extract_strided_slice %202 {offsets = [48, 0], sizes = [16, 128], strides = [1, 1]} : vector<144x128xf32> to vector<16x128xf32>
    %244 = arith.subf %243, %219 : vector<16x128xf32>
    %245 = math.exp %244 : vector<16x128xf32>
    %246 = arith.addf %239, %245 : vector<16x128xf32>
    %247 = vector.extract_strided_slice %198 {offsets = [48, 0], sizes = [16, 128], strides = [1, 1]} : vector<144x128xf32> to vector<16x128xf32>
    %248 = arith.mulf %245, %247 : vector<16x128xf32>
    %249 = arith.addf %242, %248 : vector<16x128xf32>
    %250 = vector.extract_strided_slice %202 {offsets = [64, 0], sizes = [16, 128], strides = [1, 1]} : vector<144x128xf32> to vector<16x128xf32>
    %251 = arith.subf %250, %219 : vector<16x128xf32>
    %252 = math.exp %251 : vector<16x128xf32>
    %253 = arith.addf %246, %252 : vector<16x128xf32>
    %254 = vector.extract_strided_slice %198 {offsets = [64, 0], sizes = [16, 128], strides = [1, 1]} : vector<144x128xf32> to vector<16x128xf32>
    %255 = arith.mulf %252, %254 : vector<16x128xf32>
    %256 = arith.addf %249, %255 : vector<16x128xf32>
    %257 = vector.extract_strided_slice %202 {offsets = [80, 0], sizes = [16, 128], strides = [1, 1]} : vector<144x128xf32> to vector<16x128xf32>
    %258 = arith.subf %257, %219 : vector<16x128xf32>
    %259 = math.exp %258 : vector<16x128xf32>
    %260 = arith.addf %253, %259 : vector<16x128xf32>
    %261 = vector.extract_strided_slice %198 {offsets = [80, 0], sizes = [16, 128], strides = [1, 1]} : vector<144x128xf32> to vector<16x128xf32>
    %262 = arith.mulf %259, %261 : vector<16x128xf32>
    %263 = arith.addf %256, %262 : vector<16x128xf32>
    %264 = vector.extract_strided_slice %202 {offsets = [96, 0], sizes = [16, 128], strides = [1, 1]} : vector<144x128xf32> to vector<16x128xf32>
    %265 = arith.subf %264, %219 : vector<16x128xf32>
    %266 = math.exp %265 : vector<16x128xf32>
    %267 = arith.addf %260, %266 : vector<16x128xf32>
    %268 = vector.extract_strided_slice %198 {offsets = [96, 0], sizes = [16, 128], strides = [1, 1]} : vector<144x128xf32> to vector<16x128xf32>
    %269 = arith.mulf %266, %268 : vector<16x128xf32>
    %270 = arith.addf %263, %269 : vector<16x128xf32>
    %271 = vector.extract_strided_slice %202 {offsets = [112, 0], sizes = [16, 128], strides = [1, 1]} : vector<144x128xf32> to vector<16x128xf32>
    %272 = arith.subf %271, %219 : vector<16x128xf32>
    %273 = math.exp %272 : vector<16x128xf32>
    %274 = arith.addf %267, %273 : vector<16x128xf32>
    %275 = vector.extract_strided_slice %198 {offsets = [112, 0], sizes = [16, 128], strides = [1, 1]} : vector<144x128xf32> to vector<16x128xf32>
    %276 = arith.mulf %273, %275 : vector<16x128xf32>
    %277 = arith.addf %270, %276 : vector<16x128xf32>
    %278 = vector.extract_strided_slice %202 {offsets = [128, 0], sizes = [16, 128], strides = [1, 1]} : vector<144x128xf32> to vector<16x128xf32>
    %279 = arith.subf %278, %219 : vector<16x128xf32>
    %280 = math.exp %279 : vector<16x128xf32>
    %281 = arith.addf %274, %280 : vector<16x128xf32>
    %282 = vector.extract_strided_slice %198 {offsets = [128, 0], sizes = [16, 128], strides = [1, 1]} : vector<144x128xf32> to vector<16x128xf32>
    %283 = arith.mulf %280, %282 : vector<16x128xf32>
    %284 = arith.addf %277, %283 : vector<16x128xf32>
    %285 = tpu.reciprocal %281 {approx = true} : vector<16x128xf32> -> vector<16x128xf32>
    %286 = arith.mulf %284, %285 : vector<16x128xf32>
    %287 = arith.truncf %286 : vector<16x128xf32> to vector<16x128xbf16>
    %cst_70 = arith.constant dense<0.000000e+00> : vector<16x128xf32>
    %288 = tpu.matmul %287, %186, %cst_70 {dimension_numbers = #tpu.dot_dimension_numbers<[1], [0], [0], [1], [0, 0, 1, 1], [], []>} : vector<16x128xbf16>, vector<128x128xbf16>, vector<16x128xf32> -> vector<16x128xf32>
    %289 = vector.broadcast %188 : vector<1x128xf32> to vector<16x128xf32>
    %290 = arith.addf %288, %289 : vector<16x128xf32>
    %291 = arith.addf %1, %290 : vector<16x128xf32>
    %c0_71 = arith.constant 0 : index
    %c0_72 = arith.constant 0 : index
    %292 = vector.load %arg21[%c0_71, %c0_72] : memref<4x128xf32, #tpu.memory_space<vmem>>, vector<1x128xf32>
    %c1_73 = arith.constant 1 : index
    %c0_74 = arith.constant 0 : index
    %293 = vector.load %arg21[%c1_73, %c0_74] : memref<4x128xf32, #tpu.memory_space<vmem>>, vector<1x128xf32>
    %cst_75 = arith.constant dense<0.000000e+00> : vector<16xf32>
    %294 = vector.multi_reduction <add>, %291, %cst_75 [1] : vector<16x128xf32> to vector<16xf32>
    %295 = vector.shape_cast %294 : vector<16xf32> to vector<16x1xf32>
    %cst_76 = arith.constant 1.280000e+02 : f32
    %296 = vector.broadcast %cst_76 : f32 to vector<16x1xf32>
    %297 = arith.divf %295, %296 : vector<16x1xf32>
    %298 = vector.broadcast %297 : vector<16x1xf32> to vector<16x128xf32>
    %299 = arith.subf %291, %298 : vector<16x128xf32>
    %300 = arith.mulf %299, %299 : vector<16x128xf32>
    %cst_77 = arith.constant dense<0.000000e+00> : vector<16xf32>
    %301 = vector.multi_reduction <add>, %300, %cst_77 [1] : vector<16x128xf32> to vector<16xf32>
    %302 = vector.shape_cast %301 : vector<16xf32> to vector<16x1xf32>
    %cst_78 = arith.constant 1.280000e+02 : f32
    %303 = vector.broadcast %cst_78 : f32 to vector<16x1xf32>
    %304 = arith.divf %302, %303 : vector<16x1xf32>
    %cst_79 = arith.constant 9.99999974E-6 : f32
    %305 = vector.broadcast %cst_79 : f32 to vector<16x1xf32>
    %306 = arith.addf %304, %305 : vector<16x1xf32>
    %307 = math.rsqrt %306 : vector<16x1xf32>
    %308 = vector.broadcast %307 : vector<16x1xf32> to vector<16x128xf32>
    %309 = arith.mulf %299, %308 : vector<16x128xf32>
    %310 = vector.broadcast %292 : vector<1x128xf32> to vector<16x128xf32>
    %311 = arith.mulf %309, %310 : vector<16x128xf32>
    %312 = vector.broadcast %293 : vector<1x128xf32> to vector<16x128xf32>
    %313 = arith.addf %311, %312 : vector<16x128xf32>
    %314 = arith.truncf %313 : vector<16x128xf32> to vector<16x128xbf16>
    %c0_80 = arith.constant 0 : index
    %c0_81 = arith.constant 0 : index
    %315 = vector.load %arg17[%c0_80, %c0_81] : memref<128x512xbf16, #tpu.memory_space<vmem>>, vector<128x512xbf16>
    %cst_82 = arith.constant dense<0.000000e+00> : vector<16x512xf32>
    %316 = tpu.matmul %314, %315, %cst_82 {dimension_numbers = #tpu.dot_dimension_numbers<[1], [0], [0], [1], [0, 0, 1, 1], [], []>} : vector<16x128xbf16>, vector<128x512xbf16>, vector<16x512xf32> -> vector<16x512xf32>
    %c0_83 = arith.constant 0 : index
    %c0_84 = arith.constant 0 : index
    %317 = vector.load %arg18[%c0_83, %c0_84] : memref<1x512xf32, #tpu.memory_space<vmem>>, vector<1x512xf32>
    %318 = vector.broadcast %317 : vector<1x512xf32> to vector<16x512xf32>
    %319 = arith.addf %316, %318 : vector<16x512xf32>
    %cst_85 = arith.constant 0.000000e+00 : f32
    %320 = vector.broadcast %cst_85 : f32 to vector<16x512xf32>
    %321 = arith.maximumf %319, %320 : vector<16x512xf32>
    %322 = arith.truncf %321 : vector<16x512xf32> to vector<16x512xbf16>
    %c0_86 = arith.constant 0 : index
    %c0_87 = arith.constant 0 : index
    %323 = vector.load %arg19[%c0_86, %c0_87] : memref<512x128xbf16, #tpu.memory_space<vmem>>, vector<512x128xbf16>
    %cst_88 = arith.constant dense<0.000000e+00> : vector<16x128xf32>
    %324 = tpu.matmul %322, %323, %cst_88 {dimension_numbers = #tpu.dot_dimension_numbers<[1], [0], [0], [1], [0, 0, 1, 1], [], []>} : vector<16x512xbf16>, vector<512x128xbf16>, vector<16x128xf32> -> vector<16x128xf32>
    %c0_89 = arith.constant 0 : index
    %c0_90 = arith.constant 0 : index
    %325 = vector.load %arg20[%c0_89, %c0_90] : memref<1x128xf32, #tpu.memory_space<vmem>>, vector<1x128xf32>
    %326 = vector.broadcast %325 : vector<1x128xf32> to vector<16x128xf32>
    %327 = arith.addf %324, %326 : vector<16x128xf32>
    %328 = arith.addf %313, %327 : vector<16x128xf32>
    %c2_91 = arith.constant 2 : index
    %c0_92 = arith.constant 0 : index
    %329 = vector.load %arg21[%c2_91, %c0_92] : memref<4x128xf32, #tpu.memory_space<vmem>>, vector<1x128xf32>
    %c3_93 = arith.constant 3 : index
    %c0_94 = arith.constant 0 : index
    %330 = vector.load %arg21[%c3_93, %c0_94] : memref<4x128xf32, #tpu.memory_space<vmem>>, vector<1x128xf32>
    %cst_95 = arith.constant dense<0.000000e+00> : vector<16xf32>
    %331 = vector.multi_reduction <add>, %328, %cst_95 [1] : vector<16x128xf32> to vector<16xf32>
    %332 = vector.shape_cast %331 : vector<16xf32> to vector<16x1xf32>
    %cst_96 = arith.constant 1.280000e+02 : f32
    %333 = vector.broadcast %cst_96 : f32 to vector<16x1xf32>
    %334 = arith.divf %332, %333 : vector<16x1xf32>
    %335 = vector.broadcast %334 : vector<16x1xf32> to vector<16x128xf32>
    %336 = arith.subf %328, %335 : vector<16x128xf32>
    %337 = arith.mulf %336, %336 : vector<16x128xf32>
    %cst_97 = arith.constant dense<0.000000e+00> : vector<16xf32>
    %338 = vector.multi_reduction <add>, %337, %cst_97 [1] : vector<16x128xf32> to vector<16xf32>
    %339 = vector.shape_cast %338 : vector<16xf32> to vector<16x1xf32>
    %cst_98 = arith.constant 1.280000e+02 : f32
    %340 = vector.broadcast %cst_98 : f32 to vector<16x1xf32>
    %341 = arith.divf %339, %340 : vector<16x1xf32>
    %cst_99 = arith.constant 9.99999974E-6 : f32
    %342 = vector.broadcast %cst_99 : f32 to vector<16x1xf32>
    %343 = arith.addf %341, %342 : vector<16x1xf32>
    %344 = math.rsqrt %343 : vector<16x1xf32>
    %345 = vector.broadcast %344 : vector<16x1xf32> to vector<16x128xf32>
    %346 = arith.mulf %336, %345 : vector<16x128xf32>
    %347 = vector.broadcast %329 : vector<1x128xf32> to vector<16x128xf32>
    %348 = arith.mulf %346, %347 : vector<16x128xf32>
    %349 = vector.broadcast %330 : vector<1x128xf32> to vector<16x128xf32>
    %350 = arith.addf %348, %349 : vector<16x128xf32>
    %351 = arith.truncf %350 : vector<16x128xf32> to vector<16x128xbf16>
    %352 = arith.truncf %181 : vector<16x128xf32> to vector<16x128xbf16>
    %353 = tpu.concatenate %351, %352 in 0 : vector<16x128xbf16>, vector<16x128xbf16> -> vector<32x128xbf16>
    %c0_100 = arith.constant 0 : index
    %c0_101 = arith.constant 0 : index
    %c0_102 = arith.constant 0 : index
    %354 = vector.load %arg22[%c0_100, %c0_101, %c0_102] : memref<2x128x128xbf16, #tpu.memory_space<vmem>>, vector<1x128x128xbf16>
    %355 = vector.shape_cast %354 : vector<1x128x128xbf16> to vector<128x128xbf16>
    %c1_103 = arith.constant 1 : index
    %c0_104 = arith.constant 0 : index
    %c0_105 = arith.constant 0 : index
    %356 = vector.load %arg22[%c1_103, %c0_104, %c0_105] : memref<2x128x128xbf16, #tpu.memory_space<vmem>>, vector<1x128x128xbf16>
    %357 = vector.shape_cast %356 : vector<1x128x128xbf16> to vector<128x128xbf16>
    %c0_106 = arith.constant 0 : index
    %c0_107 = arith.constant 0 : index
    %358 = vector.load %arg23[%c0_106, %c0_107] : memref<2x128xf32, #tpu.memory_space<vmem>>, vector<1x128xf32>
    %c1_108 = arith.constant 1 : index
    %c0_109 = arith.constant 0 : index
    %359 = vector.load %arg23[%c1_108, %c0_109] : memref<2x128xf32, #tpu.memory_space<vmem>>, vector<1x128xf32>
    %cst_110 = arith.constant dense<0.000000e+00> : vector<16x128xf32>
    %360 = tpu.matmul %351, %355, %cst_110 {dimension_numbers = #tpu.dot_dimension_numbers<[1], [0], [0], [1], [0, 0, 1, 1], [], []>} : vector<16x128xbf16>, vector<128x128xbf16>, vector<16x128xf32> -> vector<16x128xf32>
    %361 = vector.broadcast %358 : vector<1x128xf32> to vector<16x128xf32>
    %362 = arith.addf %360, %361 : vector<16x128xf32>
    %c0_111 = arith.constant 0 : index
    %c0_112 = arith.constant 0 : index
    %363 = vector.load %arg24[%c0_111, %c0_112] : memref<128x256xbf16, #tpu.memory_space<vmem>>, vector<128x256xbf16>
    %cst_113 = arith.constant dense<0.000000e+00> : vector<32x256xf32>
    %364 = tpu.matmul %353, %363, %cst_113 {dimension_numbers = #tpu.dot_dimension_numbers<[1], [0], [0], [1], [0, 0, 1, 1], [], []>} : vector<32x128xbf16>, vector<128x256xbf16>, vector<32x256xf32> -> vector<32x256xf32>
    %c0_114 = arith.constant 0 : index
    %c0_115 = arith.constant 0 : index
    %365 = vector.load %arg25[%c0_114, %c0_115] : memref<1x256xf32, #tpu.memory_space<vmem>>, vector<1x256xf32>
    %366 = vector.broadcast %365 : vector<1x256xf32> to vector<32x256xf32>
    %367 = arith.addf %364, %366 : vector<32x256xf32>
    %368 = vector.extract_strided_slice %367 {offsets = [0, 0], sizes = [32, 128], strides = [1, 1]} : vector<32x256xf32> to vector<32x128xf32>
    %369 = vector.extract_strided_slice %367 {offsets = [0, 128], sizes = [32, 128], strides = [1, 1]} : vector<32x256xf32> to vector<32x128xf32>
    %370 = tpu.concatenate %362, %362 in 0 : vector<16x128xf32>, vector<16x128xf32> -> vector<32x128xf32>
    %371 = arith.mulf %370, %368 : vector<32x128xf32>
    %372 = arith.truncf %371 : vector<32x128xf32> to vector<32x128xbf16>
    %cst_116 = arith.constant dense<0.000000e+00> : vector<32x128xf32>
    %373 = tpu.matmul %372, %2, %cst_116 {dimension_numbers = #tpu.dot_dimension_numbers<[1], [0], [0], [1], [0, 0, 1, 1], [], []>} : vector<32x128xbf16>, vector<128x128xbf16>, vector<32x128xf32> -> vector<32x128xf32>
    %374 = vector.extract_strided_slice %373 {offsets = [0, 0], sizes = [16, 128], strides = [1, 1]} : vector<32x128xf32> to vector<16x128xf32>
    %375 = vector.extract_strided_slice %373 {offsets = [16, 0], sizes = [16, 128], strides = [1, 1]} : vector<32x128xf32> to vector<16x128xf32>
    %376 = arith.maximumf %374, %375 : vector<16x128xf32>
    %cst_117 = arith.constant 0.000000e+00 : f32
    %377 = vector.broadcast %cst_117 : f32 to vector<16x128xf32>
    %cst_118 = arith.constant 0.000000e+00 : f32
    %378 = vector.broadcast %cst_118 : f32 to vector<16x128xf32>
    %379 = vector.extract_strided_slice %373 {offsets = [0, 0], sizes = [16, 128], strides = [1, 1]} : vector<32x128xf32> to vector<16x128xf32>
    %380 = arith.subf %379, %376 : vector<16x128xf32>
    %381 = math.exp %380 : vector<16x128xf32>
    %382 = arith.addf %377, %381 : vector<16x128xf32>
    %383 = vector.extract_strided_slice %369 {offsets = [0, 0], sizes = [16, 128], strides = [1, 1]} : vector<32x128xf32> to vector<16x128xf32>
    %384 = arith.mulf %381, %383 : vector<16x128xf32>
    %385 = arith.addf %378, %384 : vector<16x128xf32>
    %386 = vector.extract_strided_slice %373 {offsets = [16, 0], sizes = [16, 128], strides = [1, 1]} : vector<32x128xf32> to vector<16x128xf32>
    %387 = arith.subf %386, %376 : vector<16x128xf32>
    %388 = math.exp %387 : vector<16x128xf32>
    %389 = arith.addf %382, %388 : vector<16x128xf32>
    %390 = vector.extract_strided_slice %369 {offsets = [16, 0], sizes = [16, 128], strides = [1, 1]} : vector<32x128xf32> to vector<16x128xf32>
    %391 = arith.mulf %388, %390 : vector<16x128xf32>
    %392 = arith.addf %385, %391 : vector<16x128xf32>
    %393 = tpu.reciprocal %389 {approx = true} : vector<16x128xf32> -> vector<16x128xf32>
    %394 = arith.mulf %392, %393 : vector<16x128xf32>
    %395 = arith.truncf %394 : vector<16x128xf32> to vector<16x128xbf16>
    %cst_119 = arith.constant dense<0.000000e+00> : vector<16x128xf32>
    %396 = tpu.matmul %395, %357, %cst_119 {dimension_numbers = #tpu.dot_dimension_numbers<[1], [0], [0], [1], [0, 0, 1, 1], [], []>} : vector<16x128xbf16>, vector<128x128xbf16>, vector<16x128xf32> -> vector<16x128xf32>
    %397 = vector.broadcast %359 : vector<1x128xf32> to vector<16x128xf32>
    %398 = arith.addf %396, %397 : vector<16x128xf32>
    %399 = arith.addf %350, %398 : vector<16x128xf32>
    %c0_120 = arith.constant 0 : index
    %c0_121 = arith.constant 0 : index
    %400 = vector.load %arg30[%c0_120, %c0_121] : memref<4x128xf32, #tpu.memory_space<vmem>>, vector<1x128xf32>
    %c1_122 = arith.constant 1 : index
    %c0_123 = arith.constant 0 : index
    %401 = vector.load %arg30[%c1_122, %c0_123] : memref<4x128xf32, #tpu.memory_space<vmem>>, vector<1x128xf32>
    %cst_124 = arith.constant dense<0.000000e+00> : vector<16xf32>
    %402 = vector.multi_reduction <add>, %399, %cst_124 [1] : vector<16x128xf32> to vector<16xf32>
    %403 = vector.shape_cast %402 : vector<16xf32> to vector<16x1xf32>
    %cst_125 = arith.constant 1.280000e+02 : f32
    %404 = vector.broadcast %cst_125 : f32 to vector<16x1xf32>
    %405 = arith.divf %403, %404 : vector<16x1xf32>
    %406 = vector.broadcast %405 : vector<16x1xf32> to vector<16x128xf32>
    %407 = arith.subf %399, %406 : vector<16x128xf32>
    %408 = arith.mulf %407, %407 : vector<16x128xf32>
    %cst_126 = arith.constant dense<0.000000e+00> : vector<16xf32>
    %409 = vector.multi_reduction <add>, %408, %cst_126 [1] : vector<16x128xf32> to vector<16xf32>
    %410 = vector.shape_cast %409 : vector<16xf32> to vector<16x1xf32>
    %cst_127 = arith.constant 1.280000e+02 : f32
    %411 = vector.broadcast %cst_127 : f32 to vector<16x1xf32>
    %412 = arith.divf %410, %411 : vector<16x1xf32>
    %cst_128 = arith.constant 9.99999974E-6 : f32
    %413 = vector.broadcast %cst_128 : f32 to vector<16x1xf32>
    %414 = arith.addf %412, %413 : vector<16x1xf32>
    %415 = math.rsqrt %414 : vector<16x1xf32>
    %416 = vector.broadcast %415 : vector<16x1xf32> to vector<16x128xf32>
    %417 = arith.mulf %407, %416 : vector<16x128xf32>
    %418 = vector.broadcast %400 : vector<1x128xf32> to vector<16x128xf32>
    %419 = arith.mulf %417, %418 : vector<16x128xf32>
    %420 = vector.broadcast %401 : vector<1x128xf32> to vector<16x128xf32>
    %421 = arith.addf %419, %420 : vector<16x128xf32>
    %422 = arith.truncf %421 : vector<16x128xf32> to vector<16x128xbf16>
    %c0_129 = arith.constant 0 : index
    %c0_130 = arith.constant 0 : index
    %423 = vector.load %arg26[%c0_129, %c0_130] : memref<128x512xbf16, #tpu.memory_space<vmem>>, vector<128x512xbf16>
    %cst_131 = arith.constant dense<0.000000e+00> : vector<16x512xf32>
    %424 = tpu.matmul %422, %423, %cst_131 {dimension_numbers = #tpu.dot_dimension_numbers<[1], [0], [0], [1], [0, 0, 1, 1], [], []>} : vector<16x128xbf16>, vector<128x512xbf16>, vector<16x512xf32> -> vector<16x512xf32>
    %c0_132 = arith.constant 0 : index
    %c0_133 = arith.constant 0 : index
    %425 = vector.load %arg27[%c0_132, %c0_133] : memref<1x512xf32, #tpu.memory_space<vmem>>, vector<1x512xf32>
    %426 = vector.broadcast %425 : vector<1x512xf32> to vector<16x512xf32>
    %427 = arith.addf %424, %426 : vector<16x512xf32>
    %cst_134 = arith.constant 0.000000e+00 : f32
    %428 = vector.broadcast %cst_134 : f32 to vector<16x512xf32>
    %429 = arith.maximumf %427, %428 : vector<16x512xf32>
    %430 = arith.truncf %429 : vector<16x512xf32> to vector<16x512xbf16>
    %c0_135 = arith.constant 0 : index
    %c0_136 = arith.constant 0 : index
    %431 = vector.load %arg28[%c0_135, %c0_136] : memref<512x128xbf16, #tpu.memory_space<vmem>>, vector<512x128xbf16>
    %cst_137 = arith.constant dense<0.000000e+00> : vector<16x128xf32>
    %432 = tpu.matmul %430, %431, %cst_137 {dimension_numbers = #tpu.dot_dimension_numbers<[1], [0], [0], [1], [0, 0, 1, 1], [], []>} : vector<16x512xbf16>, vector<512x128xbf16>, vector<16x128xf32> -> vector<16x128xf32>
    %c0_138 = arith.constant 0 : index
    %c0_139 = arith.constant 0 : index
    %433 = vector.load %arg29[%c0_138, %c0_139] : memref<1x128xf32, #tpu.memory_space<vmem>>, vector<1x128xf32>
    %434 = vector.broadcast %433 : vector<1x128xf32> to vector<16x128xf32>
    %435 = arith.addf %432, %434 : vector<16x128xf32>
    %436 = arith.addf %421, %435 : vector<16x128xf32>
    %c2_140 = arith.constant 2 : index
    %c0_141 = arith.constant 0 : index
    %437 = vector.load %arg30[%c2_140, %c0_141] : memref<4x128xf32, #tpu.memory_space<vmem>>, vector<1x128xf32>
    %c3_142 = arith.constant 3 : index
    %c0_143 = arith.constant 0 : index
    %438 = vector.load %arg30[%c3_142, %c0_143] : memref<4x128xf32, #tpu.memory_space<vmem>>, vector<1x128xf32>
    %cst_144 = arith.constant dense<0.000000e+00> : vector<16xf32>
    %439 = vector.multi_reduction <add>, %436, %cst_144 [1] : vector<16x128xf32> to vector<16xf32>
    %440 = vector.shape_cast %439 : vector<16xf32> to vector<16x1xf32>
    %cst_145 = arith.constant 1.280000e+02 : f32
    %441 = vector.broadcast %cst_145 : f32 to vector<16x1xf32>
    %442 = arith.divf %440, %441 : vector<16x1xf32>
    %443 = vector.broadcast %442 : vector<16x1xf32> to vector<16x128xf32>
    %444 = arith.subf %436, %443 : vector<16x128xf32>
    %445 = arith.mulf %444, %444 : vector<16x128xf32>
    %cst_146 = arith.constant dense<0.000000e+00> : vector<16xf32>
    %446 = vector.multi_reduction <add>, %445, %cst_146 [1] : vector<16x128xf32> to vector<16xf32>
    %447 = vector.shape_cast %446 : vector<16xf32> to vector<16x1xf32>
    %cst_147 = arith.constant 1.280000e+02 : f32
    %448 = vector.broadcast %cst_147 : f32 to vector<16x1xf32>
    %449 = arith.divf %447, %448 : vector<16x1xf32>
    %cst_148 = arith.constant 9.99999974E-6 : f32
    %450 = vector.broadcast %cst_148 : f32 to vector<16x1xf32>
    %451 = arith.addf %449, %450 : vector<16x1xf32>
    %452 = math.rsqrt %451 : vector<16x1xf32>
    %453 = vector.broadcast %452 : vector<16x1xf32> to vector<16x128xf32>
    %454 = arith.mulf %444, %453 : vector<16x128xf32>
    %455 = vector.broadcast %437 : vector<1x128xf32> to vector<16x128xf32>
    %456 = arith.mulf %454, %455 : vector<16x128xf32>
    %457 = vector.broadcast %438 : vector<1x128xf32> to vector<16x128xf32>
    %458 = arith.addf %456, %457 : vector<16x128xf32>
    %c0_149 = arith.constant 0 : index
    %c0_150 = arith.constant 0 : index
    %459 = vector.load %arg31[%c0_149, %c0_150] : memref<16x128xf32, #tpu.memory_space<vmem>>, vector<16x128xf32>
    tpu.vector_store %arg31[%c0_149, %c0_150], %458 {strides = array<i32>} : memref<16x128xf32, #tpu.memory_space<vmem>>, vector<16x128xf32>,
    return
  }
  func.func @transform_0(%arg0: i32) -> (i32, i32) {
    %c0_i32 = arith.constant 0 : i32
    %c0_i32_0 = arith.constant 0 : i32
    return %arg0, %c0_i32 : i32, i32
  }
  func.func @transform_1(%arg0: i32) -> (i32, i32, i32) {
    %c0_i32 = arith.constant 0 : i32
    %c0_i32_0 = arith.constant 0 : i32
    %c0_i32_1 = arith.constant 0 : i32
    return %c0_i32, %arg0, %c0_i32_0 : i32, i32, i32
  }
  func.func @transform_2(%arg0: i32) -> (i32, i32) {
    %c0_i32 = arith.constant 0 : i32
    %c0_i32_0 = arith.constant 0 : i32
    %c0_i32_1 = arith.constant 0 : i32
    return %c0_i32, %c0_i32_0 : i32, i32
  }
  func.func @transform_3(%arg0: i32) -> (i32, i32, i32) {
    %c0_i32 = arith.constant 0 : i32
    %c0_i32_0 = arith.constant 0 : i32
    %c0_i32_1 = arith.constant 0 : i32
    %c0_i32_2 = arith.constant 0 : i32
    return %c0_i32, %c0_i32_0, %c0_i32_1 : i32, i32, i32
  }
  func.func @transform_4(%arg0: i32) -> (i32, i32) {
    %c0_i32 = arith.constant 0 : i32
    %c0_i32_0 = arith.constant 0 : i32
    %c0_i32_1 = arith.constant 0 : i32
    return %c0_i32, %c0_i32_0 : i32, i32
  }
  func.func @transform_5(%arg0: i32) -> (i32, i32) {
    %c0_i32 = arith.constant 0 : i32
    %c0_i32_0 = arith.constant 0 : i32
    %c0_i32_1 = arith.constant 0 : i32
    return %c0_i32, %c0_i32_0 : i32, i32
  }
  func.func @transform_6(%arg0: i32) -> (i32, i32) {
    %c0_i32 = arith.constant 0 : i32
    %c0_i32_0 = arith.constant 0 : i32
    %c0_i32_1 = arith.constant 0 : i32
    return %c0_i32, %c0_i32_0 : i32, i32
  }
  func.func @transform_7(%arg0: i32) -> (i32, i32) {
    %c0_i32 = arith.constant 0 : i32
    %c0_i32_0 = arith.constant 0 : i32
    %c0_i32_1 = arith.constant 0 : i32
    return %c0_i32, %c0_i32_0 : i32, i32
  }
  func.func @transform_8(%arg0: i32) -> (i32, i32) {
    %c0_i32 = arith.constant 0 : i32
    %c0_i32_0 = arith.constant 0 : i32
    %c0_i32_1 = arith.constant 0 : i32
    return %c0_i32, %c0_i32_0 : i32, i32
  }
  func.func @transform_9(%arg0: i32) -> (i32, i32) {
    %c0_i32 = arith.constant 0 : i32
    %c0_i32_0 = arith.constant 0 : i32
    %c0_i32_1 = arith.constant 0 : i32
    return %c0_i32, %c0_i32_0 : i32, i32
  }
  func.func @transform_10(%arg0: i32) -> (i32, i32) {
    %c0_i32 = arith.constant 0 : i32
    %c0_i32_0 = arith.constant 0 : i32
    %c0_i32_1 = arith.constant 0 : i32
    return %c0_i32, %c0_i32_0 : i32, i32
  }
  func.func @transform_11(%arg0: i32) -> (i32, i32) {
    %c0_i32 = arith.constant 0 : i32
    %c0_i32_0 = arith.constant 0 : i32
    %c0_i32_1 = arith.constant 0 : i32
    return %c0_i32, %c0_i32_0 : i32, i32
  }
  func.func @transform_12(%arg0: i32) -> (i32, i32, i32) {
    %c0_i32 = arith.constant 0 : i32
    %c0_i32_0 = arith.constant 0 : i32
    %c0_i32_1 = arith.constant 0 : i32
    %c0_i32_2 = arith.constant 0 : i32
    return %c0_i32, %c0_i32_0, %c0_i32_1 : i32, i32, i32
  }
  func.func @transform_13(%arg0: i32) -> (i32, i32) {
    %c0_i32 = arith.constant 0 : i32
    %c0_i32_0 = arith.constant 0 : i32
    %c0_i32_1 = arith.constant 0 : i32
    return %c0_i32, %c0_i32_0 : i32, i32
  }
  func.func @transform_14(%arg0: i32) -> (i32, i32) {
    %c0_i32 = arith.constant 0 : i32
    %c0_i32_0 = arith.constant 0 : i32
    %c0_i32_1 = arith.constant 0 : i32
    return %c0_i32, %c0_i32_0 : i32, i32
  }
  func.func @transform_15(%arg0: i32) -> (i32, i32) {
    %c0_i32 = arith.constant 0 : i32
    %c0_i32_0 = arith.constant 0 : i32
    %c0_i32_1 = arith.constant 0 : i32
    return %c0_i32, %c0_i32_0 : i32, i32
  }
  func.func @transform_16(%arg0: i32) -> (i32, i32) {
    %c0_i32 = arith.constant 0 : i32
    %c0_i32_0 = arith.constant 0 : i32
    %c0_i32_1 = arith.constant 0 : i32
    return %c0_i32, %c0_i32_0 : i32, i32
  }
  func.func @transform_17(%arg0: i32) -> (i32, i32) {
    %c0_i32 = arith.constant 0 : i32
    %c0_i32_0 = arith.constant 0 : i32
    %c0_i32_1 = arith.constant 0 : i32
    return %c0_i32, %c0_i32_0 : i32, i32
  }
  func.func @transform_18(%arg0: i32) -> (i32, i32) {
    %c0_i32 = arith.constant 0 : i32
    %c0_i32_0 = arith.constant 0 : i32
    %c0_i32_1 = arith.constant 0 : i32
    return %c0_i32, %c0_i32_0 : i32, i32
  }
  func.func @transform_19(%arg0: i32) -> (i32, i32) {
    %c0_i32 = arith.constant 0 : i32
    %c0_i32_0 = arith.constant 0 : i32
    %c0_i32_1 = arith.constant 0 : i32
    return %c0_i32, %c0_i32_0 : i32, i32
  }
  func.func @transform_20(%arg0: i32) -> (i32, i32) {
    %c0_i32 = arith.constant 0 : i32
    %c0_i32_0 = arith.constant 0 : i32
    %c0_i32_1 = arith.constant 0 : i32
    return %c0_i32, %c0_i32_0 : i32, i32
  }
  func.func @transform_21(%arg0: i32) -> (i32, i32, i32) {
    %c0_i32 = arith.constant 0 : i32
    %c0_i32_0 = arith.constant 0 : i32
    %c0_i32_1 = arith.constant 0 : i32
    %c0_i32_2 = arith.constant 0 : i32
    return %c0_i32, %c0_i32_0, %c0_i32_1 : i32, i32, i32
  }
  func.func @transform_22(%arg0: i32) -> (i32, i32) {
    %c0_i32 = arith.constant 0 : i32
    %c0_i32_0 = arith.constant 0 : i32
    %c0_i32_1 = arith.constant 0 : i32
    return %c0_i32, %c0_i32_0 : i32, i32
  }
  func.func @transform_23(%arg0: i32) -> (i32, i32) {
    %c0_i32 = arith.constant 0 : i32
    %c0_i32_0 = arith.constant 0 : i32
    %c0_i32_1 = arith.constant 0 : i32
    return %c0_i32, %c0_i32_0 : i32, i32
  }
  func.func @transform_24(%arg0: i32) -> (i32, i32) {
    %c0_i32 = arith.constant 0 : i32
    %c0_i32_0 = arith.constant 0 : i32
    %c0_i32_1 = arith.constant 0 : i32
    return %c0_i32, %c0_i32_0 : i32, i32
  }
  func.func @transform_25(%arg0: i32) -> (i32, i32) {
    %c0_i32 = arith.constant 0 : i32
    %c0_i32_0 = arith.constant 0 : i32
    %c0_i32_1 = arith.constant 0 : i32
    return %c0_i32, %c0_i32_0 : i32, i32
  }
  func.func @transform_26(%arg0: i32) -> (i32, i32) {
    %c0_i32 = arith.constant 0 : i32
    %c0_i32_0 = arith.constant 0 : i32
    %c0_i32_1 = arith.constant 0 : i32
    return %c0_i32, %c0_i32_0 : i32, i32
  }
  func.func @transform_27(%arg0: i32) -> (i32, i32) {
    %c0_i32 = arith.constant 0 : i32
    %c0_i32_0 = arith.constant 0 : i32
    %c0_i32_1 = arith.constant 0 : i32
    return %c0_i32, %c0_i32_0 : i32, i32
  }
  func.func @transform_28(%arg0: i32) -> (i32, i32) {
    %c0_i32 = arith.constant 0 : i32
    %c0_i32_0 = arith.constant 0 : i32
    %c0_i32_1 = arith.constant 0 : i32
    return %c0_i32, %c0_i32_0 : i32, i32
  }
  func.func @transform_29(%arg0: i32) -> (i32, i32) {
    %c0_i32 = arith.constant 0 : i32
    %c0_i32_0 = arith.constant 0 : i32
    %c0_i32_1 = arith.constant 0 : i32
    return %c0_i32, %c0_i32_0 : i32, i32
  }
  func.func @transform_30(%arg0: i32) -> (i32, i32) {
    %c0_i32 = arith.constant 0 : i32
    %c0_i32_0 = arith.constant 0 : i32
    return %arg0, %c0_i32 : i32, i32
  }
}

</mosaic_0001>

<bundles_post_ra>
// kernel: _lambda_.1
= control target key start
LH: loop header
LB: loop body
LE: loop exit
PB: predicated region body
PF: predicated region fallthrough
CT: control target
= control target key end

     0   :  { %v6916_v0 = vmov 0.0   ;;  %s5845_s3 = smov 5   ;;  %vm5846_vm0 = vmmov 0   ;;  %s5847_s7 = smov 3   ;;  %v6920_v1 = vmov 0   ;;  %v319_v45 = vlaneseq  ;;  %s6915_s0 = inlined_call_operand.smem [shape: u32[31], index: -1, kind: input, shape index: {}] }
   0x1   :  { %5058 = vmatprep.subr.bf16.mxu0 %v6916_v0  ;;  %s5886_s6 = sld [smem:[%s6915_s0 + %s5845_s3]]   ;;  %5074 = vmatprep.mubr.msk.bf16.mxu0 %vm5846_vm0, %v6916_v0  ;;  %s5849_s11 = smov 1  }
   0x2   :  { %s5893_s10 = sld [smem:[%s6915_s0 + %s5847_s7]]   ;;  %501 = vmatprep.mubr.bf16.mxu1 %v6920_v1  ;;  %s5850_s18 = smov 2   ;;  %v5975_v46 = vshrl.u32 %v319_v45, 7 }
   0x3   :  { %s5915_s14 = sld [smem:[%s6915_s0 + %s5849_s11]]   ;;  %s5851_s22 = smov 6  }
   0x4   :  { %s1_s17 = sld [smem:[%s6915_s0]]   ;;  %s5852_s26 = smov 4   ;;  %v5983_v47 = vsub.s32 0, %v5975_v46  ;;  %v5986_v48 = vsub.s32 1, %v5975_v46 }
   0x5   :  { %s5931_s21 = sld [smem:[%s6915_s0 + %s5850_s18]]   ;;  %s5853_s30 = smov 7  }
   0x6   :  { %s4426_s25 = sld [smem:[%s6915_s0 + %s5851_s22]]   ;;  %s5854_s4 = smov 9  }
   0x7   :  { %v5319_v2 = vld [vmem:[%s5886_s6 + $0x74] ss:$8 sps:$4 sm:$0xff]   ;;  %v5322_v4 = vld [vmem:[%s5886_s6 + $0x70] ss:$8 sps:$4 sm:$0xff]   ;;  %v5323_v5 = vld [vmem:[%s5886_s6 + $0x64] ss:$8 sps:$4 sm:$0xff]   ;;  %s5980_s29 = sld [smem:[%s6915_s0 + %s5852_s26]]  }
   0x8   :  { %v5321_v3 = vld [vmem:[%s5893_s10 + $0x38] sm:$0xff]   ;;  %469 = vmatprep.subr.bf16.mxu1 %v5319_v2  ;;  %v5325_v6 = vld [vmem:[%s5893_s10 + $0x30] sm:$0xff]   ;;  %v5326_v7 = vld [vmem:[%s5886_s6 + $0x60] ss:$8 sps:$4 sm:$0xff]   ;;  %s6176_s3 = sld [smem:[%s6915_s0 + %s5853_s30]]   ;;  %s5855_s8 = smov 11  }
   0x9   :  { %5059 = vmatpush3.bf16.msra.mxu0 %v5321_v3  ;;  %470 = vmatpush1.bf16.msra.mxu1 %v5322_v4  ;;  %v5327_v8 = vld [vmem:[%s5886_s6 + $0x54] ss:$8 sps:$4 sm:$0xff]   ;;  %v5329_v9 = vld [vmem:[%s5893_s10 + $0x28] sm:$0xff]   ;;  %v5330_v10 = vld [vmem:[%s5886_s6 + $0x50] ss:$8 sps:$4 sm:$0xff]   ;;  %s6213_s7 = sld [smem:[%s6915_s0 + %s5854_s4]]   ;;  %s5856_s12 = smov 14  }
   0xa   :  { %5060 = vmatprep.subr.bf16.mxu0 %v6916_v0  ;;  %471 = vmatprep.subr.bf16.mxu1 %v5323_v5  ;;  %v5331_v11 = vld [vmem:[%s5886_s6 + $0x44] ss:$8 sps:$4 sm:$0xff]   ;;  %v5334_v13 = vld [vmem:[%s5886_s6 + $0x40] ss:$8 sps:$4 sm:$0xff]   ;;  %v5335_v14 = vld [vmem:[%s5886_s6 + $0x34] ss:$8 sps:$4 sm:$0xff]   ;;  %s6220_s11 = sld [smem:[%s6915_s0 + %s5855_s8]]  }
   0xb   :  { %v5333_v12 = vld [vmem:[%s5893_s10 + $0x20] sm:$0xff]   ;;  %v5337_v15 = vld [vmem:[%s5893_s10 + $0x18] sm:$0xff]   ;;  %v5341_v18 = vld [vmem:[%s5893_s10 + $0x10] sm:$0xff]   ;;  %s6263_s16 = sld [smem:[%s6915_s0 + %s5856_s12]]   ;;  %s5858_s22 = smov 8  }
   0xc   :  { %v5338_v16 = vld [vmem:[%s5886_s6 + $0x30] ss:$8 sps:$4 sm:$0xff]   ;;  %v5339_v17 = vld [vmem:[%s5886_s6 + $0x24] ss:$8 sps:$4 sm:$0xff]   ;;  %v5342_v19 = vld [vmem:[%s5886_s6 + $0x20] ss:$8 sps:$4 sm:$0xff]  }
   0xd   :  { %5061 = vmatpush3.bf16.msra.mxu0 %v5325_v6  ;;  %472 = vmatpush1.bf16.msra.mxu1 %v5326_v7  ;;  %v5343_v20 = vld [vmem:[%s5886_s6 + $0x14] ss:$8 sps:$4 sm:$0xff]   ;;  %v5345_v21 = vld [vmem:[%s5893_s10 + $0x8] sm:$0xff]   ;;  %v5346_v22 = vld [vmem:[%s5886_s6 + $0x10] ss:$8 sps:$4 sm:$0xff]   ;;  %s5859_s26 = smov 10  }
   0xe   :  { %5062 = vmatprep.subr.bf16.mxu0 %v6916_v0  ;;  %473 = vmatprep.subr.bf16.mxu1 %v5327_v8  ;;  %v5347_v23 = vld [vmem:[%s5886_s6 + $0x4] ss:$8 sps:$4 sm:$0xff]   ;;  %v5350_v26 = vld [vmem:[%s5886_s6] ss:$8 sps:$4 sm:$0xff]   ;;  %v5362_v27 = vld [vmem:[%s5931_s21 + $0x38] sm:$0xff]   ;;  %s5863_s12 = smov 18  }
   0xf   :  { %v5349_v24 = vld [vmem:[%s5893_s10] sm:$0xff]   ;;  %v5363_v29 = vld [vmem:[%s5931_s21 + $0x30] sm:$0xff]   ;;  %v5364_v30 = vld [vmem:[%s5931_s21 + $0x28] sm:$0xff]   ;;  %s5872_s19 = smov 27   ;;  %s5873_s24 = smov 29  }
  0x10   :  { %v5938_v25 = vld [vmem:[%s1_s17] sm:$0xff]   ;;  %v5353_v31 = vld [vmem:[%s5915_s14 + $0x8] sm:$0xff]   ;;  %v5354_v33 = vld [vmem:[%s5915_s14 + $0x10] sm:$0xff]   ;;  %s5857_s17 = smov 12   ;;  %s6849_s23 = sld [smem:[%s6915_s0 + %s5872_s19]]  }
  0x11   :  { %5063 = vmatpush3.bf16.msra.mxu0 %v5329_v9  ;;  %474 = vmatpush1.bf16.msra.mxu1 %v5330_v10  ;;  %v5352_v28 = vld [vmem:[%s5915_s14] sm:$0xff]   ;;  %v5355_v34 = vld [vmem:[%s5915_s14 + $0x18] sm:$0xff]   ;;  %v5357_v36 = vld [vmem:[%s5915_s14 + $0x28] sm:$0xff]   ;;  %s6268_s20 = sld [smem:[%s6915_s0 + %s5857_s17]]   ;;  %s5864_s17 = smov 20  }
  0x12   :  { %5064 = vmatprep.subr.bf16.mxu0 %v6916_v0  ;;  %475 = vmatprep.subr.bf16.mxu1 %v5331_v11  ;;  %v5365_v32 = vld [vmem:[%s5931_s21 + $0x20] sm:$0xff]   ;;  %v5358_v37 = vld [vmem:[%s5915_s14 + $0x30] sm:$0xff]   ;;  %v5359_v38 = vld [vmem:[%s5915_s14 + $0x38] sm:$0xff]   ;;  %s6856_s27 = sld [smem:[%s6915_s0 + %s5873_s24]]   ;;  %s5874_s28 = smov 26  }
  0x13   :  { %v5356_v35 = vld [vmem:[%s5915_s14 + $0x20] sm:$0xff]   ;;  %v5366_v40 = vld [vmem:[%s5931_s21 + $0x18] sm:$0xff]   ;;  %v5361_v41 = vld [vmem:[%s5915_s14 + $0x48] sm:$0xff]   ;;  %s4446_s30 = sld [smem:[%s6915_s0 + %s5874_s28]]   ;;  %s5875_s1 = smov 28  }
  0x14   :  { %v5360_v39 = vld [vmem:[%s5915_s14 + $0x40] sm:$0xff]   ;;  %v5367_v42 = vld [vmem:[%s5931_s21 + $0x10] sm:$0xff]   ;;  %v5368_v43 = vld [vmem:[%s5931_s21 + $0x8] sm:$0xff]   ;;  %s4448_s4 = sld [smem:[%s6915_s0 + %s5875_s1]]   ;;  %s5876_s5 = smov 30  }
  0x15   :  { %5065 = vmatpush3.bf16.msra.mxu0 %v5333_v12  ;;  %476 = vmatpush1.bf16.msra.mxu1 %v5334_v13  ;;  %v5369_v44 = vld [vmem:[%s5931_s21] sm:$0xff]  }
  0x16   :  { %5066 = vmatprep.subr.bf16.mxu0 %v6916_v0  ;;  %477 = vmatprep.subr.bf16.mxu1 %v5335_v14  ;;  %v317_v49 = vld [vmem:[%s4426_s25] sm:$0x3]  ;;  %s4428_s25 = sld [smem:[%s6915_s0 + %s5858_s22]]   ;;  %s5865_s22 = smov 17  }
  0x17   :  { %v5989_v51 = vrot.slane %v317_v49, %v5983_v47  ;;  %v5992_v52 = vrot.slane %v317_v49, %v5986_v48  ;;  %v4467_v53 = vld [vmem:[%s5980_s29] ss:$0 sm:$0xff] }
  0x19   :  { %5067 = vmatpush3.bf16.msra.mxu0 %v5337_v15  ;;  %478 = vmatpush1.bf16.msra.mxu1 %v5338_v16 }
  0x1a   :  { %5068 = vmatprep.subr.bf16.mxu0 %v6916_v0  ;;  %479 = vmatprep.subr.bf16.mxu1 %v5339_v17 }
  0x1d   :  { %5069 = vmatpush3.bf16.msra.mxu0 %v5341_v18  ;;  %480 = vmatpush1.bf16.msra.mxu1 %v5342_v19 }
  0x1e   :  { %5070 = vmatprep.subr.bf16.mxu0 %v6916_v0  ;;  %481 = vmatprep.subr.bf16.mxu1 %v5343_v20 }
  0x21   :  { %5071 = vmatpush3.bf16.msra.mxu0 %v5345_v21  ;;  %482 = vmatpush1.bf16.msra.mxu1 %v5346_v22 }
  0x22   :  { %5072 = vmatprep.subr.bf16.mxu0 %v6916_v0  ;;  %483 = vmatprep.subr.bf16.mxu1 %v5347_v23 }
  0x25   :  { %5073 = vmatpush3.bf16.msra.mxu0 %v5349_v24  ;;  %484 = vmatpush1.bf16.msra.mxu1 %v5350_v26 }
  0x26   :  { %5078 = vmatprep.subr.bf16.mxu0 %v5362_v27 }
  0x28   :  { %5075 = vmatmul.mubr.bf16.vlgmr.msra.gmra.mxu0 %v5938_v25  ;;  %502 = vmatmul.mubr.bf16.vlgmr.msra.gmra.mxu1 %v5352_v28 }
  0x29   :  { %5079 = vmatpush3.bf16.msra.mxu0 %v5362_v27  ;;  %511 = vmatprep.mubr.bf16.mxu1 %v6920_v1 }
  0x2a   :  { %5080 = vmatprep.subr.bf16.mxu0 %v5363_v29 }
  0x2d   :  { %5081 = vmatpush3.bf16.msra.mxu0 %v5363_v29 }
  0x2e   :  { %5082 = vmatprep.subr.bf16.mxu0 %v5364_v30 }
  0x30   :  { %512 = vmatmul.mubr.bf16.gmra.mxu1 %v5353_v31 }
  0x31   :  { %5083 = vmatpush3.bf16.msra.mxu0 %v5364_v30  ;;  %521 = vmatprep.mubr.bf16.mxu1 %v6920_v1 }
  0x32   :  { %5084 = vmatprep.subr.bf16.mxu0 %v5365_v32 }
  0x35   :  { %5085 = vmatpush3.bf16.msra.mxu0 %v5365_v32 }
  0x36   :  { %5086 = vmatprep.subr.bf16.mxu0 %v5366_v40 }
  0x38   :  { %522 = vmatmul.mubr.bf16.gmra.mxu1 %v5354_v33 }
  0x39   :  { %531 = vmatprep.mubr.bf16.mxu1 %v6920_v1  ;;  %5087 = vmatpush3.bf16.msra.mxu0 %v5366_v40 }
  0x3a   :  { %5088 = vmatprep.subr.bf16.mxu0 %v5367_v42 }
  0x3d   :  { %5089 = vmatpush3.bf16.msra.mxu0 %v5367_v42 }
  0x3e   :  { %5090 = vmatprep.subr.bf16.mxu0 %v5368_v43 }
  0x40   :  { %532 = vmatmul.mubr.bf16.gmra.mxu1 %v5355_v34 }
  0x41   :  { %541 = vmatprep.mubr.bf16.mxu1 %v6920_v1  ;;  %5091 = vmatpush3.bf16.msra.mxu0 %v5368_v43 }
  0x42   :  { %5092 = vmatprep.subr.bf16.mxu0 %v5369_v44 }
  0x45   :  { %5093 = vmatpush3.bf16.msra.mxu0 %v5369_v44 }
  0x46   :  { %5114 = vmatprep.subr.bf16.mxu0 %v6916_v0 }
  0x48   :  { %542 = vmatmul.mubr.bf16.gmra.mxu1 %v5356_v35 }
  0x49   :  { %551 = vmatprep.mubr.bf16.mxu1 %v6920_v1 }
  0x50   :  { %552 = vmatmul.mubr.bf16.gmra.mxu1 %v5357_v36 }
  0x51   :  { %561 = vmatprep.mubr.bf16.mxu1 %v6920_v1 }
  0x58   :  { %562 = vmatmul.mubr.bf16.gmra.mxu1 %v5358_v37 }
  0x59   :  { %571 = vmatprep.mubr.bf16.mxu1 %v6920_v1 }
  0x60   :  { %572 = vmatmul.mubr.bf16.gmra.mxu1 %v5359_v38 }
  0x61   :  { %581 = vmatprep.mubr.bf16.mxu1 %v6920_v1 }
  0x68   :  { %582 = vmatmul.mubr.bf16.gmra.mxu1 %v5360_v39 }
  0x69   :  { %591 = vmatprep.mubr.bf16.mxu1 %v6920_v1 }
  0x70   :  { %592 = vmatmul.mubr.bf16.gmra.mxu1 %v5361_v41 }
  0x71   :  { %1315 = vmatprep.mubr.bf16.mxu1 %v6920_v1 }
  0xe8   :  { %v294_v50 = vpop.f32.mrf.mxu0  ;;  %v503_v54 = vpop.f32.mrf.mxu1 }
  0xe9   :  { %v5995_v57 = vadd.f32 %v4467_v53, %v294_v50  ;;  %v504_v58 = vadd.f32 %v503_v54, %v5989_v51 }
  0xea   :  { %v5076_v55 = vpop.f32.mrf.mxu0  ;;  %v505_v56 = vpop.f32.mrf.mxu1 }
  0xeb   :  { %v5999_v59 = vadd.f32 %v505_v56, %v5992_v52  ;;  %v602_v4 = vmul.f32 %v504_v58, %v5995_v57 }
  0xec   :  { %v297_v60 = vpop.f32.mrf.mxu0  ;;  %v507_v62 = vpop.f32.mrf.mxu1 }
  0xed   :  { %v6001_v61 = vadd.f32 %v4467_v53, %v297_v60  ;;  %v508_v63 = vadd.f32 %v507_v62, %v5989_v51 }
  0xee   :  { %v5077_v2 = vpop.f32.mrf.mxu0  ;;  %v509_v3 = vpop.f32.mrf.mxu1 }
  0xef   :  { %v603_v5 = vmul.f32 %v508_v63, %v6001_v61  ;;  %v6007_v6 = vadd.f32 %v509_v3, %v5992_v52 }
  0xf0   :  { %v513_v7 = vpop.f32.mrf.mxu1 }
  0xf1   :  { %v622_v8 = vpack.c.bf16 %v603_v5, %v602_v4  ;;  %v514_v10 = vadd.f32 %v513_v7, %v5989_v51 }
  0xf2   :  { %v515_v9 = vpop.f32.mrf.mxu1 }
  0xf3   :  { %v6011_v11 = vadd.f32 %v515_v9, %v5992_v52  ;;  %5094 = vmatprep.mubr.bf16.mxu0 %v622_v8  ;;  %v604_v15 = vmul.f32 %v514_v10, %v5995_v57 }
  0xf4   :  { %v517_v12 = vpop.f32.mrf.mxu1 }
  0xf5   :  { %v518_v13 = vadd.f32 %v517_v12, %v5989_v51 }
  0xf6   :  { %v519_v14 = vpop.f32.mrf.mxu1 }
  0xf7   :  { %v605_v16 = vmul.f32 %v518_v13, %v6001_v61  ;;  %v6017_v17 = vadd.f32 %v519_v14, %v5992_v52 }
  0xf8   :  { %v523_v18 = vpop.f32.mrf.mxu1 }
  0xf9   :  { %v623_v19 = vpack.c.bf16 %v605_v16, %v604_v15  ;;  %v524_v21 = vadd.f32 %v523_v18, %v5989_v51 }
  0xfa   :  { %v525_v20 = vpop.f32.mrf.mxu1 }
  0xfb   :  { %v6021_v22 = vadd.f32 %v525_v20, %v5992_v52  ;;  %5095 = vmatmul.mubr.bf16.vlgmr.msra.gmra.mxu0 %v623_v19  ;;  %v606_v27 = vmul.f32 %v524_v21, %v5995_v57 }
  0xfc   :  { %v527_v23 = vpop.f32.mrf.mxu1 }
  0xfd   :  { %v528_v24 = vadd.f32 %v527_v23, %v5989_v51 }
  0xfe   :  { %v529_v26 = vpop.f32.mrf.mxu1 }
  0xff   :  { %v607_v28 = vmul.f32 %v528_v24, %v6001_v61  ;;  %v6027_v29 = vadd.f32 %v529_v26, %v5992_v52 }
 0x100   :  { %v533_v30 = vpop.f32.mrf.mxu1 }
 0x101   :  { %v624_v31 = vpack.c.bf16 %v607_v28, %v606_v27  ;;  %v534_v33 = vadd.f32 %v533_v30, %v5989_v51 }
 0x102   :  { %v535_v32 = vpop.f32.mrf.mxu1 }
 0x103   :  { %v6031_v34 = vadd.f32 %v535_v32, %v5992_v52  ;;  %5098 = vmatprep.mubr.bf16.mxu0 %v624_v31  ;;  %v608_v38 = vmul.f32 %v534_v33, %v5995_v57 }
 0x104   :  { %v537_v35 = vpop.f32.mrf.mxu1 }
 0x105   :  { %v538_v36 = vadd.f32 %v537_v35, %v5989_v51 }
 0x106   :  { %v539_v37 = vpop.f32.mrf.mxu1 }
 0x107   :  { %v609_v39 = vmul.f32 %v538_v36, %v6001_v61  ;;  %v6037_v40 = vadd.f32 %v539_v37, %v5992_v52 }
 0x108   :  { %v543_v41 = vpop.f32.mrf.mxu1 }
 0x109   :  { %v625_v42 = vpack.c.bf16 %v609_v39, %v608_v38  ;;  %v544_v44 = vadd.f32 %v543_v41, %v5989_v51 }
 0x10a   :  { %v545_v43 = vpop.f32.mrf.mxu1 }
 0x10b   :  { %v6041_v45 = vadd.f32 %v545_v43, %v5992_v52  ;;  %5099 = vmatmul.mubr.bf16.gmra.mxu0 %v625_v42  ;;  %v610_v54 = vmul.f32 %v544_v44, %v5995_v57 }
 0x10c   :  { %v547_v49 = vpop.f32.mrf.mxu1 }
 0x10d   :  { %v548_v50 = vadd.f32 %v547_v49, %v5989_v51 }
 0x10e   :  { %v549_v53 = vpop.f32.mrf.mxu1 }
 0x10f   :  { %v611_v55 = vmul.f32 %v548_v50, %v6001_v61  ;;  %v6047_v56 = vadd.f32 %v549_v53, %v5992_v52 }
 0x110   :  { %v553_v58 = vpop.f32.mrf.mxu1 }
 0x111   :  { %v626_v60 = vpack.c.bf16 %v611_v55, %v610_v54  ;;  %v554_v63 = vadd.f32 %v553_v58, %v5989_v51 }
 0x112   :  { %v555_v62 = vpop.f32.mrf.mxu1 }
 0x113   :  { %v6051_v2 = vadd.f32 %v555_v62, %v5992_v52  ;;  %5102 = vmatprep.mubr.bf16.mxu0 %v626_v60  ;;  %v612_v7 = vmul.f32 %v554_v63, %v5995_v57 }
 0x114   :  { %v557_v3 = vpop.f32.mrf.mxu1 }
 0x115   :  { %v558_v4 = vadd.f32 %v557_v3, %v5989_v51 }
 0x116   :  { %v559_v5 = vpop.f32.mrf.mxu1 }
 0x117   :  { %v613_v8 = vmul.f32 %v558_v4, %v6001_v61  ;;  %v6057_v9 = vadd.f32 %v559_v5, %v5992_v52 }
 0x118   :  { %v563_v10 = vpop.f32.mrf.mxu1 }
 0x119   :  { %v627_v12 = vpack.c.bf16 %v613_v8, %v612_v7  ;;  %v564_v14 = vadd.f32 %v563_v10, %v5989_v51 }
 0x11a   :  { %v565_v13 = vpop.f32.mrf.mxu1 }
 0x11b   :  { %v6061_v15 = vadd.f32 %v565_v13, %v5992_v52  ;;  %5103 = vmatmul.mubr.bf16.gmra.mxu0 %v627_v12  ;;  %v614_v20 = vmul.f32 %v564_v14, %v5995_v57  ;;  %v5370_v12 = vld [vmem:[%s5893_s10 + $0x78] sm:$0xff]   ;;  %v5371_v13 = vld [vmem:[%s5893_s10 + $0x70] sm:$0xff]  }
 0x11c   :  { %v567_v16 = vpop.f32.mrf.mxu1  ;;  %5115 = vmatpush3.bf16.msra.mxu0 %v5370_v12  ;;  %v5375_v14 = vld [vmem:[%s5893_s10 + $0x50] sm:$0xff]  }
 0x11d   :  { %v568_v18 = vadd.f32 %v567_v16, %v5989_v51  ;;  %5116 = vmatprep.subr.bf16.mxu0 %v6916_v0  ;;  %v5376_v16 = vld [vmem:[%s5893_s10 + $0x48] sm:$0xff]  }
 0x11e   :  { %v569_v19 = vpop.f32.mrf.mxu1 }
 0x11f   :  { %v615_v21 = vmul.f32 %v568_v18, %v6001_v61  ;;  %v6067_v23 = vadd.f32 %v569_v19, %v5992_v52  ;;  %v5377_v19 = vld [vmem:[%s5893_s10 + $0x40] sm:$0xff]  }
 0x120   :  { %v573_v24 = vpop.f32.mrf.mxu1  ;;  %5117 = vmatpush3.bf16.msra.mxu0 %v5371_v13 }
 0x121   :  { %v628_v26 = vpack.c.bf16 %v615_v21, %v614_v20  ;;  %v574_v28 = vadd.f32 %v573_v24, %v5989_v51  ;;  %5118 = vmatprep.subr.bf16.mxu0 %v6916_v0 }
 0x122   :  { %v575_v27 = vpop.f32.mrf.mxu1 }
 0x123   :  { %v6071_v30 = vadd.f32 %v575_v27, %v5992_v52  ;;  %5106 = vmatprep.mubr.bf16.mxu0 %v628_v26  ;;  %v616_v35 = vmul.f32 %v574_v28, %v5995_v57 }
 0x124   :  { %v577_v31 = vpop.f32.mrf.mxu1 }
 0x125   :  { %v578_v32 = vadd.f32 %v577_v31, %v5989_v51 }
 0x126   :  { %v579_v33 = vpop.f32.mrf.mxu1 }
 0x127   :  { %v617_v36 = vmul.f32 %v578_v32, %v6001_v61  ;;  %v6077_v37 = vadd.f32 %v579_v33, %v5992_v52 }
 0x128   :  { %v583_v38 = vpop.f32.mrf.mxu1 }
 0x129   :  { %v629_v39 = vpack.c.bf16 %v617_v36, %v616_v35  ;;  %v584_v42 = vadd.f32 %v583_v38, %v5989_v51 }
 0x12a   :  { %v585_v41 = vpop.f32.mrf.mxu1 }
 0x12b   :  { %v6081_v43 = vadd.f32 %v585_v41, %v5992_v52  ;;  %5107 = vmatmul.mubr.bf16.gmra.mxu0 %v629_v39  ;;  %v618_v53 = vmul.f32 %v584_v42, %v5995_v57 }
 0x12c   :  { %v587_v44 = vpop.f32.mrf.mxu1 }
 0x12d   :  { %v588_v49 = vadd.f32 %v587_v44, %v5989_v51 }
 0x12e   :  { %v589_v50 = vpop.f32.mrf.mxu1 }
 0x12f   :  { %v619_v54 = vmul.f32 %v588_v49, %v6001_v61  ;;  %v6087_v55 = vadd.f32 %v589_v50, %v5992_v52 }
 0x130   :  { %v593_v58 = vpop.f32.mrf.mxu1 }
 0x131   :  { %v630_v60 = vpack.c.bf16 %v619_v54, %v618_v53  ;;  %v594_v63 = vadd.f32 %v593_v58, %v5989_v51 }
 0x132   :  { %v595_v62 = vpop.f32.mrf.mxu1 }
 0x133   :  { %v6091_v3 = vadd.f32 %v595_v62, %v5992_v52  ;;  %5110 = vmatprep.mubr.bf16.mxu0 %v630_v60  ;;  %v620_v7 = vmul.f32 %v594_v63, %v5995_v57  ;;  %v5373_v57 = vld [vmem:[%s5893_s10 + $0x60] sm:$0xff]  }
 0x134   :  { %v597_v4 = vpop.f32.mrf.mxu1 }
 0x135   :  { %v598_v5 = vadd.f32 %v597_v4, %v5989_v51  ;;  %v5372_v51 = vld [vmem:[%s5893_s10 + $0x68] sm:$0xff]  }
 0x136   :  { %5119 = vmatpush3.bf16.msra.mxu0 %v5372_v51 }
 0x137   :  { %v621_v8 = vmul.f32 %v598_v5, %v6001_v61  ;;  %5120 = vmatprep.subr.bf16.mxu0 %v6916_v0  ;;  %v5374_v61 = vld [vmem:[%s5893_s10 + $0x58] sm:$0xff]  }
 0x139   :  { %v631_v10 = vpack.c.bf16 %v621_v8, %v620_v7 }
 0x13a   :  { %5121 = vmatpush3.bf16.msra.mxu0 %v5373_v57 }
 0x13b   :  { %5111 = vmatmul.mubr.bf16.gmra.mxu0 %v631_v10  ;;  %5122 = vmatprep.subr.bf16.mxu0 %v6916_v0 }
 0x13c   :  { %5130 = vmatprep.mubr.msk.bf16.mxu0 %vm5846_vm0, %v6916_v0 }
 0x13e   :  { %5123 = vmatpush3.bf16.msra.mxu0 %v5374_v61 }
 0x13f   :  { %5124 = vmatprep.subr.bf16.mxu0 %v6916_v0 }
 0x142   :  { %5125 = vmatpush3.bf16.msra.mxu0 %v5375_v14 }
 0x143   :  { %5126 = vmatprep.subr.bf16.mxu0 %v6916_v0 }
 0x146   :  { %5127 = vmatpush3.bf16.msra.mxu0 %v5376_v16 }
 0x147   :  { %5128 = vmatprep.subr.bf16.mxu0 %v6916_v0 }
 0x14a   :  { %5129 = vmatpush3.bf16.msra.mxu0 %v5377_v19 }
 0x1bb   :  { %v5096_v18 = vpop.f32.mrf.mxu0 }
 0x1bd   :  { %v714_v20 = vpop.f32.mrf.mxu0 }
 0x1be   :  { %v793_v36 = vmax.f32 %v714_v20, %v5096_v18 }
 0x1bf   :  { %v6113_v21 = vpop.f32.mrf.mxu0 }
 0x1c1   :  { %v717_v24 = vpop.f32.mrf.mxu0 }
 0x1c2   :  { %v794_v50 = vmax.f32 %v717_v24, %v6113_v21 }
 0x1cb   :  { %v5100_v26 = vpop.f32.mrf.mxu0 }
 0x1cd   :  { %v730_v27 = vpop.f32.mrf.mxu0 }
 0x1ce   :  { %v795_v39 = vmax.f32 %v793_v36, %v730_v27 }
 0x1cf   :  { %v6115_v28 = vpop.f32.mrf.mxu0 }
 0x1d0   :  { %v797_v42 = vmax.f32 %v795_v39, %v5100_v26 }
 0x1d1   :  { %v6117_v31 = vpop.f32.mrf.mxu0 }
 0x1d2   :  { %v796_v53 = vmax.f32 %v794_v50, %v6117_v31 }
 0x1d4   :  { %v798_v62 = vmax.f32 %v796_v53, %v6115_v28 }
 0x1db   :  { %v5104_v32 = vpop.f32.mrf.mxu0 }
 0x1dd   :  { %v746_v33 = vpop.f32.mrf.mxu0 }
 0x1de   :  { %v799_v49 = vmax.f32 %v797_v42, %v746_v33 }
 0x1df   :  { %v6119_v35 = vpop.f32.mrf.mxu0 }
 0x1e0   :  { %v801_v58 = vmax.f32 %v799_v49, %v5104_v32 }
 0x1e1   :  { %v6121_v38 = vpop.f32.mrf.mxu0 }
 0x1e2   :  { %v800_v4 = vmax.f32 %v798_v62, %v6121_v38 }
 0x1e4   :  { %v802_v12 = vmax.f32 %v800_v4, %v6119_v35 }
 0x1eb   :  { %v5108_v41 = vpop.f32.mrf.mxu0 }
 0x1ed   :  { %v762_v44 = vpop.f32.mrf.mxu0 }
 0x1ee   :  { %v803_v60 = vmax.f32 %v801_v58, %v762_v44 }
 0x1ef   :  { %v6125_v54 = vpop.f32.mrf.mxu0 }
 0x1f0   :  { %v805_v7 = vmax.f32 %v803_v60, %v5108_v41 }
 0x1f1   :  { %v6128_v63 = vpop.f32.mrf.mxu0 }
 0x1f2   :  { %v804_v57 = vmax.f32 %v802_v12, %v6128_v63 }
 0x1f4   :  { %v806_v60 = vmax.f32 %v804_v57, %v6125_v54 }
 0x1fb   :  { %v5112_v5 = vpop.f32.mrf.mxu0 }
 0x1fd   :  { %v778_v8 = vpop.f32.mrf.mxu0 }
 0x1fe   :  { %v807_v10 = vmax.f32 %v805_v7, %v778_v8 }
 0x1ff   :  { %v6132_v51 = vpop.f32.mrf.mxu0 }
 0x200   :  { %v809_v13 = vmax.f32 %v807_v10, %v5112_v5 }
 0x201   :  { %v781_v50 = vpop.f32.mrf.mxu0 }
 0x202   :  { %v811_v61 = vsub.f32 %v714_v20, %v809_v13  ;;  %v823_v14 = vsub.f32 %v5096_v18, %v809_v13  ;;  %v835_v16 = vsub.f32 %v730_v27, %v809_v13  ;;  %v847_v19 = vsub.f32 %v5100_v26, %v809_v13 }
 0x203   :  { %v859_v36 = vsub.f32 %v746_v33, %v809_v13  ;;  %v871_v58 = vsub.f32 %v5104_v32, %v809_v13  ;;  %v883_v62 = vsub.f32 %v762_v44, %v809_v13  ;;  %v895_v4 = vsub.f32 %v5108_v41, %v809_v13 }
 0x204   :  { %v813_v39 = vmul.f32 1.442695, %v811_v61  ;;  %v825_v42 = vmul.f32 1.442695, %v823_v14  ;;  %v837_v49 = vmul.f32 1.442695, %v835_v16  ;;  %v808_v10 = vmax.f32 %v806_v60, %v781_v50 }
 0x205   :  { %v849_v53 = vmul.f32 1.442695, %v847_v19  ;;  %v861_v7 = vmul.f32 1.442695, %v859_v36  ;;  %v873_v18 = vmul.f32 1.442695, %v871_v58  ;;  %v907_v57 = vsub.f32 %v778_v8, %v809_v13 }
 0x206   :  { %5699 = vpow2.f32 %v813_v39  ;;  %v810_v20 = vmax.f32 %v808_v10, %v6132_v51  ;;  %v885_v26 = vmul.f32 1.442695, %v883_v62  ;;  %v897_v27 = vmul.f32 1.442695, %v895_v4 }
 0x207   :  { %5701 = vpow2.f32 %v825_v42  ;;  %v919_v16 = vsub.f32 %v5112_v5, %v809_v13 }
 0x208   :  { %5703 = vpow2.f32 %v837_v49  ;;  %v812_v33 = vsub.f32 %v717_v24, %v810_v20  ;;  %v824_v12 = vsub.f32 %v6113_v21, %v810_v20  ;;  %v836_v32 = vsub.f32 %v6117_v31, %v810_v20 }
 0x209   :  { %5705 = vpow2.f32 %v849_v53  ;;  %v848_v44 = vsub.f32 %v6115_v28, %v810_v20  ;;  %v860_v14 = vsub.f32 %v6121_v38, %v810_v20  ;;  %v872_v39 = vsub.f32 %v6119_v35, %v810_v20 }
 0x20a   :  { %5707 = vpow2.f32 %v861_v7  ;;  %v815_v41 = vmul.f32 1.442695, %v812_v33  ;;  %v827_v61 = vmul.f32 1.442695, %v824_v12  ;;  %v839_v19 = vmul.f32 1.442695, %v836_v32 }
 0x20b   :  { %5709 = vpow2.f32 %v873_v18  ;;  %v851_v36 = vmul.f32 1.442695, %v848_v44  ;;  %v909_v24 = vmul.f32 1.442695, %v907_v57  ;;  %v863_v21 = vmul.f32 1.442695, %v860_v14 }
 0x20c   :  { %5711 = vpow2.f32 %v885_v26  ;;  %v884_v31 = vsub.f32 %v6128_v63, %v810_v20  ;;  %v921_v8 = vmul.f32 1.442695, %v919_v16  ;;  %v896_v28 = vsub.f32 %v6125_v54, %v810_v20 }
 0x20d   :  { %5713 = vpow2.f32 %v897_v27  ;;  %v875_v38 = vmul.f32 1.442695, %v872_v39  ;;  %v908_v5 = vsub.f32 %v781_v50, %v810_v20  ;;  %v920_v4 = vsub.f32 %v6132_v51, %v810_v20 }
 0x20e   :  { %5715 = vpow2.f32 %v815_v41  ;;  %v887_v58 = vmul.f32 1.442695, %v884_v31  ;;  %v899_v63 = vmul.f32 1.442695, %v896_v28 }
 0x20f   :  { %5717 = vpow2.f32 %v827_v61  ;;  %v911_v50 = vmul.f32 1.442695, %v908_v5  ;;  %v923_v12 = vmul.f32 1.442695, %v920_v4 }
 0x210   :  { %5719 = vpow2.f32 %v839_v19 }
 0x211   :  { %5721 = vpow2.f32 %v851_v36 }
 0x212   :  { %5723 = vpow2.f32 %v909_v24 }
 0x213   :  { %v5700_v42 = vpop.eup %5699  ;;  %5725 = vpow2.f32 %v863_v21 }
 0x214   :  { %v5702_v49 = vpop.eup %5701  ;;  %v819_v13 = vmul.f32 %v5700_v42, %v5999_v59  ;;  %5727 = vpow2.f32 %v921_v8 }
 0x215   :  { %v5704_v53 = vpop.eup %5703  ;;  %v829_v35 = vadd.f32 %v5702_v49, %v5700_v42  ;;  %v831_v60 = vmul.f32 %v5702_v49, %v6011_v11  ;;  %5729 = vpow2.f32 %v875_v38 }
 0x216   :  { %v5706_v62 = vpop.eup %5705  ;;  %v843_v10 = vmul.f32 %v5704_v53, %v6021_v22  ;;  %5731 = vpow2.f32 %v887_v58 }
 0x217   :  { %v841_v54 = vadd.f32 %v5704_v53, %v829_v35  ;;  %v833_v7 = vadd.f32 %v831_v60, %v819_v13  ;;  %v5708_v18 = vpop.eup %5707  ;;  %v855_v27 = vmul.f32 %v5706_v62, %v6031_v34  ;;  %5733 = vpow2.f32 %v899_v63 }
 0x218   :  { %v5710_v33 = vpop.eup %5709  ;;  %v867_v51 = vmul.f32 %v5708_v18, %v6041_v45  ;;  %5735 = vpow2.f32 %v911_v50 }
 0x219   :  { %v853_v26 = vadd.f32 %v5706_v62, %v841_v54  ;;  %v845_v59 = vadd.f32 %v843_v10, %v833_v7  ;;  %v5712_v11 = vpop.eup %5711  ;;  %v879_v61 = vmul.f32 %v5710_v33, %v6051_v2  ;;  %5737 = vpow2.f32 %v923_v12 }
 0x21a   :  { %v5714_v20 = vpop.eup %5713  ;;  %v891_v45 = vmul.f32 %v5712_v11, %v6061_v15 }
 0x21b   :  { %v865_v32 = vadd.f32 %v5708_v18, %v853_v26  ;;  %v857_v57 = vadd.f32 %v855_v27, %v845_v59  ;;  %v5716_v44 = vpop.eup %5715  ;;  %v903_v49 = vmul.f32 %v5714_v20, %v6071_v30 }
 0x21c   :  { %v5718_v14 = vpop.eup %5717  ;;  %v820_v16 = vmul.f32 %v5716_v44, %v6007_v6 }
 0x21d   :  { %v877_v41 = vadd.f32 %v5710_v33, %v865_v32  ;;  %v869_v22 = vadd.f32 %v867_v51, %v857_v57  ;;  %v5720_v34 = vpop.eup %5719  ;;  %v830_v36 = vadd.f32 %v5718_v14, %v5716_v44  ;;  %v832_v39 = vmul.f32 %v5718_v14, %v6017_v17  ;;  %v599_v33 = vpop.f32.mrf.mxu1 }
 0x21e   :  { %v5722_v21 = vpop.eup %5721  ;;  %v844_v42 = vmul.f32 %v5720_v34, %v6027_v29 }
 0x21f   :  { %v889_v19 = vadd.f32 %v5712_v11, %v877_v41  ;;  %v881_v24 = vadd.f32 %v879_v61, %v869_v22  ;;  %v5724_v31 = vpop.eup %5723  ;;  %v842_v8 = vadd.f32 %v5720_v34, %v830_v36  ;;  %v834_v28 = vadd.f32 %v832_v39, %v820_v16 }
 0x220   :  { %v5726_v38 = vpop.eup %5725  ;;  %v856_v35 = vmul.f32 %v5722_v21, %v6037_v40  ;;  %v915_v58 = vmul.f32 %v5724_v31, %v6081_v43 }
 0x221   :  { %v893_v2 = vadd.f32 %v891_v45, %v881_v24  ;;  %v5728_v5 = vpop.eup %5727  ;;  %v901_v6 = vadd.f32 %v5714_v20, %v889_v19  ;;  %v854_v13 = vadd.f32 %v5722_v21, %v842_v8  ;;  %v846_v53 = vadd.f32 %v844_v42, %v834_v28  ;;  %v5378_v42 = vld [vmem:[%s6176_s3 + $0xe0] ss:$16 sps:$4 sm:$0xff]  }
 0x222   :  { %v5730_v17 = vpop.eup %5729  ;;  %v868_v63 = vmul.f32 %v5726_v38, %v6047_v56  ;;  %v927_v54 = vmul.f32 %v5728_v5, %v6091_v3  ;;  %v600_v3 = vadd.f32 %v599_v33, %v5992_v52  ;;  %v4511_v52 = vld [vmem:[%s5980_s29 + $0x1] ss:$0 sm:$0xff]  ;;  %v6918_v21 = vunpack.c.h.bf16 %v5938_v25  ;;  %v5413_v33 = vld [vmem:[%s6176_s3 + $0x6c] ss:$16 sps:$4 sm:$0xff]   ;;  %s4430_s29 = sld [smem:[%s6915_s0 + %s5859_s26]]   ;;  %s5866_s26 = smov 19  }
 0x223   :  { %v905_v60 = vadd.f32 %v903_v49, %v893_v2  ;;  %v866_v15 = vadd.f32 %v5726_v38, %v854_v13  ;;  %v858_v62 = vadd.f32 %v856_v35, %v846_v53  ;;  %v5732_v4 = vpop.eup %5731  ;;  %v913_v7 = vadd.f32 %v5724_v31, %v901_v6  ;;  %v5380_v38 = vld [vmem:[%s6176_s3 + $0xe4] ss:$16 sps:$4 sm:$0xff]   ;;  %v5381_v49 = vld [vmem:[%s6176_s3 + $0xc0] ss:$16 sps:$4 sm:$0xff]   ;;  %v5393_v6 = vld [vmem:[%s6176_s3 + $0xe8] ss:$16 sps:$4 sm:$0xff]  }
 0x224   :  { %v880_v18 = vmul.f32 %v5730_v17, %v6057_v9  ;;  %v5734_v50 = vpop.eup %5733  ;;  %v892_v43 = vmul.f32 %v5732_v4, %v6067_v23  ;;  %v5383_v2 = vld [vmem:[%s6176_s3 + $0xc4] ss:$16 sps:$4 sm:$0xff]   ;;  %1283 = vmatprep.subr.bf16.mxu1 %v5380_v38  ;;  %v5395_v13 = vld [vmem:[%s6176_s3 + $0xec] ss:$16 sps:$4 sm:$0xff]   ;;  %v5384_v53 = vld [vmem:[%s6176_s3 + $0xa0] ss:$16 sps:$4 sm:$0xff]  }
 0x225   :  { %v917_v29 = vadd.f32 %v915_v58, %v905_v60  ;;  %v878_v30 = vadd.f32 %v5730_v17, %v866_v15  ;;  %v870_v10 = vadd.f32 %v868_v63, %v858_v62  ;;  %v5736_v27 = vpop.eup %5735  ;;  %v925_v11 = vadd.f32 %v5728_v5, %v913_v7  ;;  %1284 = vmatpush1.bf16.msra.mxu1 %v5378_v42  ;;  %v5386_v5 = vld [vmem:[%s6176_s3 + $0xa4] ss:$16 sps:$4 sm:$0xff]   ;;  %v5387_v17 = vld [vmem:[%s6176_s3 + $0x80] ss:$16 sps:$4 sm:$0xff]  }
 0x226   :  { %v5738_v12 = vpop.eup %5737  ;;  %v904_v57 = vmul.f32 %v5734_v50, %v6077_v37  ;;  %v916_v9 = vmul.f32 %v5736_v27, %v6087_v55  ;;  %v6919_v37 = vunpack.c.l.bf16 %v5938_v25  ;;  %1285 = vmatprep.subr.bf16.mxu1 %v5383_v2  ;;  %v5389_v35 = vld [vmem:[%s6176_s3 + $0x84] ss:$16 sps:$4 sm:$0xff]   ;;  %1326 = vmatprep.subr.bf16.mxu0 %v5395_v13  ;;  %v5390_v60 = vld [vmem:[%s6176_s3 + $0x60] ss:$16 sps:$4 sm:$0xff]   ;;  %v5428_v2 = vld [vmem:[%s6213_s7 + $0x38] sm:$0xff]  }
 0x227   :  { %v929_v26 = vadd.f32 %v927_v54, %v917_v29  ;;  %v890_v40 = vadd.f32 %v5732_v4, %v878_v30  ;;  %v882_v59 = vadd.f32 %v880_v18, %v870_v10  ;;  %5739 = vrcp.f32 %v925_v11  ;;  %v5392_v58 = vld [vmem:[%s6176_s3 + $0x64] ss:$16 sps:$4 sm:$0xff]   ;;  %v5396_v62 = vld [vmem:[%s6176_s3 + $0x40] ss:$16 sps:$4 sm:$0xff]  }
 0x228   :  { %v928_v22 = vmul.f32 %v5738_v12, %v600_v3  ;;  %v5398_v15 = vld [vmem:[%s6176_s3 + $0x44] ss:$16 sps:$4 sm:$0xff]   ;;  %v5405_v11 = vld [vmem:[%s6176_s3 + $0x20] ss:$16 sps:$4 sm:$0xff]  }
 0x229   :  { %v902_v56 = vadd.f32 %v5734_v50, %v890_v40  ;;  %v894_v32 = vadd.f32 %v892_v43, %v882_v59  ;;  %1286 = vmatpush1.bf16.msra.mxu1 %v5381_v49  ;;  %v5401_v50 = vld [vmem:[%s6176_s3 + $0xcc] ss:$16 sps:$4 sm:$0xff]   ;;  %v5402_v59 = vld [vmem:[%s6176_s3 + $0xa8] ss:$16 sps:$4 sm:$0xff]   ;;  %v5419_v3 = vld [vmem:[%s6176_s3 + $0x4] ss:$16 sps:$4 sm:$0xff]  }
 0x22a   :  { %1287 = vmatprep.subr.bf16.mxu1 %v5386_v5  ;;  %v5404_v40 = vld [vmem:[%s6176_s3 + $0xac] ss:$16 sps:$4 sm:$0xff]   ;;  %v5431_v13 = vld [vmem:[%s6213_s7 + $0xf0] sm:$0xff]  }
 0x22b   :  { %v914_v51 = vadd.f32 %v5736_v27, %v902_v56  ;;  %v906_v20 = vadd.f32 %v904_v57, %v894_v32  ;;  %v5410_v43 = vld [vmem:[%s6176_s3 + $0x8c] ss:$16 sps:$4 sm:$0xff]   ;;  %v5408_v27 = vld [vmem:[%s6176_s3 + $0x88] ss:$16 sps:$4 sm:$0xff]   ;;  %v5407_v56 = vld [vmem:[%s6176_s3 + $0x24] ss:$16 sps:$4 sm:$0xff]  }
 0x22c   :  { %v5414_v32 = vld [vmem:[%s6176_s3 + $0x48] ss:$16 sps:$4 sm:$0xff]   ;;  %v5416_v57 = vld [vmem:[%s6176_s3 + $0x4c] ss:$16 sps:$4 sm:$0xff]  }
 0x22d   :  { %v926_v44 = vadd.f32 %v5738_v12, %v914_v51  ;;  %v918_v41 = vadd.f32 %v916_v9, %v906_v20  ;;  %1288 = vmatpush1.bf16.msra.mxu1 %v5384_v53  ;;  %v5411_v12 = vld [vmem:[%s6176_s3 + $0x68] ss:$16 sps:$4 sm:$0xff]   ;;  %v5422_v51 = vld [vmem:[%s6176_s3 + $0x2c] ss:$16 sps:$4 sm:$0xff]   ;;  %v5417_v9 = vld [vmem:[%s6176_s3] ss:$16 sps:$4 sm:$0xff]  }
 0x22e   :  { %1289 = vmatprep.subr.bf16.mxu1 %v5389_v35  ;;  %v5420_v20 = vld [vmem:[%s6176_s3 + $0x28] ss:$16 sps:$4 sm:$0xff]   ;;  %v5432_v53 = vld [vmem:[%s6213_s7 + $0x30] sm:$0xff]  }
 0x22f   :  { %5741 = vrcp.f32 %v926_v44  ;;  %v930_v23 = vadd.f32 %v928_v22, %v918_v41  ;;  %v5425_v44 = vld [vmem:[%s6176_s3 + $0xc] ss:$16 sps:$4 sm:$0xff]   ;;  %v5423_v41 = vld [vmem:[%s6176_s3 + $0x8] ss:$16 sps:$4 sm:$0xff]   ;;  %v5433_v35 = vld [vmem:[%s6213_s7 + $0xb0] sm:$0xff]  }
 0x230   :  { %v5426_v22 = vld [vmem:[%s6213_s7 + $0x78] sm:$0xff]  }
 0x231   :  { %1290 = vmatpush1.bf16.msra.mxu1 %v5387_v17  ;;  %v5429_v49 = vld [vmem:[%s6213_s7 + $0xb8] sm:$0xff]   ;;  %v5434_v17 = vld [vmem:[%s6213_s7 + $0x68] sm:$0xff]  }
 0x232   :  { %1291 = vmatprep.subr.bf16.mxu1 %v5392_v58  ;;  %v5435_v58 = vld [vmem:[%s6213_s7 + $0xe8] sm:$0xff]  }
 0x234   :  { %v5740_v61 = vpop.eup %5739 }
 0x235   :  { %v933_v16 = vmul.f32 %v5740_v61, %v929_v26  ;;  %1292 = vmatpush1.bf16.msra.mxu1 %v5390_v60  ;;  %v5399_v26 = vld [vmem:[%s6176_s3 + $0xc8] ss:$16 sps:$4 sm:$0xff]   ;;  %s5861_s3 = smov 13  }
 0x236   :  { %1293 = vmatprep.subr.bf16.mxu1 %v5398_v15  ;;  %v5436_v60 = vld [vmem:[%s6213_s7 + $0x28] sm:$0xff]   ;;  %s6370_s6 = sld [smem:[%s6915_s0 + %s5861_s3]]   ;;  %s5868_s3 = smov 21  }
 0x237   :  { %v5437_v15 = vld [vmem:[%s6213_s7 + $0xa8] sm:$0xff]  }
 0x239   :  { %1294 = vmatpush1.bf16.msra.mxu1 %v5396_v62  ;;  %v5438_v62 = vld [vmem:[%s6213_s7 + $0x60] sm:$0xff]  }
 0x23a   :  { %1295 = vmatprep.subr.bf16.mxu1 %v5407_v56  ;;  %v5456_v56 = vld [vmem:[%s6213_s7] sm:$0xff]  }
 0x23c   :  { %v5742_v14 = vpop.eup %5741 }
 0x23d   :  { %v934_v34 = vmul.f32 %v5742_v14, %v930_v23  ;;  %1296 = vmatpush1.bf16.msra.mxu1 %v5405_v11  ;;  %v5427_v23 = vld [vmem:[%s6213_s7 + $0xf8] sm:$0xff]   ;;  %v5455_v11 = vld [vmem:[%s6213_s7 + $0xc0] sm:$0xff]  }
 0x23e   :  { %1297 = vmatprep.subr.bf16.mxu1 %v5419_v3  ;;  %v6276_v3 = vsub.s32 3, %v5975_v46 }
 0x23f   :  { %v935_v19 = vpack.c.bf16 %v934_v34, %v933_v16 }
 0x241   :  { %5131 = vmatmul.mubr.bf16.vlgmr.msra.gmra.mxu0 %v935_v19  ;;  %1298 = vmatpush1.bf16.msra.mxu1 %v5417_v9  ;;  %v1101_v9 = vld [vmem:[%s4428_s25] sm:$0xf]  ;;  %s4437_s25 = sld [smem:[%s6915_s0 + %s5865_s22]]  }
 0x242   :  { %1358 = vmatprep.mubr.bf16.mxu0 %v6920_v1  ;;  %1327 = vmatpush1.bf16.msra.mxu0 %v5393_v6  ;;  %v5430_v6 = vld [vmem:[%s6213_s7 + $0x70] sm:$0xff]  }
 0x243   :  { %1328 = vmatprep.subr.bf16.mxu0 %v5401_v50  ;;  %4863 = vmatprep.subr.bf16.mxu1 %v5426_v22  ;;  %v5447_v50 = vld [vmem:[%s6213_s7 + $0xd0] sm:$0xff]   ;;  %v1118_v22 = vrot.slane %v1101_v9, %v6276_v3 }
 0x246   :  { %1329 = vmatpush1.bf16.msra.mxu0 %v5399_v26  ;;  %v5448_v26 = vld [vmem:[%s6213_s7 + $0x10] sm:$0xff]  }
 0x247   :  { %1330 = vmatprep.subr.bf16.mxu0 %v5404_v40  ;;  %v5449_v40 = vld [vmem:[%s6213_s7 + $0x90] sm:$0xff]  }
 0x24a   :  { %1331 = vmatpush1.bf16.msra.mxu0 %v5402_v59  ;;  %v5450_v59 = vld [vmem:[%s6213_s7 + $0x48] sm:$0xff]  }
 0x24b   :  { %1332 = vmatprep.subr.bf16.mxu0 %v5410_v43  ;;  %v5451_v43 = vld [vmem:[%s6213_s7 + $0xc8] sm:$0xff]  }
 0x24e   :  { %1333 = vmatpush1.bf16.msra.mxu0 %v5408_v27  ;;  %v5452_v27 = vld [vmem:[%s6213_s7 + $0x8] sm:$0xff]  }
 0x24f   :  { %1334 = vmatprep.subr.bf16.mxu0 %v5413_v33  ;;  %v5453_v33 = vld [vmem:[%s6213_s7 + $0x88] sm:$0xff]  }
 0x252   :  { %1335 = vmatpush1.bf16.msra.mxu0 %v5411_v12  ;;  %v5454_v12 = vld [vmem:[%s6213_s7 + $0x40] sm:$0xff]  }
 0x253   :  { %1336 = vmatprep.subr.bf16.mxu0 %v5416_v57  ;;  %v5460_v57 = vld [vmem:[%s6263_s16 + $0x74] ss:$8 sps:$4 sm:$0xff]  }
 0x256   :  { %1337 = vmatpush1.bf16.msra.mxu0 %v5414_v32  ;;  %v5457_v32 = vld [vmem:[%s6213_s7 + $0x80] sm:$0xff]  }
 0x257   :  { %1338 = vmatprep.subr.bf16.mxu0 %v5422_v51  ;;  %v6279_v51 = vsub.s32 2, %v5975_v46 }
 0x25a   :  { %1339 = vmatpush1.bf16.msra.mxu0 %v5420_v20 }
 0x25b   :  { %1340 = vmatprep.subr.bf16.mxu0 %v5425_v44 }
 0x25e   :  { %1341 = vmatpush1.bf16.msra.mxu0 %v5423_v41  ;;  %v1110_v41 = vrot.slane %v1101_v9, %v5986_v48 }
 0x25f   :  { %4885 = vmatprep.subr.bf16.mxu0 %v5427_v23  ;;  %v1106_v23 = vrot.slane %v1101_v9, %v5983_v47 }
 0x301   :  { %v1022_v36 = vpop.f32.mrf.mxu0 }
 0x302   :  { %v1023_v55 = vadd.f32 %v4511_v52, %v1022_v36 }
 0x303   :  { %v5132_v39 = vpop.f32.mrf.mxu0 }
 0x304   :  { %v1029_v24 = vadd.f32 %v1023_v55, %v6919_v37  ;;  %v4520_v39 = vld [vmem:[%s6220_s11] ss:$0 sm:$0xff] }
 0x305   :  { %v1025_v45 = vpop.f32.mrf.mxu0 }
 0x306   :  { %v1026_v31 = vadd.f32 %v4511_v52, %v1025_v45  ;;  %1033 = vadd.xlane.f32.xlu0 %v1029_v24 }
 0x307   :  { %v5133_v8 = vpop.f32.mrf.mxu0 }
 0x308   :  { %v1030_v28 = vadd.f32 %v1026_v31, %v6918_v21  ;;  %v4521_v8 = vld [vmem:[%s6220_s11 + $0x1] ss:$0 sm:$0xff] }
 0x30a   :  { %1035 = vadd.xlane.f32.xlu0 %v1030_v28 }
 0x38f   :  { %v1034_v63 = vpop.xlane.xlu0 %1033 }
 0x390   :  { %v1038_v4 = vmul.f32 0.0078125, %v1034_v63  ;;  %v5439_v63 = vld [vmem:[%s6213_s7 + $0xe0] sm:$0xff]  }
 0x392   :  { %v1040_v29 = vsub.f32 %v1029_v24, %v1038_v4  ;;  %v5440_v4 = vld [vmem:[%s6213_s7 + $0x20] sm:$0xff]  }
 0x393   :  { %v1036_v54 = vpop.xlane.xlu0 %1035 }
 0x394   :  { %v1039_v7 = vmul.f32 0.0078125, %v1036_v54  ;;  %v1042_v30 = vmul.f32 %v1040_v29, %v1040_v29  ;;  %v5442_v54 = vld [vmem:[%s6213_s7 + $0x58] sm:$0xff]  }
 0x396   :  { %v1041_v10 = vsub.f32 %v1030_v28, %v1039_v7  ;;  %1044 = vadd.xlane.f32.xlu1 %v1042_v30  ;;  %v5443_v7 = vld [vmem:[%s6213_s7 + $0xd8] sm:$0xff]  }
 0x397   :  { %v5444_v30 = vld [vmem:[%s6213_s7 + $0x18] sm:$0xff]  }
 0x398   :  { %v1043_v18 = vmul.f32 %v1041_v10, %v1041_v10 }
 0x39a   :  { %1046 = vadd.xlane.f32.xlu1 %v1043_v18  ;;  %v5446_v18 = vld [vmem:[%s6213_s7 + $0x50] sm:$0xff]  }
 0x41f   :  { %v1045_v61 = vpop.xlane.xlu1 %1044 }
 0x420   :  { %v1048_v14 = vmul.f32 0.0078125, %v1045_v61  ;;  %v1114_v61 = vrot.slane %v1101_v9, %v6279_v51  ;;  %v5488_v9 = vld [vmem:[%s6263_s16 + $0x4] ss:$8 sps:$4 sm:$0xff]  }
 0x422   :  { %v1050_v16 = vadd.f32 1e-05, %v1048_v14 }
 0x423   :  { %v1047_v34 = vpop.xlane.xlu1 %1046 }
 0x424   :  { %5743 = vrsqrt.f32 %v1050_v16  ;;  %v1049_v19 = vmul.f32 0.0078125, %v1047_v34 }
 0x426   :  { %v1051_v52 = vadd.f32 1e-05, %v1049_v19 }
 0x428   :  { %5745 = vrsqrt.f32 %v1051_v52 }
 0x431   :  { %v5744_v36 = vpop.eup %5743 }
 0x432   :  { %v1054_v55 = vmul.f32 %v5744_v36, %v1040_v29  ;;  %v5441_v29 = vld [vmem:[%s6213_s7 + $0xa0] sm:$0xff]  }
 0x434   :  { %v1060_v31 = vmul.f32 %v4520_v39, %v1054_v55 }
 0x435   :  { %v5746_v24 = vpop.eup %5745 }
 0x436   :  { %v1055_v45 = vmul.f32 %v5746_v24, %v1041_v10  ;;  %v6224_v42 = vadd.f32 %v4521_v8, %v1060_v31  ;;  %v5445_v10 = vld [vmem:[%s6213_s7 + $0x98] sm:$0xff]   ;;  %s5862_s7 = smov 16  }
 0x437   :  { %s6561_s10 = sld [smem:[%s6915_s0 + %s5862_s7]]  }
 0x438   :  { %v1061_v28 = vmul.f32 %v4520_v39, %v1055_v45  ;;  %s4450_s7 = sld [smem:[%s6915_s0 + %s5876_s5]]  }
 0x43a   :  { %v6226_v38 = vadd.f32 %v4521_v8, %v1061_v28 }
 0x43c   :  { %v1068_v5 = vpack.c.bf16 %v6226_v38, %v6224_v42 }
 0x43e   :  { %1316 = vmatmul.mubr.bf16.vlgmr.msra.gmra.mxu1 %v1068_v5  ;;  %1359 = vmatmul.mubr.bf16.vlgmr.msra.gmra.mxu0 %v1068_v5 }
 0x43f   :  { %4864 = vmatpush3.bf16.msra.mxu1 %v5428_v2  ;;  %4886 = vmatpush3.bf16.msra.mxu0 %v5429_v49 }
 0x440   :  { %4865 = vmatprep.subr.bf16.mxu1 %v5430_v6  ;;  %4887 = vmatprep.subr.bf16.mxu0 %v5431_v13 }
 0x443   :  { %4866 = vmatpush3.bf16.msra.mxu1 %v5432_v53  ;;  %4888 = vmatpush3.bf16.msra.mxu0 %v5433_v35 }
 0x444   :  { %4867 = vmatprep.subr.bf16.mxu1 %v5434_v17  ;;  %4889 = vmatprep.subr.bf16.mxu0 %v5435_v58 }
 0x447   :  { %4868 = vmatpush3.bf16.msra.mxu1 %v5436_v60  ;;  %4890 = vmatpush3.bf16.msra.mxu0 %v5437_v15  ;;  %v5458_v15 = vld [vmem:[%s6263_s16 + $0x70] ss:$8 sps:$4 sm:$0xff]  }
 0x448   :  { %4869 = vmatprep.subr.bf16.mxu1 %v5438_v62  ;;  %4891 = vmatprep.subr.bf16.mxu0 %v5439_v63  ;;  %v5461_v62 = vld [vmem:[%s6268_s20 + $0x38] sm:$0xff]  }
 0x44b   :  { %4870 = vmatpush3.bf16.msra.mxu1 %v5440_v4  ;;  %4892 = vmatpush3.bf16.msra.mxu0 %v5441_v29  ;;  %v5464_v29 = vld [vmem:[%s6263_s16 + $0x64] ss:$8 sps:$4 sm:$0xff]  }
 0x44c   :  { %4871 = vmatprep.subr.bf16.mxu1 %v5442_v54  ;;  %4893 = vmatprep.subr.bf16.mxu0 %v5443_v7  ;;  %v5462_v54 = vld [vmem:[%s6263_s16 + $0x60] ss:$8 sps:$4 sm:$0xff]   ;;  %v5465_v7 = vld [vmem:[%s6268_s20 + $0x30] sm:$0xff]  }
 0x44f   :  { %4872 = vmatpush3.bf16.msra.mxu1 %v5444_v30  ;;  %4894 = vmatpush3.bf16.msra.mxu0 %v5445_v10  ;;  %v5468_v30 = vld [vmem:[%s6263_s16 + $0x54] ss:$8 sps:$4 sm:$0xff]   ;;  %v5466_v10 = vld [vmem:[%s6263_s16 + $0x50] ss:$8 sps:$4 sm:$0xff]  }
 0x450   :  { %4873 = vmatprep.subr.bf16.mxu1 %v5446_v18  ;;  %4895 = vmatprep.subr.bf16.mxu0 %v5447_v50  ;;  %v5469_v18 = vld [vmem:[%s6268_s20 + $0x28] sm:$0xff]  }
 0x451   :  { %v5472_v50 = vld [vmem:[%s6263_s16 + $0x44] ss:$8 sps:$4 sm:$0xff]  }
 0x453   :  { %4874 = vmatpush3.bf16.msra.mxu1 %v5448_v26  ;;  %4896 = vmatpush3.bf16.msra.mxu0 %v5449_v40  ;;  %v5470_v26 = vld [vmem:[%s6263_s16 + $0x40] ss:$8 sps:$4 sm:$0xff]  }
 0x454   :  { %4875 = vmatprep.subr.bf16.mxu1 %v5450_v59  ;;  %4897 = vmatprep.subr.bf16.mxu0 %v5451_v43  ;;  %v5473_v40 = vld [vmem:[%s6268_s20 + $0x20] sm:$0xff]   ;;  %v5476_v59 = vld [vmem:[%s6263_s16 + $0x34] ss:$8 sps:$4 sm:$0xff]   ;;  %v5474_v43 = vld [vmem:[%s6263_s16 + $0x30] ss:$8 sps:$4 sm:$0xff]  }
 0x457   :  { %4876 = vmatpush3.bf16.msra.mxu1 %v5452_v27  ;;  %4898 = vmatpush3.bf16.msra.mxu0 %v5453_v33  ;;  %v5477_v27 = vld [vmem:[%s6268_s20 + $0x18] sm:$0xff]   ;;  %v5480_v33 = vld [vmem:[%s6263_s16 + $0x24] ss:$8 sps:$4 sm:$0xff]  }
 0x458   :  { %4877 = vmatprep.subr.bf16.mxu1 %v5454_v12  ;;  %4899 = vmatprep.subr.bf16.mxu0 %v5455_v11  ;;  %v5478_v12 = vld [vmem:[%s6263_s16 + $0x20] ss:$8 sps:$4 sm:$0xff]   ;;  %v5481_v11 = vld [vmem:[%s6268_s20 + $0x10] sm:$0xff]  }
 0x45b   :  { %4878 = vmatpush3.bf16.msra.mxu1 %v5456_v56  ;;  %4900 = vmatpush3.bf16.msra.mxu0 %v5457_v32  ;;  %v5484_v56 = vld [vmem:[%s6263_s16 + $0x14] ss:$8 sps:$4 sm:$0xff]   ;;  %v5482_v32 = vld [vmem:[%s6263_s16 + $0x10] ss:$8 sps:$4 sm:$0xff]  }
 0x45c   :  { %5134 = vmatprep.subr.bf16.mxu1 %v6916_v0  ;;  %2000 = vmatprep.subr.bf16.mxu0 %v5460_v57  ;;  %v5485_v57 = vld [vmem:[%s6268_s20 + $0x8] sm:$0xff]  }
 0x4fe   :  { %v1317_v20 = vpop.f32.mrf.mxu1  ;;  %v1360_v44 = vpop.f32.mrf.mxu0 }
 0x4ff   :  { %v1318_v39 = vadd.f32 %v1317_v20, %v1106_v23  ;;  %v1361_v24 = vadd.f32 %v1360_v44, %v1114_v61  ;;  %v5486_v20 = vld [vmem:[%s6263_s16] ss:$8 sps:$4 sm:$0xff]   ;;  %s6606_s16 = sld [smem:[%s6915_s0 + %s5863_s12]]  }
 0x500   :  { %v1319_v14 = vpop.f32.mrf.mxu1  ;;  %v1362_v16 = vpop.f32.mrf.mxu0  ;;  %v5489_v44 = vld [vmem:[%s6268_s20] sm:$0xff]  }
 0x501   :  { %v1320_v52 = vadd.f32 %v1319_v14, %v1110_v41  ;;  %v1363_v36 = vadd.f32 %v1362_v16, %v1118_v22  ;;  %v1369_v35 = vmax.f32 %v1318_v39, 0.0  ;;  %v1371_v17 = vmax.f32 %v1361_v24, 0.0  ;;  %v5823_v14 = vld [vmem:[%s5931_s21 + $0x28] sm:$0xff]   ;;  %v5824_v16 = vld [vmem:[%s5931_s21 + $0x20] sm:$0xff]   ;;  %v5832_v24 = vld [vmem:[%s5915_s14 + $0x30] sm:$0xff]  }
 0x502   :  { %v1321_v34 = vpop.f32.mrf.mxu1  ;;  %v1364_v19 = vpop.f32.mrf.mxu0  ;;  %v5831_v39 = vld [vmem:[%s5915_s14 + $0x28] sm:$0xff]  }
 0x503   :  { %v1322_v55 = vadd.f32 %v1321_v34, %v1106_v23  ;;  %v1365_v46 = vadd.f32 %v1364_v19, %v1114_v61  ;;  %v1370_v5 = vmax.f32 %v1320_v52, 0.0  ;;  %v1372_v6 = vmax.f32 %v1363_v36, 0.0  ;;  %v5821_v23 = vld [vmem:[%s5931_s21 + $0x30] sm:$0xff]   ;;  %v5825_v34 = vld [vmem:[%s5915_s14 + $0x18] sm:$0xff]   ;;  %v5828_v36 = vld [vmem:[%s5915_s14 + $0x20] sm:$0xff]  }
 0x504   :  { %v1323_v45 = vpop.f32.mrf.mxu1  ;;  %v1366_v31 = vpop.f32.mrf.mxu0  ;;  %v5822_v61 = vld [vmem:[%s5915_s14 + $0x10] sm:$0xff]   ;;  %v5826_v19 = vld [vmem:[%s5931_s21 + $0x18] sm:$0xff]  }
 0x505   :  { %v1324_v8 = vadd.f32 %v1323_v45, %v1110_v41  ;;  %v1367_v28 = vadd.f32 %v1366_v31, %v1118_v22  ;;  %v1373_v2 = vmax.f32 %v1322_v55, 0.0  ;;  %v1375_v49 = vmax.f32 %v1365_v46, 0.0  ;;  %v5819_v41 = vld [vmem:[%s5915_s14 + $0x8] sm:$0xff]   ;;  %v5820_v22 = vld [vmem:[%s5931_s21 + $0x38] sm:$0xff]   ;;  %v5827_v52 = vld [vmem:[%s5931_s21 + $0x10] sm:$0xff]  }
 0x506   :  { %v5829_v55 = vld [vmem:[%s5931_s21 + $0x8] sm:$0xff]   ;;  %v5830_v46 = vld [vmem:[%s5931_s21] sm:$0xff]   ;;  %v5833_v45 = vld [vmem:[%s5915_s14 + $0x38] sm:$0xff]  }
 0x507   :  { %v1374_v13 = vmax.f32 %v1324_v8, 0.0  ;;  %v1376_v53 = vmax.f32 %v1367_v28, 0.0  ;;  %v1377_v63 = vpack.c.bf16 %v1373_v2, %v1369_v35  ;;  %v1379_v4 = vpack.c.bf16 %v1375_v49, %v1371_v17  ;;  %v5834_v31 = vld [vmem:[%s5915_s14 + $0x40] sm:$0xff]   ;;  %v5835_v8 = vld [vmem:[%s5915_s14 + $0x48] sm:$0xff]   ;;  %s5860_s14 = smov 15  }
 0x508   :  { %v4554_v49 = vld [vmem:[%s4430_s29] ss:$0 sm:$0xff]  ;;  %s4435_s2 = sld [smem:[%s6915_s0 + %s5860_s14]]   ;;  %s5867_s14 = smov 23  }
 0x509   :  { %v1378_v58 = vpack.c.bf16 %v1374_v13, %v1370_v5  ;;  %v1380_v60 = vpack.c.bf16 %v1376_v53, %v1372_v6  ;;  %s4439_s29 = sld [smem:[%s6915_s0 + %s5866_s26]]  }
 0x50b   :  { %1676 = vmatprep.mubr.bf16.mxu1 %v1378_v58  ;;  %1717 = vmatprep.mubr.bf16.mxu0 %v1380_v60 }
 0x50c   :  { %1677 = vmatmul.mubr.bf16.vlgmr.msra.gmra.mxu1 %v1377_v63  ;;  %1718 = vmatmul.mubr.bf16.vlgmr.msra.gmra.mxu0 %v1379_v4 }
 0x50d   :  { %5135 = vmatpush3.bf16.msra.mxu1 %v5461_v62  ;;  %2001 = vmatpush1.bf16.msra.mxu0 %v5458_v15 }
 0x50e   :  { %5136 = vmatprep.subr.bf16.mxu1 %v6916_v0  ;;  %2002 = vmatprep.subr.bf16.mxu0 %v5464_v29 }
 0x50f   :  { %5150 = vmatprep.mubr.msk.bf16.mxu1 %vm5846_vm0, %v6916_v0  ;;  %2032 = vmatprep.mubr.bf16.mxu0 %v6920_v1 }
 0x511   :  { %5137 = vmatpush3.bf16.msra.mxu1 %v5465_v7  ;;  %2003 = vmatpush1.bf16.msra.mxu0 %v5462_v54  ;;  %v1908_v7 = vld [vmem:[%s4435_s2] sm:$0x3]  ;;  %s6678_s2 = sld [smem:[%s6915_s0 + %s5867_s14]]  }
 0x512   :  { %5138 = vmatprep.subr.bf16.mxu1 %v6916_v0  ;;  %2004 = vmatprep.subr.bf16.mxu0 %v5468_v30  ;;  %v6373_v30 = vrot.slane %v1908_v7, %v5983_v47 }
 0x515   :  { %5139 = vmatpush3.bf16.msra.mxu1 %v5469_v18  ;;  %2005 = vmatpush1.bf16.msra.mxu0 %v5466_v10  ;;  %v6376_v10 = vrot.slane %v1908_v7, %v5986_v48  ;;  %v4605_v18 = vld [vmem:[%s6370_s6] ss:$0 sm:$0xff] }
 0x516   :  { %5140 = vmatprep.subr.bf16.mxu1 %v6916_v0  ;;  %2006 = vmatprep.subr.bf16.mxu0 %v5472_v50 }
 0x519   :  { %5141 = vmatpush3.bf16.msra.mxu1 %v5473_v40  ;;  %2007 = vmatpush1.bf16.msra.mxu0 %v5470_v26 }
 0x51a   :  { %5142 = vmatprep.subr.bf16.mxu1 %v6916_v0  ;;  %2008 = vmatprep.subr.bf16.mxu0 %v5476_v59 }
 0x51d   :  { %5143 = vmatpush3.bf16.msra.mxu1 %v5477_v27  ;;  %2009 = vmatpush1.bf16.msra.mxu0 %v5474_v43 }
 0x51e   :  { %5144 = vmatprep.subr.bf16.mxu1 %v6916_v0  ;;  %2010 = vmatprep.subr.bf16.mxu0 %v5480_v33 }
 0x521   :  { %5145 = vmatpush3.bf16.msra.mxu1 %v5481_v11  ;;  %2011 = vmatpush1.bf16.msra.mxu0 %v5478_v12 }
 0x522   :  { %5146 = vmatprep.subr.bf16.mxu1 %v6916_v0  ;;  %2012 = vmatprep.subr.bf16.mxu0 %v5484_v56 }
 0x525   :  { %5147 = vmatpush3.bf16.msra.mxu1 %v5485_v57  ;;  %2013 = vmatpush1.bf16.msra.mxu0 %v5482_v32 }
 0x526   :  { %5148 = vmatprep.subr.bf16.mxu1 %v6916_v0  ;;  %2014 = vmatprep.subr.bf16.mxu0 %v5488_v9 }
 0x529   :  { %5149 = vmatpush3.bf16.msra.mxu1 %v5489_v44  ;;  %2015 = vmatpush1.bf16.msra.mxu0 %v5486_v20 }
 0x52a   :  { %5154 = vmatprep.subr.bf16.mxu1 %v6916_v0  ;;  %5206 = vmatprep.subr.bf16.mxu0 %v6916_v0 }
 0x52c   :  { %5151 = vmatmul.mubr.bf16.vlgmr.msra.gmra.mxu1 %v5938_v25  ;;  %2033 = vmatmul.mubr.bf16.vlgmr.msra.gmra.mxu0 %v5819_v41 }
 0x52d   :  { %2042 = vmatprep.mubr.bf16.mxu0 %v6920_v1  ;;  %5155 = vmatpush3.bf16.msra.mxu1 %v5820_v22 }
 0x52e   :  { %5156 = vmatprep.subr.bf16.mxu1 %v6916_v0  ;;  %5170 = vmatprep.mubr.msk.bf16.mxu1 %vm5846_vm0, %v6916_v0 }
 0x531   :  { %5157 = vmatpush3.bf16.msra.mxu1 %v5821_v23 }
 0x532   :  { %5158 = vmatprep.subr.bf16.mxu1 %v6916_v0 }
 0x534   :  { %2043 = vmatmul.mubr.bf16.gmra.mxu0 %v5822_v61 }
 0x535   :  { %2052 = vmatprep.mubr.bf16.mxu0 %v6920_v1  ;;  %5159 = vmatpush3.bf16.msra.mxu1 %v5823_v14 }
 0x536   :  { %5160 = vmatprep.subr.bf16.mxu1 %v6916_v0 }
 0x539   :  { %5161 = vmatpush3.bf16.msra.mxu1 %v5824_v16 }
 0x53a   :  { %5162 = vmatprep.subr.bf16.mxu1 %v6916_v0 }
 0x53c   :  { %2053 = vmatmul.mubr.bf16.gmra.mxu0 %v5825_v34 }
 0x53d   :  { %2062 = vmatprep.mubr.bf16.mxu0 %v6920_v1  ;;  %5163 = vmatpush3.bf16.msra.mxu1 %v5826_v19 }
 0x53e   :  { %5164 = vmatprep.subr.bf16.mxu1 %v6916_v0 }
 0x541   :  { %5165 = vmatpush3.bf16.msra.mxu1 %v5827_v52 }
 0x542   :  { %5166 = vmatprep.subr.bf16.mxu1 %v6916_v0 }
 0x544   :  { %2063 = vmatmul.mubr.bf16.gmra.mxu0 %v5828_v36 }
 0x545   :  { %2072 = vmatprep.mubr.bf16.mxu0 %v6920_v1  ;;  %5167 = vmatpush3.bf16.msra.mxu1 %v5829_v55 }
 0x546   :  { %5168 = vmatprep.subr.bf16.mxu1 %v6916_v0 }
 0x549   :  { %5169 = vmatpush3.bf16.msra.mxu1 %v5830_v46 }
 0x54c   :  { %2073 = vmatmul.mubr.bf16.gmra.mxu0 %v5831_v39 }
 0x54d   :  { %2082 = vmatprep.mubr.bf16.mxu0 %v6920_v1 }
 0x554   :  { %2083 = vmatmul.mubr.bf16.gmra.mxu0 %v5832_v24 }
 0x555   :  { %2092 = vmatprep.mubr.bf16.mxu0 %v6920_v1 }
 0x55c   :  { %2093 = vmatmul.mubr.bf16.gmra.mxu0 %v5833_v45 }
 0x55d   :  { %2102 = vmatprep.mubr.bf16.mxu0 %v6920_v1 }
 0x564   :  { %2103 = vmatmul.mubr.bf16.gmra.mxu0 %v5834_v31 }
 0x565   :  { %2112 = vmatprep.mubr.bf16.mxu0 %v6920_v1 }
 0x56c   :  { %2113 = vmatmul.mubr.bf16.gmra.mxu0 %v5835_v8 }
 0x56d   :  { %5222 = vmatprep.mubr.msk.bf16.mxu0 %vm5846_vm0, %v6916_v0 }
 0x5cc   :  { %v4879_v28 = vpop.f32.mrf.mxu1  ;;  %v4901_v2 = vpop.f32.mrf.mxu0 }
 0x5ce   :  { %v4880_v5 = vpop.f32.mrf.mxu1  ;;  %v4902_v6 = vpop.f32.mrf.mxu0 }
 0x5cf   :  { %v4881_v13 = vadd.f32 %v4880_v5, %v4879_v28  ;;  %v4903_v53 = vadd.f32 %v4902_v6, %v4901_v2 }
 0x5d0   :  { %v4882_v35 = vpop.f32.mrf.mxu1  ;;  %v4904_v17 = vpop.f32.mrf.mxu0 }
 0x5d1   :  { %v1679_v58 = vadd.f32 %v4881_v13, %v4554_v49 }
 0x5d2   :  { %v4883_v60 = vpop.f32.mrf.mxu1  ;;  %v4905_v15 = vpop.f32.mrf.mxu0 }
 0x5d3   :  { %v6360_v62 = vadd.f32 %v4903_v53, %v1679_v58  ;;  %v4884_v63 = vadd.f32 %v4883_v60, %v4882_v35  ;;  %v4906_v4 = vadd.f32 %v4905_v15, %v4904_v17 }
 0x5d5   :  { %v1682_v29 = vadd.f32 %v4884_v63, %v4554_v49 }
 0x5d7   :  { %v6362_v54 = vadd.f32 %v4906_v4, %v1682_v29 }
 0x5ec   :  { %v1885_v50 = vpop.f32.mrf.mxu1  ;;  %v2034_v26 = vpop.f32.mrf.mxu0 }
 0x5ed   :  { %v6379_v43 = vadd.f32 %v4605_v18, %v1885_v50  ;;  %v2035_v27 = vadd.f32 %v2034_v26, %v6373_v30 }
 0x5ee   :  { %v5152_v40 = vpop.f32.mrf.mxu1  ;;  %v2036_v59 = vpop.f32.mrf.mxu0 }
 0x5ef   :  { %v6383_v33 = vadd.f32 %v2036_v59, %v6376_v10  ;;  %v2123_v20 = vmul.f32 %v2035_v27, %v6379_v43 }
 0x5f0   :  { %v1888_v12 = vpop.f32.mrf.mxu1  ;;  %v2038_v11 = vpop.f32.mrf.mxu0 }
 0x5f1   :  { %v6385_v56 = vadd.f32 %v4605_v18, %v1888_v12  ;;  %v2039_v32 = vadd.f32 %v2038_v11, %v6373_v30 }
 0x5f2   :  { %v5153_v57 = vpop.f32.mrf.mxu1  ;;  %v2040_v9 = vpop.f32.mrf.mxu0 }
 0x5f3   :  { %v2124_v44 = vmul.f32 %v2039_v32, %v6385_v56  ;;  %v6391_v41 = vadd.f32 %v2040_v9, %v6376_v10 }
 0x5f4   :  { %v2044_v22 = vpop.f32.mrf.mxu0 }
 0x5f5   :  { %v2141_v23 = vpack.c.bf16 %v2124_v44, %v2123_v20  ;;  %v2045_v14 = vadd.f32 %v2044_v22, %v6373_v30 }
 0x5f6   :  { %v2046_v61 = vpop.f32.mrf.mxu0 }
 0x5f7   :  { %v6395_v16 = vadd.f32 %v2046_v61, %v6376_v10  ;;  %5171 = vmatmul.mubr.bf16.vlgmr.msra.gmra.mxu1 %v2141_v23  ;;  %v2125_v36 = vmul.f32 %v2045_v14, %v6379_v43 }
 0x5f8   :  { %v2048_v34 = vpop.f32.mrf.mxu0  ;;  %5174 = vmatprep.mubr.msk.bf16.mxu1 %vm5846_vm0, %v6916_v0 }
 0x5f9   :  { %v2049_v19 = vadd.f32 %v2048_v34, %v6373_v30 }
 0x5fa   :  { %v2050_v52 = vpop.f32.mrf.mxu0 }
 0x5fb   :  { %v2126_v55 = vmul.f32 %v2049_v19, %v6385_v56  ;;  %v6403_v46 = vadd.f32 %v2050_v52, %v6376_v10 }
 0x5fc   :  { %v2054_v39 = vpop.f32.mrf.mxu0 }
 0x5fd   :  { %v2142_v24 = vpack.c.bf16 %v2126_v55, %v2125_v36  ;;  %v2055_v31 = vadd.f32 %v2054_v39, %v6373_v30 }
 0x5fe   :  { %v2056_v45 = vpop.f32.mrf.mxu0 }
 0x5ff   :  { %v6407_v8 = vadd.f32 %v2056_v45, %v6376_v10  ;;  %5175 = vmatmul.mubr.bf16.gmra.mxu1 %v2142_v24  ;;  %v2127_v5 = vmul.f32 %v2055_v31, %v6379_v43 }
 0x600   :  { %v2058_v28 = vpop.f32.mrf.mxu0  ;;  %5178 = vmatprep.mubr.msk.bf16.mxu1 %vm5846_vm0, %v6916_v0 }
 0x601   :  { %v2059_v2 = vadd.f32 %v2058_v28, %v6373_v30 }
 0x602   :  { %v2060_v49 = vpop.f32.mrf.mxu0 }
 0x603   :  { %v2128_v6 = vmul.f32 %v2059_v2, %v6385_v56  ;;  %v6415_v13 = vadd.f32 %v2060_v49, %v6376_v10 }
 0x604   :  { %v2064_v53 = vpop.f32.mrf.mxu0 }
 0x605   :  { %v2143_v35 = vpack.c.bf16 %v2128_v6, %v2127_v5  ;;  %v2065_v58 = vadd.f32 %v2064_v53, %v6373_v30 }
 0x606   :  { %v2066_v17 = vpop.f32.mrf.mxu0 }
 0x607   :  { %v6419_v60 = vadd.f32 %v2066_v17, %v6376_v10  ;;  %5179 = vmatmul.mubr.bf16.gmra.mxu1 %v2143_v35  ;;  %v2129_v29 = vmul.f32 %v2065_v58, %v6379_v43 }
 0x608   :  { %v2068_v15 = vpop.f32.mrf.mxu0  ;;  %5182 = vmatprep.mubr.msk.bf16.mxu1 %vm5846_vm0, %v6916_v0 }
 0x609   :  { %v2069_v63 = vadd.f32 %v2068_v15, %v6373_v30 }
 0x60a   :  { %v2070_v4 = vpop.f32.mrf.mxu0 }
 0x60b   :  { %v2130_v7 = vmul.f32 %v2069_v63, %v6385_v56  ;;  %v6427_v18 = vadd.f32 %v2070_v4, %v6376_v10 }
 0x60c   :  { %v2074_v50 = vpop.f32.mrf.mxu0 }
 0x60d   :  { %v2144_v26 = vpack.c.bf16 %v2130_v7, %v2129_v29  ;;  %v2075_v59 = vadd.f32 %v2074_v50, %v6373_v30 }
 0x60e   :  { %v2076_v40 = vpop.f32.mrf.mxu0 }
 0x60f   :  { %v6431_v27 = vadd.f32 %v2076_v40, %v6376_v10  ;;  %5183 = vmatmul.mubr.bf16.gmra.mxu1 %v2144_v26  ;;  %v2131_v57 = vmul.f32 %v2075_v59, %v6379_v43 }
 0x610   :  { %v2078_v12 = vpop.f32.mrf.mxu0  ;;  %5186 = vmatprep.mubr.msk.bf16.mxu1 %vm5846_vm0, %v6916_v0 }
 0x611   :  { %v2079_v11 = vadd.f32 %v2078_v12, %v6373_v30 }
 0x612   :  { %v2080_v32 = vpop.f32.mrf.mxu0 }
 0x613   :  { %v2132_v9 = vmul.f32 %v2079_v11, %v6385_v56  ;;  %v6439_v20 = vadd.f32 %v2080_v32, %v6376_v10 }
 0x614   :  { %v2084_v44 = vpop.f32.mrf.mxu0 }
 0x615   :  { %v2145_v22 = vpack.c.bf16 %v2132_v9, %v2131_v57  ;;  %v2085_v61 = vadd.f32 %v2084_v44, %v6373_v30 }
 0x616   :  { %v2086_v23 = vpop.f32.mrf.mxu0 }
 0x617   :  { %v6443_v14 = vadd.f32 %v2086_v23, %v6376_v10  ;;  %5187 = vmatmul.mubr.bf16.gmra.mxu1 %v2145_v22  ;;  %v2133_v36 = vmul.f32 %v2085_v61, %v6379_v43 }
 0x618   :  { %v2088_v34 = vpop.f32.mrf.mxu0  ;;  %5190 = vmatprep.mubr.msk.bf16.mxu1 %vm5846_vm0, %v6916_v0 }
 0x619   :  { %v2089_v19 = vadd.f32 %v2088_v34, %v6373_v30 }
 0x61a   :  { %v2090_v52 = vpop.f32.mrf.mxu0 }
 0x61b   :  { %v2134_v55 = vmul.f32 %v2089_v19, %v6385_v56  ;;  %v6451_v39 = vadd.f32 %v2090_v52, %v6376_v10  ;;  %v5491_v52 = vld [vmem:[%s6268_s20 + $0x70] sm:$0xff]  }
 0x61c   :  { %v2094_v24 = vpop.f32.mrf.mxu0 }
 0x61d   :  { %v2146_v45 = vpack.c.bf16 %v2134_v55, %v2133_v36  ;;  %v2095_v28 = vadd.f32 %v2094_v24, %v6373_v30  ;;  %v5492_v36 = vld [vmem:[%s6268_s20 + $0x68] sm:$0xff]   ;;  %v5495_v55 = vld [vmem:[%s6268_s20 + $0x50] sm:$0xff]  }
 0x61e   :  { %v2096_v31 = vpop.f32.mrf.mxu0  ;;  %v5496_v24 = vld [vmem:[%s6268_s20 + $0x48] sm:$0xff]  }
 0x61f   :  { %v6455_v2 = vadd.f32 %v2096_v31, %v6376_v10  ;;  %5191 = vmatmul.mubr.bf16.gmra.mxu1 %v2146_v45  ;;  %v2135_v53 = vmul.f32 %v2095_v28, %v6379_v43  ;;  %v5497_v31 = vld [vmem:[%s6268_s20 + $0x40] sm:$0xff]  }
 0x620   :  { %v2098_v49 = vpop.f32.mrf.mxu0  ;;  %5194 = vmatprep.mubr.msk.bf16.mxu1 %vm5846_vm0, %v6916_v0 }
 0x621   :  { %v2099_v5 = vadd.f32 %v2098_v49, %v6373_v30 }
 0x622   :  { %v2100_v6 = vpop.f32.mrf.mxu0 }
 0x623   :  { %v2136_v35 = vmul.f32 %v2099_v5, %v6385_v56  ;;  %v6463_v17 = vadd.f32 %v2100_v6, %v6376_v10 }
 0x624   :  { %v2104_v58 = vpop.f32.mrf.mxu0 }
 0x625   :  { %v2147_v15 = vpack.c.bf16 %v2136_v35, %v2135_v53  ;;  %v2105_v4 = vadd.f32 %v2104_v58, %v6373_v30 }
 0x626   :  { %v2106_v63 = vpop.f32.mrf.mxu0 }
 0x627   :  { %v6467_v29 = vadd.f32 %v2106_v63, %v6376_v10  ;;  %5195 = vmatmul.mubr.bf16.gmra.mxu1 %v2147_v15  ;;  %v2137_v40 = vmul.f32 %v2105_v4, %v6379_v43 }
 0x628   :  { %v2108_v7 = vpop.f32.mrf.mxu0  ;;  %5198 = vmatprep.mubr.msk.bf16.mxu1 %vm5846_vm0, %v6916_v0 }
 0x629   :  { %v2109_v50 = vadd.f32 %v2108_v7, %v6373_v30 }
 0x62a   :  { %v2110_v26 = vpop.f32.mrf.mxu0 }
 0x62b   :  { %v2138_v59 = vmul.f32 %v2109_v50, %v6385_v56  ;;  %v6475_v12 = vadd.f32 %v2110_v26, %v6376_v10 }
 0x62c   :  { %v2114_v11 = vpop.f32.mrf.mxu0 }
 0x62d   :  { %v2115_v32 = vadd.f32 %v2114_v11, %v6373_v30  ;;  %v2148_v57 = vpack.c.bf16 %v2138_v59, %v2137_v40 }
 0x62e   :  { %v2116_v9 = vpop.f32.mrf.mxu0 }
 0x62f   :  { %v2139_v44 = vmul.f32 %v2115_v32, %v6379_v43  ;;  %v6480_v22 = vadd.f32 %v2116_v9, %v6376_v10  ;;  %5199 = vmatmul.mubr.bf16.gmra.mxu1 %v2148_v57  ;;  %v5490_v43 = vld [vmem:[%s6268_s20 + $0x78] sm:$0xff]  }
 0x630   :  { %v2118_v23 = vpop.f32.mrf.mxu0  ;;  %5202 = vmatprep.mubr.msk.bf16.mxu1 %vm5846_vm0, %v6916_v0  ;;  %5207 = vmatpush3.bf16.msra.mxu0 %v5490_v43 }
 0x631   :  { %v2119_v61 = vadd.f32 %v2118_v23, %v6373_v30  ;;  %5208 = vmatprep.subr.bf16.mxu0 %v6916_v0  ;;  %v5493_v30 = vld [vmem:[%s6268_s20 + $0x60] sm:$0xff]  }
 0x633   :  { %v2140_v34 = vmul.f32 %v2119_v61, %v6385_v56  ;;  %v5494_v56 = vld [vmem:[%s6268_s20 + $0x58] sm:$0xff]   ;;  %s6613_s20 = sld [smem:[%s6915_s0 + %s5864_s17]]  }
 0x634   :  { %5209 = vmatpush3.bf16.msra.mxu0 %v5491_v52 }
 0x635   :  { %v2149_v19 = vpack.c.bf16 %v2140_v34, %v2139_v44  ;;  %5210 = vmatprep.subr.bf16.mxu0 %v6916_v0 }
 0x637   :  { %5203 = vmatmul.mubr.bf16.gmra.mxu1 %v2149_v19 }
 0x638   :  { %2762 = vmatprep.mubr.bf16.mxu1 %v6920_v1  ;;  %5211 = vmatpush3.bf16.msra.mxu0 %v5492_v36 }
 0x639   :  { %5212 = vmatprep.subr.bf16.mxu0 %v6916_v0 }
 0x63c   :  { %5213 = vmatpush3.bf16.msra.mxu0 %v5493_v30 }
 0x63d   :  { %5214 = vmatprep.subr.bf16.mxu0 %v6916_v0 }
 0x640   :  { %5215 = vmatpush3.bf16.msra.mxu0 %v5494_v56 }
 0x641   :  { %5216 = vmatprep.subr.bf16.mxu0 %v6916_v0 }
 0x644   :  { %5217 = vmatpush3.bf16.msra.mxu0 %v5495_v55 }
 0x645   :  { %5218 = vmatprep.subr.bf16.mxu0 %v6916_v0 }
 0x648   :  { %5219 = vmatpush3.bf16.msra.mxu0 %v5496_v24 }
 0x649   :  { %5220 = vmatprep.subr.bf16.mxu0 %v6916_v0 }
 0x64c   :  { %5221 = vmatpush3.bf16.msra.mxu0 %v5497_v31 }
 0x6b7   :  { %v2184_v45 = vpop.f32.mrf.mxu1 }
 0x6b9   :  { %v5172_v28 = vpop.f32.mrf.mxu1 }
 0x6bb   :  { %v6502_v49 = vpop.f32.mrf.mxu1 }
 0x6bd   :  { %v5173_v5 = vpop.f32.mrf.mxu1 }
 0x6bf   :  { %v2192_v6 = vpop.f32.mrf.mxu1 }
 0x6c0   :  { %v2255_v52 = vmax.f32 %v2184_v45, %v2192_v6 }
 0x6c1   :  { %v5176_v53 = vpop.f32.mrf.mxu1 }
 0x6c3   :  { %v6504_v35 = vpop.f32.mrf.mxu1 }
 0x6c4   :  { %v2256_v24 = vmax.f32 %v6502_v49, %v6504_v35 }
 0x6c5   :  { %v5177_v58 = vpop.f32.mrf.mxu1 }
 0x6c7   :  { %v2200_v15 = vpop.f32.mrf.mxu1 }
 0x6c8   :  { %v2257_v30 = vmax.f32 %v2255_v52, %v2200_v15 }
 0x6c9   :  { %v5180_v63 = vpop.f32.mrf.mxu1 }
 0x6cb   :  { %v6506_v4 = vpop.f32.mrf.mxu1 }
 0x6cc   :  { %v2258_v5 = vmax.f32 %v2256_v24, %v6506_v4 }
 0x6cd   :  { %v5181_v7 = vpop.f32.mrf.mxu1 }
 0x6cf   :  { %v2208_v50 = vpop.f32.mrf.mxu1 }
 0x6d0   :  { %v2259_v55 = vmax.f32 %v2257_v30, %v2208_v50 }
 0x6d1   :  { %v5184_v26 = vpop.f32.mrf.mxu1 }
 0x6d3   :  { %v6508_v40 = vpop.f32.mrf.mxu1 }
 0x6d4   :  { %v2260_v63 = vmax.f32 %v2258_v5, %v6508_v40 }
 0x6d5   :  { %v5185_v59 = vpop.f32.mrf.mxu1 }
 0x6d7   :  { %v2216_v11 = vpop.f32.mrf.mxu1 }
 0x6d8   :  { %v2261_v28 = vmax.f32 %v2259_v55, %v2216_v11 }
 0x6d9   :  { %v5188_v32 = vpop.f32.mrf.mxu1 }
 0x6db   :  { %v6510_v57 = vpop.f32.mrf.mxu1 }
 0x6dc   :  { %v2262_v59 = vmax.f32 %v2260_v63, %v6510_v57 }
 0x6dd   :  { %v5189_v9 = vpop.f32.mrf.mxu1 }
 0x6df   :  { %v2224_v44 = vpop.f32.mrf.mxu1 }
 0x6e0   :  { %v2263_v58 = vmax.f32 %v2261_v28, %v2224_v44 }
 0x6e1   :  { %v5192_v23 = vpop.f32.mrf.mxu1 }
 0x6e3   :  { %v6512_v61 = vpop.f32.mrf.mxu1 }
 0x6e4   :  { %v2264_v23 = vmax.f32 %v2262_v59, %v6512_v61 }
 0x6e5   :  { %v5193_v34 = vpop.f32.mrf.mxu1 }
 0x6e7   :  { %v2232_v19 = vpop.f32.mrf.mxu1 }
 0x6e8   :  { %v2265_v26 = vmax.f32 %v2263_v58, %v2232_v19 }
 0x6e9   :  { %v5196_v43 = vpop.f32.mrf.mxu1 }
 0x6eb   :  { %v6514_v36 = vpop.f32.mrf.mxu1 }
 0x6ec   :  { %v2266_v52 = vmax.f32 %v2264_v23, %v6514_v36 }
 0x6ed   :  { %v5197_v56 = vpop.f32.mrf.mxu1 }
 0x6ef   :  { %v2240_v31 = vpop.f32.mrf.mxu1 }
 0x6f0   :  { %v2267_v9 = vmax.f32 %v2265_v26, %v2240_v31 }
 0x6f1   :  { %v5200_v53 = vpop.f32.mrf.mxu1 }
 0x6f3   :  { %v6520_v7 = vpop.f32.mrf.mxu1 }
 0x6f4   :  { %v2268_v5 = vmax.f32 %v2266_v52, %v6520_v7 }
 0x6f5   :  { %v5201_v32 = vpop.f32.mrf.mxu1 }
 0x6f7   :  { %v2248_v34 = vpop.f32.mrf.mxu1 }
 0x6f8   :  { %v2269_v43 = vmax.f32 %v2267_v9, %v2248_v34 }
 0x6f9   :  { %v5204_v30 = vpop.f32.mrf.mxu1 }
 0x6fa   :  { %v2271_v56 = vsub.f32 %v2184_v45, %v2269_v43  ;;  %v2283_v55 = vsub.f32 %v2192_v6, %v2269_v43  ;;  %v2295_v24 = vsub.f32 %v2200_v15, %v2269_v43  ;;  %v2307_v28 = vsub.f32 %v2208_v50, %v2269_v43 }
 0x6fb   :  { %v2319_v53 = vsub.f32 %v2216_v11, %v2269_v43  ;;  %v2251_v0 = vpop.f32.mrf.mxu1  ;;  %v2331_v32 = vsub.f32 %v2224_v44, %v2269_v43  ;;  %v2343_v37 = vsub.f32 %v2232_v19, %v2269_v43  ;;  %v2355_v9 = vsub.f32 %v2240_v31, %v2269_v43 }
 0x6fc   :  { %v2273_v58 = vmul.f32 1.442695, %v2271_v56  ;;  %v2285_v21 = vmul.f32 1.442695, %v2283_v55  ;;  %v2297_v63 = vmul.f32 1.442695, %v2295_v24  ;;  %v2270_v59 = vmax.f32 %v2268_v5, %v2251_v0 }
 0x6fd   :  { %v2309_v26 = vmul.f32 1.442695, %v2307_v28  ;;  %v5205_v1 = vpop.f32.mrf.mxu1  ;;  %v2321_v23 = vmul.f32 1.442695, %v2319_v53  ;;  %v2333_v6 = vmul.f32 1.442695, %v2331_v32  ;;  %v2367_v19 = vsub.f32 %v2248_v34, %v2269_v43 }
 0x6fe   :  { %5747 = vpow2.f32 %v2273_v58  ;;  %v2272_v45 = vsub.f32 %v6502_v49, %v2270_v59  ;;  %v2284_v15 = vsub.f32 %v6504_v35, %v2270_v59  ;;  %v2345_v50 = vmul.f32 1.442695, %v2343_v37 }
 0x6ff   :  { %5749 = vpow2.f32 %v2285_v21  ;;  %v2296_v11 = vsub.f32 %v6506_v4, %v2270_v59  ;;  %v2357_v52 = vmul.f32 1.442695, %v2355_v9  ;;  %v2308_v44 = vsub.f32 %v6508_v40, %v2270_v59 }
 0x700   :  { %5751 = vpow2.f32 %v2297_v63  ;;  %v2275_v1 = vmul.f32 1.442695, %v2272_v45  ;;  %v2287_v31 = vmul.f32 1.442695, %v2284_v15  ;;  %v2320_v21 = vsub.f32 %v6510_v57, %v2270_v59 }
 0x701   :  { %5753 = vpow2.f32 %v2309_v26  ;;  %v2299_v49 = vmul.f32 1.442695, %v2296_v11  ;;  %v2311_v30 = vmul.f32 1.442695, %v2308_v44  ;;  %v2332_v35 = vsub.f32 %v6512_v61, %v2270_v59 }
 0x702   :  { %5755 = vpow2.f32 %v2321_v23  ;;  %v2369_v56 = vmul.f32 1.442695, %v2367_v19  ;;  %v2323_v37 = vmul.f32 1.442695, %v2320_v21  ;;  %v2344_v4 = vsub.f32 %v6514_v36, %v2270_v59 }
 0x703   :  { %5757 = vpow2.f32 %v2333_v6  ;;  %v2335_v40 = vmul.f32 1.442695, %v2332_v35  ;;  %v2356_v34 = vsub.f32 %v6520_v7, %v2270_v59  ;;  %v2368_v24 = vsub.f32 %v2251_v0, %v2270_v59 }
 0x704   :  { %5759 = vpow2.f32 %v2345_v50  ;;  %v2347_v55 = vmul.f32 1.442695, %v2344_v4 }
 0x705   :  { %5761 = vpow2.f32 %v2357_v52  ;;  %v2359_v36 = vmul.f32 1.442695, %v2356_v34  ;;  %v2371_v9 = vmul.f32 1.442695, %v2368_v24 }
 0x706   :  { %5763 = vpow2.f32 %v2275_v1 }
 0x707   :  { %5765 = vpow2.f32 %v2287_v31 }
 0x708   :  { %5767 = vpow2.f32 %v2299_v49 }
 0x709   :  { %5769 = vpow2.f32 %v2311_v30 }
 0x70a   :  { %5771 = vpow2.f32 %v2369_v56 }
 0x70b   :  { %v5748_v43 = vpop.eup %5747  ;;  %5773 = vpow2.f32 %v2323_v37 }
 0x70c   :  { %v5750_v57 = vpop.eup %5749  ;;  %v2279_v28 = vmul.f32 %v5748_v43, %v6383_v33  ;;  %5775 = vpow2.f32 %v2335_v40 }
 0x70d   :  { %v5752_v61 = vpop.eup %5751  ;;  %v2289_v5 = vadd.f32 %v5750_v57, %v5748_v43  ;;  %v2291_v53 = vmul.f32 %v5750_v57, %v6395_v16  ;;  %5777 = vpow2.f32 %v2347_v55 }
 0x70e   :  { %v5754_v58 = vpop.eup %5753  ;;  %v2303_v26 = vmul.f32 %v5752_v61, %v6407_v8  ;;  %5779 = vpow2.f32 %v2359_v36 }
 0x70f   :  { %v2301_v63 = vadd.f32 %v5752_v61, %v2289_v5  ;;  %v2293_v32 = vadd.f32 %v2291_v53, %v2279_v28  ;;  %v5756_v7 = vpop.eup %5755  ;;  %v2315_v0 = vmul.f32 %v5754_v58, %v6419_v60  ;;  %5781 = vpow2.f32 %v2371_v9 }
 0x710   :  { %v5758_v23 = vpop.eup %5757  ;;  %v2327_v50 = vmul.f32 %v5756_v7, %v6431_v27 }
 0x711   :  { %v2313_v45 = vadd.f32 %v5754_v58, %v2301_v63  ;;  %v2305_v6 = vadd.f32 %v2303_v26, %v2293_v32  ;;  %v5760_v33 = vpop.eup %5759  ;;  %v2339_v1 = vmul.f32 %v5758_v23, %v6443_v14 }
 0x712   :  { %v5762_v59 = vpop.eup %5761  ;;  %v2351_v56 = vmul.f32 %v5760_v33, %v6455_v2 }
 0x713   :  { %v2325_v15 = vadd.f32 %v5756_v7, %v2313_v45  ;;  %v2317_v16 = vadd.f32 %v2315_v0, %v2305_v6  ;;  %v5764_v11 = vpop.eup %5763  ;;  %v2363_v57 = vmul.f32 %v5762_v59, %v6467_v29  ;;  %v2120_v7 = vpop.f32.mrf.mxu0 }
 0x714   :  { %v5766_v52 = vpop.eup %5765  ;;  %v2280_v8 = vmul.f32 %v5764_v11, %v6391_v41 }
 0x715   :  { %v2337_v44 = vadd.f32 %v5758_v23, %v2325_v15  ;;  %v2329_v19 = vadd.f32 %v2327_v50, %v2317_v16  ;;  %v5768_v31 = vpop.eup %5767  ;;  %v2290_v21 = vadd.f32 %v5766_v52, %v5764_v11  ;;  %v2292_v60 = vmul.f32 %v5766_v52, %v6403_v46 }
 0x716   :  { %v5770_v49 = vpop.eup %5769  ;;  %v2304_v40 = vmul.f32 %v5768_v31, %v6415_v13 }
 0x717   :  { %v2349_v30 = vadd.f32 %v5760_v33, %v2337_v44  ;;  %v2341_v35 = vadd.f32 %v2339_v1, %v2329_v19  ;;  %v5772_v37 = vpop.eup %5771  ;;  %v2302_v27 = vadd.f32 %v5768_v31, %v2290_v21  ;;  %v2294_v4 = vadd.f32 %v2292_v60, %v2280_v8  ;;  %v4630_v8 = vld [vmem:[%s6370_s6 + $0x1] ss:$0 sm:$0xff]  ;;  %s6683_s6 = sld [smem:[%s6915_s0 + %s5868_s3]]  }
 0x718   :  { %v5774_v34 = vpop.eup %5773  ;;  %v2316_v24 = vmul.f32 %v5770_v49, %v6427_v18  ;;  %v2375_v61 = vmul.f32 %v5772_v37, %v6480_v22  ;;  %v2121_v22 = vadd.f32 %v2120_v7, %v6376_v10  ;;  %v6923_v31 = vunpack.c.l.bf16 %v5938_v25  ;;  %v5516_v7 = vld [vmem:[%s6561_s10 + $0x40] ss:$16 sps:$4 sm:$0xff]  }
 0x719   :  { %v2361_v43 = vadd.f32 %v5762_v59, %v2349_v30  ;;  %v2353_v41 = vadd.f32 %v2351_v56, %v2341_v35  ;;  %v2314_v14 = vadd.f32 %v5770_v49, %v2302_v27  ;;  %v2306_v55 = vadd.f32 %v2304_v40, %v2294_v4  ;;  %v5776_v46 = vpop.eup %5775  ;;  %v5498_v56 = vld [vmem:[%s6561_s10 + $0xe0] ss:$16 sps:$4 sm:$0xff]   ;;  %v5506_v4 = vld [vmem:[%s6561_s10 + $0xa4] ss:$16 sps:$4 sm:$0xff]  }
 0x71a   :  { %v2328_v58 = vmul.f32 %v5774_v34, %v6439_v20  ;;  %v5778_v36 = vpop.eup %5777  ;;  %v2340_v29 = vmul.f32 %v5776_v46, %v6451_v39  ;;  %v6924_v30 = vunpack.c.h.bf16 %v5938_v25  ;;  %v5500_v25 = vld [vmem:[%s6561_s10 + $0xe4] ss:$16 sps:$4 sm:$0xff]   ;;  %v5501_v27 = vld [vmem:[%s6561_s10 + $0xc0] ss:$16 sps:$4 sm:$0xff]  }
 0x71b   :  { %v2373_v28 = vadd.f32 %v5772_v37, %v2361_v43  ;;  %v2365_v5 = vadd.f32 %v2363_v57, %v2353_v41  ;;  %v2326_v2 = vadd.f32 %v5774_v34, %v2314_v14  ;;  %v2318_v53 = vadd.f32 %v2316_v24, %v2306_v55  ;;  %v5780_v26 = vpop.eup %5779  ;;  %v5503_v37 = vld [vmem:[%s6561_s10 + $0xc4] ss:$16 sps:$4 sm:$0xff]   ;;  %2730 = vmatprep.subr.bf16.mxu1 %v5500_v25  ;;  %v5504_v40 = vld [vmem:[%s6561_s10 + $0xa0] ss:$16 sps:$4 sm:$0xff]   ;;  %v5513_v43 = vld [vmem:[%s6561_s10 + $0xe8] ss:$16 sps:$4 sm:$0xff]  }
 0x71c   :  { %v2352_v23 = vmul.f32 %v5778_v36, %v6463_v17  ;;  %v5782_v45 = vpop.eup %5781  ;;  %v2364_v20 = vmul.f32 %v5780_v26, %v6475_v12  ;;  %v6922_v17 = vmov 0   ;;  %2731 = vmatpush1.bf16.msra.mxu1 %v5498_v56  ;;  %v5509_v34 = vld [vmem:[%s6561_s10 + $0x84] ss:$16 sps:$4 sm:$0xff]   ;;  %v5515_v41 = vld [vmem:[%s6561_s10 + $0xec] ss:$16 sps:$4 sm:$0xff]  }
 0x71d   :  { %5783 = vrcp.f32 %v2373_v28  ;;  %v2377_v13 = vadd.f32 %v2375_v61, %v2365_v5  ;;  %v2338_v63 = vadd.f32 %v5776_v46, %v2326_v2  ;;  %v2330_v32 = vadd.f32 %v2328_v58, %v2318_v53  ;;  %2732 = vmatprep.subr.bf16.mxu1 %v5503_v37  ;;  %2773 = vmatprep.subr.bf16.mxu0 %v5515_v41  ;;  %v5507_v57 = vld [vmem:[%s6561_s10 + $0x80] ss:$16 sps:$4 sm:$0xff]   ;;  %v5512_v14 = vld [vmem:[%s6561_s10 + $0x64] ss:$16 sps:$4 sm:$0xff]  }
 0x71e   :  { %v2376_v59 = vmul.f32 %v5782_v45, %v2121_v22  ;;  %v5510_v55 = vld [vmem:[%s6561_s10 + $0x60] ss:$16 sps:$4 sm:$0xff]   ;;  %v5530_v22 = vld [vmem:[%s6561_s10 + $0x24] ss:$16 sps:$4 sm:$0xff]  }
 0x71f   :  { %v2350_v9 = vadd.f32 %v5778_v36, %v2338_v63  ;;  %v2342_v18 = vadd.f32 %v2340_v29, %v2330_v32  ;;  %v5521_v36 = vld [vmem:[%s6561_s10 + $0xcc] ss:$16 sps:$4 sm:$0xff]   ;;  %v5522_v32 = vld [vmem:[%s6561_s10 + $0xa8] ss:$16 sps:$4 sm:$0xff]   ;;  %v5552_v41 = vld [vmem:[%s6606_s16 + $0x30] sm:$0xff]  }
 0x720   :  { %2733 = vmatpush1.bf16.msra.mxu1 %v5501_v27  ;;  %v5524_v63 = vld [vmem:[%s6561_s10 + $0xac] ss:$16 sps:$4 sm:$0xff]  }
 0x721   :  { %v2362_v6 = vadd.f32 %v5780_v26, %v2350_v9  ;;  %v2354_v0 = vadd.f32 %v2352_v23, %v2342_v18  ;;  %2734 = vmatprep.subr.bf16.mxu1 %v5506_v4  ;;  %v5527_v29 = vld [vmem:[%s6561_s10 + $0x8c] ss:$16 sps:$4 sm:$0xff]   ;;  %v5525_v26 = vld [vmem:[%s6561_s10 + $0x88] ss:$16 sps:$4 sm:$0xff]   ;;  %v5518_v9 = vld [vmem:[%s6561_s10 + $0x44] ss:$16 sps:$4 sm:$0xff]  }
 0x722   :  { %v5533_v18 = vld [vmem:[%s6561_s10 + $0x6c] ss:$16 sps:$4 sm:$0xff]   ;;  %v5531_v23 = vld [vmem:[%s6561_s10 + $0x68] ss:$16 sps:$4 sm:$0xff]  }
 0x723   :  { %v2374_v33 = vadd.f32 %v5782_v45, %v2362_v6  ;;  %v2366_v15 = vadd.f32 %v2364_v20, %v2354_v0  ;;  %v5528_v45 = vld [vmem:[%s6561_s10 + $0x20] ss:$16 sps:$4 sm:$0xff]   ;;  %v5534_v6 = vld [vmem:[%s6561_s10 + $0x48] ss:$16 sps:$4 sm:$0xff]   ;;  %v5536_v0 = vld [vmem:[%s6561_s10 + $0x4c] ss:$16 sps:$4 sm:$0xff]  }
 0x724   :  { %2735 = vmatpush1.bf16.msra.mxu1 %v5504_v40  ;;  %v5539_v20 = vld [vmem:[%s6561_s10 + $0x4] ss:$16 sps:$4 sm:$0xff]   ;;  %v5548_v27 = vld [vmem:[%s6606_s16 + $0x38] sm:$0xff]  }
 0x725   :  { %5785 = vrcp.f32 %v2374_v33  ;;  %v2378_v16 = vadd.f32 %v2376_v59, %v2366_v15  ;;  %2736 = vmatprep.subr.bf16.mxu1 %v5509_v34  ;;  %v5542_v33 = vld [vmem:[%s6561_s10 + $0x2c] ss:$16 sps:$4 sm:$0xff]   ;;  %v5537_v59 = vld [vmem:[%s6561_s10] ss:$16 sps:$4 sm:$0xff]   ;;  %v5540_v15 = vld [vmem:[%s6561_s10 + $0x28] ss:$16 sps:$4 sm:$0xff]  }
 0x726   :  { %v5549_v4 = vld [vmem:[%s6606_s16 + $0xb8] sm:$0xff]   ;;  %v5550_v34 = vld [vmem:[%s6606_s16 + $0x70] sm:$0xff]  }
 0x728   :  { %2737 = vmatpush1.bf16.msra.mxu1 %v5507_v57  ;;  %v5553_v57 = vld [vmem:[%s6606_s16 + $0xb0] sm:$0xff]  }
 0x729   :  { %2738 = vmatprep.subr.bf16.mxu1 %v5512_v14  ;;  %v5554_v14 = vld [vmem:[%s6606_s16 + $0x68] sm:$0xff]  }
 0x72a   :  { %v5784_v39 = vpop.eup %5783 }
 0x72b   :  { %v2381_v50 = vmul.f32 %v5784_v39, %v2377_v13  ;;  %v5519_v13 = vld [vmem:[%s6561_s10 + $0xc8] ss:$16 sps:$4 sm:$0xff]  }
 0x72c   :  { %2739 = vmatpush1.bf16.msra.mxu1 %v5510_v55  ;;  %v5543_v39 = vld [vmem:[%s6561_s10 + $0x8] ss:$16 sps:$4 sm:$0xff]  }
 0x72d   :  { %2740 = vmatprep.subr.bf16.mxu1 %v5518_v9  ;;  %v5555_v55 = vld [vmem:[%s6606_s16 + $0xe8] sm:$0xff]  }
 0x72e   :  { %v5571_v9 = vld [vmem:[%s6606_s16 + $0xc8] sm:$0xff]  }
 0x730   :  { %2741 = vmatpush1.bf16.msra.mxu1 %v5516_v7  ;;  %v5570_v7 = vld [vmem:[%s6606_s16 + $0x48] sm:$0xff]  }
 0x731   :  { %2742 = vmatprep.subr.bf16.mxu1 %v5530_v22  ;;  %v5575_v22 = vld [vmem:[%s6606_s16 + $0xc0] sm:$0xff]  }
 0x732   :  { %v5786_v11 = vpop.eup %5785 }
 0x733   :  { %v2382_v52 = vmul.f32 %v5786_v11, %v2378_v16  ;;  %v5545_v16 = vld [vmem:[%s6561_s10 + $0xc] ss:$16 sps:$4 sm:$0xff]   ;;  %s5870_s10 = smov 22  }
 0x734   :  { %2743 = vmatpush1.bf16.msra.mxu1 %v5528_v45  ;;  %v5547_v11 = vld [vmem:[%s6606_s16 + $0xf8] sm:$0xff]   ;;  %v5574_v45 = vld [vmem:[%s6606_s16 + $0x40] sm:$0xff]   ;;  %s6764_s15 = sld [smem:[%s6915_s0 + %s5870_s10]]  }
 0x735   :  { %v2383_v44 = vpack.c.bf16 %v2382_v52, %v2381_v50  ;;  %2744 = vmatprep.subr.bf16.mxu1 %v5539_v20  ;;  %v5546_v50 = vld [vmem:[%s6606_s16 + $0x78] sm:$0xff]   ;;  %v6925_v20 = vmov 0.0  }
 0x737   :  { %5223 = vmatmul.mubr.bf16.vlgmr.msra.gmra.mxu0 %v2383_v44 }
 0x738   :  { %2805 = vmatprep.mubr.bf16.mxu0 %v6922_v17  ;;  %2774 = vmatpush1.bf16.msra.mxu0 %v5513_v43  ;;  %v5551_v43 = vld [vmem:[%s6606_s16 + $0xf0] sm:$0xff]  }
 0x739   :  { %2775 = vmatprep.subr.bf16.mxu0 %v5521_v36  ;;  %2745 = vmatpush1.bf16.msra.mxu1 %v5537_v59  ;;  %v5564_v36 = vld [vmem:[%s6606_s16 + $0x18] sm:$0xff]  }
 0x73a   :  { %4942 = vmatprep.subr.bf16.mxu1 %v5546_v50 }
 0x73c   :  { %2776 = vmatpush1.bf16.msra.mxu0 %v5519_v13  ;;  %v5565_v13 = vld [vmem:[%s6606_s16 + $0x98] sm:$0xff]  }
 0x73d   :  { %2777 = vmatprep.subr.bf16.mxu0 %v5524_v63  ;;  %v5566_v63 = vld [vmem:[%s6606_s16 + $0x50] sm:$0xff]  }
 0x740   :  { %2778 = vmatpush1.bf16.msra.mxu0 %v5522_v32  ;;  %v5567_v32 = vld [vmem:[%s6606_s16 + $0xd0] sm:$0xff]  }
 0x741   :  { %2779 = vmatprep.subr.bf16.mxu0 %v5527_v29  ;;  %v5568_v29 = vld [vmem:[%s6606_s16 + $0x10] sm:$0xff]  }
 0x744   :  { %2780 = vmatpush1.bf16.msra.mxu0 %v5525_v26  ;;  %v5569_v26 = vld [vmem:[%s6606_s16 + $0x90] sm:$0xff]  }
 0x745   :  { %2781 = vmatprep.subr.bf16.mxu0 %v5533_v18  ;;  %v5572_v18 = vld [vmem:[%s6606_s16 + $0x8] sm:$0xff]  }
 0x748   :  { %2782 = vmatpush1.bf16.msra.mxu0 %v5531_v23  ;;  %v5573_v23 = vld [vmem:[%s6606_s16 + $0x88] sm:$0xff]  }
 0x749   :  { %2783 = vmatprep.subr.bf16.mxu0 %v5536_v0  ;;  %v5577_v0 = vld [vmem:[%s6606_s16 + $0x80] sm:$0xff]  }
 0x74c   :  { %2784 = vmatpush1.bf16.msra.mxu0 %v5534_v6  ;;  %v5576_v6 = vld [vmem:[%s6606_s16] sm:$0xff]  }
 0x74d   :  { %2785 = vmatprep.subr.bf16.mxu0 %v5542_v33  ;;  %v2548_v33 = vld [vmem:[%s4437_s25] sm:$0xf] }
 0x74e   :  { %v2553_v50 = vrot.slane %v2548_v33, %v5983_v47 }
 0x750   :  { %2786 = vmatpush1.bf16.msra.mxu0 %v5540_v15 }
 0x751   :  { %2787 = vmatprep.subr.bf16.mxu0 %v5545_v16  ;;  %v2557_v16 = vrot.slane %v2548_v33, %v5986_v48 }
 0x754   :  { %2788 = vmatpush1.bf16.msra.mxu0 %v5543_v39  ;;  %v2565_v39 = vrot.slane %v2548_v33, %v6276_v3 }
 0x755   :  { %4964 = vmatprep.subr.bf16.mxu0 %v5547_v11  ;;  %v2561_v11 = vrot.slane %v2548_v33, %v6279_v51  ;;  %v1726_v33 = vadd.f32 %v6360_v62, %v6224_v42  ;;  %v5578_v42 = vld [vmem:[%s6678_s2 + $0x70] ss:$8 sps:$4 sm:$0xff]   ;;  %v5580_v62 = vld [vmem:[%s6678_s2 + $0x74] ss:$8 sps:$4 sm:$0xff]  }
 0x7f7   :  { %v2470_v10 = vpop.f32.mrf.mxu0 }
 0x7f8   :  { %v2471_v19 = vadd.f32 %v4630_v8, %v2470_v10 }
 0x7f9   :  { %v5224_v1 = vpop.f32.mrf.mxu0 }
 0x7fa   :  { %v2477_v12 = vadd.f32 %v2471_v19, %v6923_v31 }
 0x7fb   :  { %v2473_v21 = vpop.f32.mrf.mxu0 }
 0x7fc   :  { %v2474_v60 = vadd.f32 %v4630_v8, %v2473_v21  ;;  %2481 = vadd.xlane.f32.xlu0 %v2477_v12  ;;  %v4639_v21 = vld [vmem:[%s6613_s20] ss:$0 sm:$0xff] }
 0x7fd   :  { %v5225_v49 = vpop.f32.mrf.mxu0 }
 0x7fe   :  { %v2478_v35 = vadd.f32 %v2474_v60, %v6924_v30 }
 0x800   :  { %2483 = vadd.xlane.f32.xlu1 %v2478_v35 }
 0x885   :  { %v2482_v24 = vpop.xlane.xlu0 %2481 }
 0x886   :  { %v2485_v46 = vmul.f32 0.0078125, %v2482_v24  ;;  %v5556_v24 = vld [vmem:[%s6606_s16 + $0x28] sm:$0xff]  }
 0x888   :  { %v6575_v28 = vsub.f32 %v2477_v12, %v2485_v46  ;;  %v5557_v46 = vld [vmem:[%s6606_s16 + $0xa8] sm:$0xff]  }
 0x889   :  { %v2484_v61 = vpop.xlane.xlu1 %2483 }
 0x88a   :  { %v2486_v5 = vmul.f32 0.0078125, %v2484_v61  ;;  %v2489_v2 = vmul.f32 %v6575_v28, %v6575_v28  ;;  %v5559_v61 = vld [vmem:[%s6606_s16 + $0xe0] sm:$0xff]  }
 0x88c   :  { %v6579_v53 = vsub.f32 %v2478_v35, %v2486_v5  ;;  %2491 = vadd.xlane.f32.xlu0 %v2489_v2  ;;  %v4640_v35 = vld [vmem:[%s6613_s20 + $0x1] ss:$0 sm:$0xff] }
 0x88d   :  { %v5560_v5 = vld [vmem:[%s6606_s16 + $0x20] sm:$0xff]  }
 0x88e   :  { %v2490_v58 = vmul.f32 %v6579_v53, %v6579_v53  ;;  %v5561_v2 = vld [vmem:[%s6606_s16 + $0xa0] sm:$0xff]  }
 0x890   :  { %2493 = vadd.xlane.f32.xlu1 %v2490_v58  ;;  %v5563_v58 = vld [vmem:[%s6606_s16 + $0xd8] sm:$0xff]  }
 0x915   :  { %v2492_v52 = vpop.xlane.xlu0 %2491 }
 0x916   :  { %v2495_v44 = vmul.f32 0.0078125, %v2492_v52 }
 0x918   :  { %v2497_v8 = vadd.f32 1e-05, %v2495_v44 }
 0x919   :  { %v2494_v10 = vpop.xlane.xlu1 %2493 }
 0x91a   :  { %5787 = vrsqrt.f32 %v2497_v8  ;;  %v2496_v19 = vmul.f32 0.0078125, %v2494_v10 }
 0x91c   :  { %v2498_v1 = vadd.f32 1e-05, %v2496_v19 }
 0x91e   :  { %5789 = vrsqrt.f32 %v2498_v1 }
 0x927   :  { %v5788_v31 = vpop.eup %5787 }
 0x928   :  { %v2501_v12 = vmul.f32 %v5788_v31, %v6575_v28  ;;  %v5558_v28 = vld [vmem:[%s6606_s16 + $0x60] sm:$0xff]  }
 0x92a   :  { %v2507_v30 = vmul.f32 %v4639_v21, %v2501_v12 }
 0x92b   :  { %v5790_v60 = vpop.eup %5789 }
 0x92c   :  { %v2502_v49 = vmul.f32 %v5790_v60, %v6579_v53  ;;  %v6619_v25 = vadd.f32 %v4640_v35, %v2507_v30  ;;  %v5562_v53 = vld [vmem:[%s6606_s16 + $0x58] sm:$0xff]  }
 0x92e   :  { %v2508_v56 = vmul.f32 %v4639_v21, %v2502_v49 }
 0x930   :  { %v6621_v37 = vadd.f32 %v4640_v35, %v2508_v56 }
 0x932   :  { %v2515_v40 = vpack.c.bf16 %v6621_v37, %v6619_v25 }
 0x934   :  { %2763 = vmatmul.mubr.bf16.vlgmr.msra.gmra.mxu1 %v2515_v40  ;;  %2806 = vmatmul.mubr.bf16.vlgmr.msra.gmra.mxu0 %v2515_v40 }
 0x935   :  { %4943 = vmatpush3.bf16.msra.mxu1 %v5548_v27  ;;  %4965 = vmatpush3.bf16.msra.mxu0 %v5549_v4 }
 0x936   :  { %4944 = vmatprep.subr.bf16.mxu1 %v5550_v34  ;;  %4966 = vmatprep.subr.bf16.mxu0 %v5551_v43 }
 0x939   :  { %4945 = vmatpush3.bf16.msra.mxu1 %v5552_v41  ;;  %4967 = vmatpush3.bf16.msra.mxu0 %v5553_v57 }
 0x93a   :  { %4946 = vmatprep.subr.bf16.mxu1 %v5554_v14  ;;  %4968 = vmatprep.subr.bf16.mxu0 %v5555_v55 }
 0x93d   :  { %4947 = vmatpush3.bf16.msra.mxu1 %v5556_v24  ;;  %4969 = vmatpush3.bf16.msra.mxu0 %v5557_v46 }
 0x93e   :  { %4948 = vmatprep.subr.bf16.mxu1 %v5558_v28  ;;  %4970 = vmatprep.subr.bf16.mxu0 %v5559_v61 }
 0x941   :  { %4949 = vmatpush3.bf16.msra.mxu1 %v5560_v5  ;;  %4971 = vmatpush3.bf16.msra.mxu0 %v5561_v2  ;;  %v4673_v2 = vld [vmem:[%s4439_s29] ss:$0 sm:$0xff] }
 0x942   :  { %4950 = vmatprep.subr.bf16.mxu1 %v5562_v53  ;;  %4972 = vmatprep.subr.bf16.mxu0 %v5563_v58 }
 0x945   :  { %4951 = vmatpush3.bf16.msra.mxu1 %v5564_v36  ;;  %4973 = vmatpush3.bf16.msra.mxu0 %v5565_v13 }
 0x946   :  { %4952 = vmatprep.subr.bf16.mxu1 %v5566_v63  ;;  %4974 = vmatprep.subr.bf16.mxu0 %v5567_v32 }
 0x949   :  { %4953 = vmatpush3.bf16.msra.mxu1 %v5568_v29  ;;  %4975 = vmatpush3.bf16.msra.mxu0 %v5569_v26 }
 0x94a   :  { %4954 = vmatprep.subr.bf16.mxu1 %v5570_v7  ;;  %4976 = vmatprep.subr.bf16.mxu0 %v5571_v9 }
 0x94d   :  { %4955 = vmatpush3.bf16.msra.mxu1 %v5572_v18  ;;  %4977 = vmatpush3.bf16.msra.mxu0 %v5573_v23 }
 0x94e   :  { %4956 = vmatprep.subr.bf16.mxu1 %v5574_v45  ;;  %4978 = vmatprep.subr.bf16.mxu0 %v5575_v22 }
 0x951   :  { %4957 = vmatpush3.bf16.msra.mxu1 %v5576_v6  ;;  %4979 = vmatpush3.bf16.msra.mxu0 %v5577_v0 }
 0x952   :  { %5226 = vmatprep.subr.bf16.mxu1 %v6925_v20  ;;  %3449 = vmatprep.subr.bf16.mxu0 %v5580_v62 }
 0x9f4   :  { %v2764_v59 = vpop.f32.mrf.mxu1  ;;  %v2807_v15 = vpop.f32.mrf.mxu0 }
 0x9f5   :  { %v2765_v21 = vadd.f32 %v2764_v59, %v2553_v50  ;;  %v2808_v60 = vadd.f32 %v2807_v15, %v2561_v11  ;;  %v1727_v59 = vadd.f32 %v6362_v54, %v6226_v38 }
 0x9f6   :  { %v2766_v52 = vpop.f32.mrf.mxu1  ;;  %v2809_v44 = vpop.f32.mrf.mxu0 }
 0x9f7   :  { %v2767_v19 = vadd.f32 %v2766_v52, %v2557_v16  ;;  %v2810_v1 = vadd.f32 %v2809_v44, %v2565_v39  ;;  %v2816_v57 = vmax.f32 %v2765_v21, 0.0  ;;  %v2818_v14 = vmax.f32 %v2808_v60, 0.0  ;;  %v5582_v21 = vld [vmem:[%s6678_s2 + $0x60] ss:$8 sps:$4 sm:$0xff]   ;;  %v5584_v60 = vld [vmem:[%s6678_s2 + $0x64] ss:$8 sps:$4 sm:$0xff]  }
 0x9f8   :  { %v2768_v8 = vpop.f32.mrf.mxu1  ;;  %v2811_v10 = vpop.f32.mrf.mxu0 }
 0x9f9   :  { %v2769_v31 = vadd.f32 %v2768_v8, %v2553_v50  ;;  %v2812_v12 = vadd.f32 %v2811_v10, %v2561_v11  ;;  %v2817_v40 = vmax.f32 %v2767_v19, 0.0  ;;  %v2819_v34 = vmax.f32 %v2810_v1, 0.0 }
 0x9fa   :  { %v2770_v49 = vpop.f32.mrf.mxu1  ;;  %v2813_v30 = vpop.f32.mrf.mxu0 }
 0x9fb   :  { %v2771_v35 = vadd.f32 %v2770_v49, %v2557_v16  ;;  %v2814_v56 = vadd.f32 %v2813_v30, %v2565_v39  ;;  %v2820_v27 = vmax.f32 %v2769_v31, 0.0  ;;  %v2822_v4 = vmax.f32 %v2812_v12, 0.0  ;;  %v5585_v49 = vld [vmem:[%s6683_s6 + $0x30] sm:$0xff]  }
 0x9fc   :  { %v5586_v30 = vld [vmem:[%s6678_s2 + $0x50] ss:$8 sps:$4 sm:$0xff]  }
 0x9fd   :  { %v2821_v43 = vmax.f32 %v2771_v35, 0.0  ;;  %v2823_v41 = vmax.f32 %v2814_v56, 0.0  ;;  %v2824_v46 = vpack.c.bf16 %v2820_v27, %v2816_v57  ;;  %v2826_v28 = vpack.c.bf16 %v2822_v4, %v2818_v14  ;;  %v5588_v35 = vld [vmem:[%s6678_s2 + $0x54] ss:$8 sps:$4 sm:$0xff]   ;;  %v5589_v56 = vld [vmem:[%s6683_s6 + $0x28] sm:$0xff]  }
 0x9fe   :  { %v5590_v27 = vld [vmem:[%s6678_s2 + $0x40] ss:$8 sps:$4 sm:$0xff]   ;;  %v5592_v4 = vld [vmem:[%s6678_s2 + $0x44] ss:$8 sps:$4 sm:$0xff]   ;;  %v5601_v14 = vld [vmem:[%s6683_s6 + $0x10] sm:$0xff]  }
 0x9ff   :  { %v2825_v55 = vpack.c.bf16 %v2821_v43, %v2817_v40  ;;  %v2827_v24 = vpack.c.bf16 %v2823_v41, %v2819_v34  ;;  %v5593_v40 = vld [vmem:[%s6683_s6 + $0x20] sm:$0xff]   ;;  %v5596_v34 = vld [vmem:[%s6678_s2 + $0x34] ss:$8 sps:$4 sm:$0xff]   ;;  %v5594_v41 = vld [vmem:[%s6678_s2 + $0x30] ss:$8 sps:$4 sm:$0xff]  }
 0xa00   :  { %v5597_v43 = vld [vmem:[%s6683_s6 + $0x18] sm:$0xff]   ;;  %v5600_v57 = vld [vmem:[%s6678_s2 + $0x24] ss:$8 sps:$4 sm:$0xff]  }
 0xa01   :  { %3123 = vmatprep.mubr.bf16.mxu1 %v2825_v55  ;;  %3164 = vmatprep.mubr.bf16.mxu0 %v2827_v24  ;;  %v5598_v55 = vld [vmem:[%s6678_s2 + $0x20] ss:$8 sps:$4 sm:$0xff]   ;;  %v5604_v24 = vld [vmem:[%s6678_s2 + $0x14] ss:$8 sps:$4 sm:$0xff]  }
 0xa02   :  { %3124 = vmatmul.mubr.bf16.vlgmr.msra.gmra.mxu1 %v2824_v46  ;;  %3165 = vmatmul.mubr.bf16.vlgmr.msra.gmra.mxu0 %v2826_v28  ;;  %v5605_v46 = vld [vmem:[%s6683_s6 + $0x8] sm:$0xff]   ;;  %v5602_v28 = vld [vmem:[%s6678_s2 + $0x10] ss:$8 sps:$4 sm:$0xff]  }
 0xa03   :  { %5242 = vmatprep.mubr.msk.bf16.mxu1 %vm5846_vm0, %v6925_v20  ;;  %3481 = vmatprep.mubr.bf16.mxu0 %v6922_v17 }
 0xa04   :  { %3450 = vmatpush1.bf16.msra.mxu0 %v5578_v42 }
 0xa05   :  { %3451 = vmatprep.subr.bf16.mxu0 %v5584_v60  ;;  %v5840_v60 = vld [vmem:[%s5931_s21 + $0x18] sm:$0xff]  }
 0xa08   :  { %3452 = vmatpush1.bf16.msra.mxu0 %v5582_v21  ;;  %v5839_v21 = vld [vmem:[%s5931_s21 + $0x20] sm:$0xff]  }
 0xa09   :  { %3453 = vmatprep.subr.bf16.mxu0 %v5588_v35  ;;  %v5843_v35 = vld [vmem:[%s5931_s21] sm:$0xff]  }
 0xa0c   :  { %3454 = vmatpush1.bf16.msra.mxu0 %v5586_v30  ;;  %v5842_v30 = vld [vmem:[%s5931_s21 + $0x8] sm:$0xff]  }
 0xa0d   :  { %3455 = vmatprep.subr.bf16.mxu0 %v5592_v4 }
 0xa10   :  { %3456 = vmatpush1.bf16.msra.mxu0 %v5590_v27 }
 0xa11   :  { %3457 = vmatprep.subr.bf16.mxu0 %v5596_v34 }
 0xa14   :  { %3458 = vmatpush1.bf16.msra.mxu0 %v5594_v41 }
 0xa15   :  { %3459 = vmatprep.subr.bf16.mxu0 %v5600_v57 }
 0xa18   :  { %3460 = vmatpush1.bf16.msra.mxu0 %v5598_v55 }
 0xa19   :  { %3461 = vmatprep.subr.bf16.mxu0 %v5604_v24 }
 0xa1c   :  { %3462 = vmatpush1.bf16.msra.mxu0 %v5602_v28 }
 0xac2   :  { %v4958_v61 = vpop.f32.mrf.mxu1  ;;  %v4980_v5 = vpop.f32.mrf.mxu0 }
 0xac4   :  { %v4959_v53 = vpop.f32.mrf.mxu1  ;;  %v4981_v58 = vpop.f32.mrf.mxu0 }
 0xac5   :  { %v4960_v36 = vadd.f32 %v4959_v53, %v4958_v61  ;;  %v4982_v29 = vadd.f32 %v4981_v58, %v4980_v5  ;;  %v5608_v61 = vld [vmem:[%s6678_s2 + $0x4] ss:$8 sps:$4 sm:$0xff]   ;;  %v5836_v53 = vld [vmem:[%s5931_s21 + $0x38] sm:$0xff]  }
 0xac6   :  { %v4961_v13 = vpop.f32.mrf.mxu1  ;;  %v4983_v63 = vpop.f32.mrf.mxu0  ;;  %v5609_v5 = vld [vmem:[%s6683_s6] sm:$0xff]   ;;  %3463 = vmatprep.subr.bf16.mxu0 %v5608_v61 }
 0xac7   :  { %v3126_v32 = vadd.f32 %v4960_v36, %v4673_v2 }
 0xac8   :  { %v4962_v26 = vpop.f32.mrf.mxu1  ;;  %v4984_v7 = vpop.f32.mrf.mxu0 }
 0xac9   :  { %v3167_v9 = vadd.f32 %v4982_v29, %v3126_v32  ;;  %v4963_v18 = vadd.f32 %v4962_v26, %v4961_v13  ;;  %v4985_v45 = vadd.f32 %v4984_v7, %v4983_v63 }
 0xacb   :  { %v3129_v23 = vadd.f32 %v4963_v18, %v4673_v2  ;;  %v3173_v22 = vadd.f32 %v3167_v9, %v6619_v25  ;;  %v5581_v25 = vld [vmem:[%s6683_s6 + $0x38] sm:$0xff]   ;;  %v5606_v2 = vld [vmem:[%s6678_s2] ss:$8 sps:$4 sm:$0xff]  }
 0xacc   :  { %5227 = vmatpush3.bf16.msra.mxu1 %v5581_v25  ;;  %3464 = vmatpush1.bf16.msra.mxu0 %v5606_v2  ;;  %v4707_v25 = vld [vmem:[%s6613_s20 + $0x3] ss:$0 sm:$0xff] }
 0xacd   :  { %v3170_v6 = vadd.f32 %v4985_v45, %v3129_v23  ;;  %3177 = vadd.xlane.f32.xlu0 %v3173_v22  ;;  %5228 = vmatprep.subr.bf16.mxu1 %v6925_v20 }
 0xace   :  { %5266 = vmatprep.subr.bf16.mxu0 %v6925_v20 }
 0xacf   :  { %v3174_v0 = vadd.f32 %v3170_v6, %v6621_v37 }
 0xad0   :  { %5229 = vmatpush3.bf16.msra.mxu1 %v5585_v49  ;;  %v5841_v49 = vld [vmem:[%s5931_s21 + $0x10] sm:$0xff]  }
 0xad1   :  { %3179 = vadd.xlane.f32.xlu1 %v3174_v0  ;;  %1730 = vadd.xlane.f32.xlu0 %v1726_v33 }
 0xad2   :  { %5230 = vmatprep.subr.bf16.mxu1 %v6925_v20 }
 0xad4   :  { %5231 = vmatpush3.bf16.msra.mxu1 %v5589_v56 }
 0xad5   :  { %1732 = vadd.xlane.f32.xlu1 %v1727_v59  ;;  %5232 = vmatprep.subr.bf16.mxu1 %v6925_v20 }
 0xad8   :  { %5233 = vmatpush3.bf16.msra.mxu1 %v5593_v40  ;;  %v4724_v40 = vld [vmem:[%s6764_s15] ss:$0 sm:$0xff] }
 0xad9   :  { %5234 = vmatprep.subr.bf16.mxu1 %v6925_v20 }
 0xadc   :  { %5235 = vmatpush3.bf16.msra.mxu1 %v5597_v43 }
 0xadd   :  { %5236 = vmatprep.subr.bf16.mxu1 %v6925_v20 }
 0xae0   :  { %5237 = vmatpush3.bf16.msra.mxu1 %v5601_v14 }
 0xae1   :  { %5238 = vmatprep.subr.bf16.mxu1 %v6925_v20 }
 0xae4   :  { %5239 = vmatpush3.bf16.msra.mxu1 %v5605_v46 }
 0xae5   :  { %5240 = vmatprep.subr.bf16.mxu1 %v6925_v20 }
 0xae8   :  { %5241 = vmatpush3.bf16.msra.mxu1 %v5609_v5 }
 0xae9   :  { %5246 = vmatprep.subr.bf16.mxu1 %v5836_v53 }
 0xb56   :  { %v3178_v38 = vpop.xlane.xlu0 %3177 }
 0xb57   :  { %v3181_v54 = vmul.f32 0.0078125, %v3178_v38 }
 0xb59   :  { %v6689_v37 = vsub.f32 %v3173_v22, %v3181_v54 }
 0xb5a   :  { %v3180_v15 = vpop.xlane.xlu1 %3179  ;;  %v1731_v16 = vpop.xlane.xlu0 %1730 }
 0xb5b   :  { %v3182_v39 = vmul.f32 0.0078125, %v3180_v15  ;;  %v1734_v50 = vmul.f32 0.0078125, %v1731_v16  ;;  %v3185_v11 = vmul.f32 %v6689_v37, %v6689_v37 }
 0xb5d   :  { %v6693_v52 = vsub.f32 %v3174_v0, %v3182_v39  ;;  %v6695_v44 = vsub.f32 %v1726_v33, %v1734_v50  ;;  %3187 = vadd.xlane.f32.xlu0 %v3185_v11  ;;  %v4706_v0 = vld [vmem:[%s6613_s20 + $0x2] ss:$0 sm:$0xff] }
 0xb5e   :  { %v1733_v8 = vpop.xlane.xlu1 %1732 }
 0xb5f   :  { %v1735_v10 = vmul.f32 0.0078125, %v1733_v8  ;;  %v3186_v19 = vmul.f32 %v6693_v52, %v6693_v52  ;;  %v1738_v1 = vmul.f32 %v6695_v44, %v6695_v44 }
 0xb61   :  { %v6701_v31 = vsub.f32 %v1727_v59, %v1735_v10  ;;  %3189 = vadd.xlane.f32.xlu1 %v3186_v19  ;;  %1740 = vadd.xlane.f32.xlu0 %v1738_v1  ;;  %v4588_v10 = vld [vmem:[%s6220_s11 + $0x3] ss:$0 sm:$0xff]  ;;  %v5837_v1 = vld [vmem:[%s5931_s21 + $0x30] sm:$0xff]  }
 0xb63   :  { %v1739_v12 = vmul.f32 %v6701_v31, %v6701_v31 }
 0xb65   :  { %1742 = vadd.xlane.f32.xlu1 %v1739_v12  ;;  %v5838_v12 = vld [vmem:[%s5931_s21 + $0x28] sm:$0xff]   ;;  %s5871_s21 = smov 25  }
 0xb66   :  { %s6804_s18 = sld [smem:[%s6915_s0 + %s5871_s21]]  }
 0xbe6   :  { %v3188_v58 = vpop.xlane.xlu0 %3187 }
 0xbe7   :  { %v3191_v36 = vmul.f32 0.0078125, %v3188_v58 }
 0xbe9   :  { %v3193_v13 = vadd.f32 1e-05, %v3191_v36 }
 0xbea   :  { %v3190_v63 = vpop.xlane.xlu1 %3189  ;;  %v1741_v32 = vpop.xlane.xlu0 %1740 }
 0xbeb   :  { %5791 = vrsqrt.f32 %v3193_v13  ;;  %v3192_v29 = vmul.f32 0.0078125, %v3190_v63  ;;  %v1744_v26 = vmul.f32 0.0078125, %v1741_v32 }
 0xbed   :  { %v3194_v7 = vadd.f32 1e-05, %v3192_v29  ;;  %v1746_v9 = vadd.f32 1e-05, %v1744_v26 }
 0xbee   :  { %v1743_v18 = vpop.xlane.xlu1 %1742 }
 0xbef   :  { %5793 = vrsqrt.f32 %v3194_v7  ;;  %v1745_v23 = vmul.f32 0.0078125, %v1743_v18 }
 0xbf0   :  { %5795 = vrsqrt.f32 %v1746_v9 }
 0xbf1   :  { %v1747_v45 = vadd.f32 1e-05, %v1745_v23 }
 0xbf3   :  { %5797 = vrsqrt.f32 %v1747_v45 }
 0xbf8   :  { %v5792_v22 = vpop.eup %5791 }
 0xbf9   :  { %v3197_v6 = vmul.f32 %v5792_v22, %v6689_v37  ;;  %v4587_v37 = vld [vmem:[%s6220_s11 + $0x2] ss:$0 sm:$0xff]  ;;  %s5869_s11 = smov 24  }
 0xbfa   :  { %s4444_s9 = sld [smem:[%s6915_s0 + %s5869_s11]]  }
 0xbfb   :  { %v3203_v42 = vmul.f32 %v4706_v0, %v3197_v6  ;;  %v5610_v6 = vld [vmem:[%s6683_s6 + $0x78] sm:$0xff]  }
 0xbfc   :  { %v5794_v33 = vpop.eup %5793 }
 0xbfd   :  { %v3198_v59 = vmul.f32 %v5794_v33, %v6693_v52  ;;  %v5796_v62 = vpop.eup %5795  ;;  %v6738_v15 = vadd.f32 %v4707_v25, %v3203_v42  ;;  %v5612_v33 = vld [vmem:[%s6683_s6 + $0x68] sm:$0xff]   ;;  %v5614_v42 = vld [vmem:[%s6683_s6 + $0x58] sm:$0xff]  }
 0xbfe   :  { %v1750_v39 = vmul.f32 %v5796_v62, %v6695_v44  ;;  %v5615_v62 = vld [vmem:[%s6683_s6 + $0x50] sm:$0xff]  }
 0xbff   :  { %v3204_v38 = vmul.f32 %v4706_v0, %v3198_v59  ;;  %v5611_v0 = vld [vmem:[%s6683_s6 + $0x70] sm:$0xff]   ;;  %v5613_v59 = vld [vmem:[%s6683_s6 + $0x60] sm:$0xff]  }
 0xc00   :  { %v5798_v54 = vpop.eup %5797  ;;  %v1756_v8 = vmul.f32 %v4587_v37, %v1750_v39  ;;  %v3357_v56 = vld [vmem:[%s4444_s9] sm:$0x3] }
 0xc01   :  { %v6740_v16 = vadd.f32 %v4707_v25, %v3204_v38  ;;  %v1751_v50 = vmul.f32 %v5798_v54, %v6701_v31  ;;  %v3362_v27 = vrot.slane %v3357_v56, %v5983_v47  ;;  %v6768_v4 = vrot.slane %v3357_v56, %v5986_v48  ;;  %v5616_v25 = vld [vmem:[%s6683_s6 + $0x48] sm:$0xff]   ;;  %v5617_v38 = vld [vmem:[%s6683_s6 + $0x40] sm:$0xff]  }
 0xc02   :  { %v1762_v44 = vadd.f32 %v4588_v10, %v1756_v8 }
 0xc03   :  { %v3211_v11 = vpack.c.bf16 %v6740_v16, %v6738_v15  ;;  %v1757_v52 = vmul.f32 %v4587_v37, %v1751_v50 }
 0xc05   :  { %5243 = vmatmul.mubr.bf16.vlgmr.msra.gmra.mxu1 %v3211_v11  ;;  %3482 = vmatmul.mubr.bf16.vlgmr.msra.gmra.mxu0 %v3211_v11  ;;  %v1763_v19 = vadd.f32 %v4588_v10, %v1757_v52 }
 0xc06   :  { %3491 = vmatprep.mubr.bf16.mxu0 %v6922_v17  ;;  %5247 = vmatpush3.bf16.msra.mxu1 %v5836_v53 }
 0xc07   :  { %5248 = vmatprep.subr.bf16.mxu1 %v5837_v1  ;;  %v3212_v31 = vpack.c.bf16 %v1763_v19, %v1762_v44  ;;  %5267 = vmatpush3.bf16.msra.mxu0 %v5610_v6 }
 0xc08   :  { %5268 = vmatprep.subr.bf16.mxu0 %v6925_v20 }
 0xc0a   :  { %5249 = vmatpush3.bf16.msra.mxu1 %v5837_v1 }
 0xc0b   :  { %5250 = vmatprep.subr.bf16.mxu1 %v5838_v12  ;;  %5269 = vmatpush3.bf16.msra.mxu0 %v5611_v0 }
 0xc0c   :  { %5270 = vmatprep.subr.bf16.mxu0 %v6925_v20 }
 0xc0d   :  { %3492 = vmatmul.mubr.bf16.gmra.mxu0 %v3212_v31 }
 0xc0e   :  { %5251 = vmatpush3.bf16.msra.mxu1 %v5838_v12  ;;  %5282 = vmatprep.mubr.msk.bf16.mxu0 %vm5846_vm0, %v6925_v20 }
 0xc0f   :  { %5252 = vmatprep.subr.bf16.mxu1 %v5839_v21  ;;  %5271 = vmatpush3.bf16.msra.mxu0 %v5612_v33  ;;  %v5624_v33 = vld [vmem:[%s6804_s18 + $0xc0] ss:$16 sps:$4 sm:$0xff]  }
 0xc10   :  { %5272 = vmatprep.subr.bf16.mxu0 %v6925_v20 }
 0xc12   :  { %5253 = vmatpush3.bf16.msra.mxu1 %v5839_v21 }
 0xc13   :  { %5254 = vmatprep.subr.bf16.mxu1 %v5840_v60  ;;  %5273 = vmatpush3.bf16.msra.mxu0 %v5613_v59  ;;  %v5626_v59 = vld [vmem:[%s6804_s18 + $0xc4] ss:$16 sps:$4 sm:$0xff]  }
 0xc14   :  { %5274 = vmatprep.subr.bf16.mxu0 %v6925_v20 }
 0xc16   :  { %5255 = vmatpush3.bf16.msra.mxu1 %v5840_v60 }
 0xc17   :  { %5256 = vmatprep.subr.bf16.mxu1 %v5841_v49  ;;  %5275 = vmatpush3.bf16.msra.mxu0 %v5614_v42  ;;  %v5627_v42 = vld [vmem:[%s6804_s18 + $0xc8] ss:$16 sps:$4 sm:$0xff]  }
 0xc18   :  { %5276 = vmatprep.subr.bf16.mxu0 %v6925_v20 }
 0xc1a   :  { %5257 = vmatpush3.bf16.msra.mxu1 %v5841_v49 }
 0xc1b   :  { %5258 = vmatprep.subr.bf16.mxu1 %v5842_v30  ;;  %5277 = vmatpush3.bf16.msra.mxu0 %v5615_v62  ;;  %v5629_v62 = vld [vmem:[%s6804_s18 + $0xcc] ss:$16 sps:$4 sm:$0xff]  }
 0xc1c   :  { %5278 = vmatprep.subr.bf16.mxu0 %v6925_v20 }
 0xc1e   :  { %5259 = vmatpush3.bf16.msra.mxu1 %v5842_v30 }
 0xc1f   :  { %5260 = vmatprep.subr.bf16.mxu1 %v5843_v35  ;;  %5279 = vmatpush3.bf16.msra.mxu0 %v5616_v25  ;;  %v5630_v25 = vld [vmem:[%s6804_s18 + $0xa0] ss:$16 sps:$4 sm:$0xff]  }
 0xc20   :  { %5280 = vmatprep.subr.bf16.mxu0 %v6925_v20 }
 0xc22   :  { %5261 = vmatpush3.bf16.msra.mxu1 %v5843_v35 }
 0xc23   :  { %5281 = vmatpush3.bf16.msra.mxu0 %v5617_v38  ;;  %v5632_v38 = vld [vmem:[%s6804_s18 + $0xa4] ss:$16 sps:$4 sm:$0xff]  }
 0xcc5   :  { %v3334_v34 = vpop.f32.mrf.mxu1  ;;  %v3483_v43 = vpop.f32.mrf.mxu0 }
 0xcc6   :  { %v3335_v14 = vadd.f32 %v4724_v40, %v3334_v34  ;;  %v3484_v55 = vadd.f32 %v3483_v43, %v3362_v27 }
 0xcc7   :  { %v5244_v41 = vpop.f32.mrf.mxu1  ;;  %v3485_v57 = vpop.f32.mrf.mxu0 }
 0xcc8   :  { %v6772_v24 = vadd.f32 %v3485_v57, %v6768_v4  ;;  %v3502_v58 = vmul.f32 %v3484_v55, %v3335_v14 }
 0xcc9   :  { %v3337_v46 = vpop.f32.mrf.mxu1  ;;  %v3487_v28 = vpop.f32.mrf.mxu0 }
 0xcca   :  { %v3338_v61 = vadd.f32 %v4724_v40, %v3337_v46  ;;  %v3488_v5 = vadd.f32 %v3487_v28, %v3362_v27 }
 0xccb   :  { %v5245_v2 = vpop.f32.mrf.mxu1  ;;  %v3489_v53 = vpop.f32.mrf.mxu0 }
 0xccc   :  { %v3503_v36 = vmul.f32 %v3488_v5, %v3338_v61  ;;  %v6775_v13 = vadd.f32 %v3489_v53, %v6768_v4  ;;  %v4749_v2 = vld [vmem:[%s6764_s15 + $0x1] ss:$0 sm:$0xff] }
 0xccd   :  { %v3493_v63 = vpop.f32.mrf.mxu0 }
 0xcce   :  { %v3506_v32 = vpack.c.bf16 %v3503_v36, %v3502_v58  ;;  %v3494_v26 = vadd.f32 %v3493_v63, %v3362_v27 }
 0xccf   :  { %v3495_v29 = vpop.f32.mrf.mxu0 }
 0xcd0   :  { %v3496_v7 = vadd.f32 %v3495_v29, %v6768_v4  ;;  %5262 = vmatprep.mubr.bf16.mxu1 %v3506_v32  ;;  %v3504_v23 = vmul.f32 %v3494_v26, %v3335_v14  ;;  %v5620_v26 = vld [vmem:[%s6804_s18 + $0xe4] ss:$16 sps:$4 sm:$0xff]  }
 0xcd1   :  { %v3497_v9 = vpop.f32.mrf.mxu0  ;;  %3934 = vmatprep.subr.bf16.mxu1 %v5620_v26  ;;  %v5670_v26 = vld [vmem:[%s6849_s23 + $0x70] sm:$0xff]  }
 0xcd2   :  { %v3498_v18 = vadd.f32 %v3497_v9, %v3362_v27 }
 0xcd3   :  { %v3499_v49 = vpop.f32.mrf.mxu0 }
 0xcd4   :  { %v3505_v45 = vmul.f32 %v3498_v18, %v3338_v61  ;;  %v3500_v40 = vadd.f32 %v3499_v49, %v6768_v4  ;;  %v5654_v49 = vld [vmem:[%s6804_s18 + $0x20] ss:$16 sps:$4 sm:$0xff]  }
 0xcd6   :  { %v3507_v22 = vpack.c.bf16 %v3505_v45, %v3504_v23 }
 0xcd8   :  { %5263 = vmatmul.mubr.bf16.vlgmr.msra.gmra.mxu1 %v3507_v22 }
 0xcd9   :  { %3966 = vmatprep.mubr.bf16.mxu1 %v6922_v17 }
 0xd98   :  { %v5264_v54 = vpop.f32.mrf.mxu1 }
 0xd9a   :  { %v3542_v39 = vpop.f32.mrf.mxu1 }
 0xd9b   :  { %v3557_v50 = vmax.f32 %v3542_v39, %v5264_v54 }
 0xd9c   :  { %v5265_v37 = vpop.f32.mrf.mxu1 }
 0xd9d   :  { %v3559_v11 = vsub.f32 %v3542_v39, %v3557_v50  ;;  %v3571_v52 = vsub.f32 %v5264_v54, %v3557_v50  ;;  %v5633_v54 = vld [vmem:[%s6804_s18 + $0xa8] ss:$16 sps:$4 sm:$0xff]   ;;  %v5635_v39 = vld [vmem:[%s6804_s18 + $0xac] ss:$16 sps:$4 sm:$0xff]   ;;  %v5638_v50 = vld [vmem:[%s6804_s18 + $0x84] ss:$16 sps:$4 sm:$0xff]  }
 0xd9e   :  { %v3545_v8 = vpop.f32.mrf.mxu1 }
 0xd9f   :  { %v3561_v10 = vmul.f32 1.442695, %v3559_v11  ;;  %v3573_v19 = vmul.f32 1.442695, %v3571_v52  ;;  %v3558_v1 = vmax.f32 %v3545_v8, %v5265_v37  ;;  %v5636_v11 = vld [vmem:[%s6804_s18 + $0x80] ss:$16 sps:$4 sm:$0xff]  }
 0xda0   :  { %v5639_v52 = vld [vmem:[%s6804_s18 + $0x88] ss:$16 sps:$4 sm:$0xff]  }
 0xda1   :  { %5799 = vpow2.f32 %v3561_v10  ;;  %v3560_v44 = vsub.f32 %v3545_v8, %v3558_v1  ;;  %v3572_v31 = vsub.f32 %v5265_v37, %v3558_v1  ;;  %v5641_v37 = vld [vmem:[%s6804_s18 + $0x8c] ss:$16 sps:$4 sm:$0xff]   ;;  %v5644_v8 = vld [vmem:[%s6804_s18 + $0x64] ss:$16 sps:$4 sm:$0xff]   ;;  %v5645_v1 = vld [vmem:[%s6804_s18 + $0x68] ss:$16 sps:$4 sm:$0xff]  }
 0xda2   :  { %5801 = vpow2.f32 %v3573_v19  ;;  %v5647_v10 = vld [vmem:[%s6804_s18 + $0x6c] ss:$16 sps:$4 sm:$0xff]   ;;  %v5642_v19 = vld [vmem:[%s6804_s18 + $0x60] ss:$16 sps:$4 sm:$0xff]  }
 0xda3   :  { %v3563_v12 = vmul.f32 1.442695, %v3560_v44  ;;  %v3575_v21 = vmul.f32 1.442695, %v3572_v31  ;;  %v5650_v44 = vld [vmem:[%s6804_s18 + $0x44] ss:$16 sps:$4 sm:$0xff]  }
 0xda4   :  { %v5653_v31 = vld [vmem:[%s6804_s18 + $0x4c] ss:$16 sps:$4 sm:$0xff]  }
 0xda5   :  { %5803 = vpow2.f32 %v3563_v12  ;;  %v5648_v12 = vld [vmem:[%s6804_s18 + $0x40] ss:$16 sps:$4 sm:$0xff]  }
 0xda6   :  { %5805 = vpow2.f32 %v3575_v21  ;;  %v5651_v21 = vld [vmem:[%s6804_s18 + $0x48] ss:$16 sps:$4 sm:$0xff]  }
 0xdae   :  { %v5800_v20 = vpop.eup %5799 }
 0xdaf   :  { %v5802_v60 = vpop.eup %5801  ;;  %v3567_v30 = vmul.f32 %v5800_v20, %v6772_v24 }
 0xdb0   :  { %v3577_v35 = vadd.f32 %v5802_v60, %v5800_v20  ;;  %v3579_v56 = vmul.f32 %v5802_v60, %v3496_v7  ;;  %v5623_v7 = vld [vmem:[%s6804_s18 + $0xec] ss:$16 sps:$4 sm:$0xff]   ;;  %v5656_v20 = vld [vmem:[%s6804_s18 + $0x24] ss:$16 sps:$4 sm:$0xff]  }
 0xdb1   :  { %3977 = vmatprep.subr.bf16.mxu0 %v5623_v7  ;;  %v5659_v60 = vld [vmem:[%s6804_s18 + $0x2c] ss:$16 sps:$4 sm:$0xff]   ;;  %v5672_v7 = vld [vmem:[%s6849_s23 + $0x30] sm:$0xff]  }
 0xdb2   :  { %v5804_v27 = vpop.eup %5803  ;;  %v3581_v34 = vadd.f32 %v3579_v56, %v3567_v30  ;;  %5807 = vrcp.f32 %v3577_v35  ;;  %v5657_v30 = vld [vmem:[%s6804_s18 + $0x28] ss:$16 sps:$4 sm:$0xff]   ;;  %v5662_v35 = vld [vmem:[%s6804_s18 + $0x4] ss:$16 sps:$4 sm:$0xff]   ;;  %v5665_v56 = vld [vmem:[%s6804_s18 + $0xc] ss:$16 sps:$4 sm:$0xff]  }
 0xdb3   :  { %v5806_v43 = vpop.eup %5805  ;;  %v3568_v41 = vmul.f32 %v5804_v27, %v6775_v13 }
 0xdb4   :  { %v3578_v57 = vadd.f32 %v5806_v43, %v5804_v27  ;;  %v3580_v14 = vmul.f32 %v5806_v43, %v3500_v40  ;;  %v5660_v27 = vld [vmem:[%s6804_s18] ss:$16 sps:$4 sm:$0xff]   ;;  %v5663_v40 = vld [vmem:[%s6804_s18 + $0x8] ss:$16 sps:$4 sm:$0xff]  }
 0xdb5   :  { %v5667_v43 = vld [vmem:[%s6849_s23 + $0xf8] sm:$0xff]  }
 0xdb6   :  { %5809 = vrcp.f32 %v3578_v57  ;;  %v3582_v55 = vadd.f32 %v3580_v14, %v3568_v41 }
 0xdbf   :  { %v5808_v46 = vpop.eup %5807 }
 0xdc0   :  { %v3585_v61 = vmul.f32 %v5808_v46, %v3581_v34  ;;  %v5666_v34 = vld [vmem:[%s6849_s23 + $0x78] sm:$0xff]  }
 0xdc3   :  { %v5810_v28 = vpop.eup %5809 }
 0xdc4   :  { %v3586_v5 = vmul.f32 %v5810_v28, %v3582_v55 }
 0xdc6   :  { %v3587_v24 = vpack.c.bf16 %v3586_v5, %v3585_v61 }
 0xdc8   :  { %5283 = vmatmul.mubr.bf16.vlgmr.msra.gmra.mxu0 %v3587_v24  ;;  %v4758_v24 = vld [vmem:[%s6856_s27] ss:$0 sm:$0xff] }
 0xdc9   :  { %4009 = vmatprep.mubr.bf16.mxu0 %v6922_v17  ;;  %v5618_v17 = vld [vmem:[%s6804_s18 + $0xe0] ss:$16 sps:$4 sm:$0xff]  }
 0xdca   :  { %3935 = vmatpush1.bf16.msra.mxu1 %v5618_v17 }
 0xdcb   :  { %3936 = vmatprep.subr.bf16.mxu1 %v5626_v59  ;;  %v5682_v59 = vld [vmem:[%s6849_s23 + $0x58] sm:$0xff]  }
 0xdce   :  { %3937 = vmatpush1.bf16.msra.mxu1 %v5624_v33  ;;  %v5681_v33 = vld [vmem:[%s6849_s23 + $0xa0] sm:$0xff]  }
 0xdcf   :  { %3938 = vmatprep.subr.bf16.mxu1 %v5632_v38  ;;  %v5686_v38 = vld [vmem:[%s6849_s23 + $0x50] sm:$0xff]  }
 0xdd2   :  { %3939 = vmatpush1.bf16.msra.mxu1 %v5630_v25  ;;  %v5685_v25 = vld [vmem:[%s6849_s23 + $0x98] sm:$0xff]  }
 0xdd3   :  { %3940 = vmatprep.subr.bf16.mxu1 %v5638_v50  ;;  %v5689_v50 = vld [vmem:[%s6849_s23 + $0x90] sm:$0xff]  }
 0xdd6   :  { %3941 = vmatpush1.bf16.msra.mxu1 %v5636_v11  ;;  %v5691_v11 = vld [vmem:[%s6849_s23 + $0xc8] sm:$0xff]  }
 0xdd7   :  { %3942 = vmatprep.subr.bf16.mxu1 %v5644_v8  ;;  %v5693_v8 = vld [vmem:[%s6849_s23 + $0x88] sm:$0xff]  }
 0xdda   :  { %3943 = vmatpush1.bf16.msra.mxu1 %v5642_v19  ;;  %v5695_v19 = vld [vmem:[%s6849_s23 + $0xc0] sm:$0xff]  }
 0xddb   :  { %3944 = vmatprep.subr.bf16.mxu1 %v5650_v44  ;;  %v5697_v44 = vld [vmem:[%s6849_s23 + $0x80] sm:$0xff]  }
 0xdde   :  { %3945 = vmatpush1.bf16.msra.mxu1 %v5648_v12 }
 0xddf   :  { %3946 = vmatprep.subr.bf16.mxu1 %v5656_v20 }
 0xde2   :  { %3947 = vmatpush1.bf16.msra.mxu1 %v5654_v49 }
 0xde3   :  { %3948 = vmatprep.subr.bf16.mxu1 %v5662_v35 }
 0xde6   :  { %3949 = vmatpush1.bf16.msra.mxu1 %v5660_v27 }
 0xde7   :  { %5014 = vmatprep.subr.bf16.mxu1 %v5666_v34 }
 0xe88   :  { %v3674_v4 = vpop.f32.mrf.mxu0 }
 0xe89   :  { %v3675_v53 = vadd.f32 %v4749_v2, %v3674_v4 }
 0xe8a   :  { %v5284_v58 = vpop.f32.mrf.mxu0 }
 0xe8b   :  { %v3681_v36 = vadd.f32 %v3675_v53, %v6738_v15  ;;  %v5621_v15 = vld [vmem:[%s6804_s18 + $0xe8] ss:$16 sps:$4 sm:$0xff]   ;;  %v4759_v58 = vld [vmem:[%s6856_s27 + $0x1] ss:$0 sm:$0xff] }
 0xe8c   :  { %v3677_v13 = vpop.f32.mrf.mxu0  ;;  %3978 = vmatpush1.bf16.msra.mxu0 %v5621_v15  ;;  %v5671_v15 = vld [vmem:[%s6849_s23 + $0xf0] sm:$0xff]  }
 0xe8d   :  { %v3678_v63 = vadd.f32 %v4749_v2, %v3677_v13  ;;  %3685 = vadd.xlane.f32.xlu0 %v3681_v36  ;;  %3979 = vmatprep.subr.bf16.mxu0 %v5629_v62  ;;  %v5684_v62 = vld [vmem:[%s6849_s23 + $0x18] sm:$0xff]  }
 0xe8e   :  { %v5285_v32 = vpop.f32.mrf.mxu0 }
 0xe8f   :  { %v3682_v29 = vadd.f32 %v3678_v63, %v6740_v16  ;;  %v5668_v32 = vld [vmem:[%s6849_s23 + $0x38] sm:$0xff]  }
 0xe90   :  { %3980 = vmatpush1.bf16.msra.mxu0 %v5627_v42  ;;  %v5683_v42 = vld [vmem:[%s6849_s23 + $0xd8] sm:$0xff]  }
 0xe91   :  { %3687 = vadd.xlane.f32.xlu1 %v3682_v29  ;;  %3981 = vmatprep.subr.bf16.mxu0 %v5635_v39  ;;  %v5688_v39 = vld [vmem:[%s6849_s23 + $0x10] sm:$0xff]  }
 0xe94   :  { %3982 = vmatpush1.bf16.msra.mxu0 %v5633_v54  ;;  %v5687_v54 = vld [vmem:[%s6849_s23 + $0xd0] sm:$0xff]  }
 0xe95   :  { %3983 = vmatprep.subr.bf16.mxu0 %v5641_v37  ;;  %v5690_v37 = vld [vmem:[%s6849_s23 + $0x48] sm:$0xff]  }
 0xe98   :  { %3984 = vmatpush1.bf16.msra.mxu0 %v5639_v52  ;;  %v5692_v52 = vld [vmem:[%s6849_s23 + $0x8] sm:$0xff]  }
 0xe99   :  { %3985 = vmatprep.subr.bf16.mxu0 %v5647_v10  ;;  %v5694_v10 = vld [vmem:[%s6849_s23 + $0x40] sm:$0xff]  }
 0xe9c   :  { %3986 = vmatpush1.bf16.msra.mxu0 %v5645_v1  ;;  %v5696_v1 = vld [vmem:[%s6849_s23] sm:$0xff]  }
 0xe9d   :  { %3987 = vmatprep.subr.bf16.mxu0 %v5653_v31  ;;  %v3752_v31 = vld [vmem:[%s4446_s30] sm:$0xf] }
 0xe9e   :  { %v3761_v20 = vrot.slane %v3752_v31, %v5986_v48  ;;  %v3757_v49 = vrot.slane %v3752_v31, %v5983_v47 }
 0xea0   :  { %3988 = vmatpush1.bf16.msra.mxu0 %v5651_v21 }
 0xea1   :  { %3989 = vmatprep.subr.bf16.mxu0 %v5659_v60  ;;  %v3769_v60 = vrot.slane %v3752_v31, %v6276_v3 }
 0xea4   :  { %3990 = vmatpush1.bf16.msra.mxu0 %v5657_v30  ;;  %v3765_v30 = vrot.slane %v3752_v31, %v6279_v51 }
 0xea5   :  { %3991 = vmatprep.subr.bf16.mxu0 %v5665_v56 }
 0xea8   :  { %3992 = vmatpush1.bf16.msra.mxu0 %v5663_v40 }
 0xea9   :  { %5036 = vmatprep.subr.bf16.mxu0 %v5667_v43 }
 0xf16   :  { %v3686_v16 = vpop.xlane.xlu0 %3685 }
 0xf17   :  { %v3689_v9 = vmul.f32 0.0078125, %v3686_v16  ;;  %v5673_v16 = vld [vmem:[%s6849_s23 + $0xb0] sm:$0xff]  }
 0xf19   :  { %v6810_v18 = vsub.f32 %v3681_v36, %v3689_v9  ;;  %v5674_v9 = vld [vmem:[%s6849_s23 + $0x68] sm:$0xff]  }
 0xf1a   :  { %v3688_v23 = vpop.xlane.xlu1 %3687 }
 0xf1b   :  { %v3690_v45 = vmul.f32 0.0078125, %v3688_v23  ;;  %v3693_v22 = vmul.f32 %v6810_v18, %v6810_v18  ;;  %v5676_v23 = vld [vmem:[%s6849_s23 + $0x28] sm:$0xff]  }
 0xf1d   :  { %v6814_v6 = vsub.f32 %v3682_v29, %v3690_v45  ;;  %3695 = vadd.xlane.f32.xlu0 %v3693_v22  ;;  %v5669_v29 = vld [vmem:[%s6849_s23 + $0xb8] sm:$0xff]   ;;  %v5677_v45 = vld [vmem:[%s6849_s23 + $0xa8] sm:$0xff]   ;;  %v5678_v22 = vld [vmem:[%s6849_s23 + $0x60] sm:$0xff]  }
 0xf1f   :  { %v3694_v0 = vmul.f32 %v6814_v6, %v6814_v6 }
 0xf21   :  { %3697 = vadd.xlane.f32.xlu1 %v3694_v0  ;;  %v5680_v0 = vld [vmem:[%s6849_s23 + $0x20] sm:$0xff]  }
 0xfa6   :  { %v3696_v41 = vpop.xlane.xlu0 %3695 }
 0xfa7   :  { %v3699_v57 = vmul.f32 0.0078125, %v3696_v41 }
 0xfa9   :  { %v3701_v14 = vadd.f32 1e-05, %v3699_v57 }
 0xfaa   :  { %v3698_v55 = vpop.xlane.xlu1 %3697 }
 0xfab   :  { %5811 = vrsqrt.f32 %v3701_v14  ;;  %v3700_v46 = vmul.f32 0.0078125, %v3698_v55 }
 0xfad   :  { %v3702_v28 = vadd.f32 1e-05, %v3700_v46 }
 0xfaf   :  { %5813 = vrsqrt.f32 %v3702_v28 }
 0xfb8   :  { %v5812_v61 = vpop.eup %5811 }
 0xfb9   :  { %v3705_v5 = vmul.f32 %v5812_v61, %v6810_v18  ;;  %v5675_v18 = vld [vmem:[%s6849_s23 + $0xe8] sm:$0xff]  }
 0xfbb   :  { %v3711_v53 = vmul.f32 %v4758_v24, %v3705_v5 }
 0xfbc   :  { %v5814_v2 = vpop.eup %5813 }
 0xfbd   :  { %v3706_v4 = vmul.f32 %v5814_v2, %v6814_v6  ;;  %v6862_v13 = vadd.f32 %v4759_v58, %v3711_v53  ;;  %v5679_v6 = vld [vmem:[%s6849_s23 + $0xe0] sm:$0xff]  }
 0xfbf   :  { %v3712_v36 = vmul.f32 %v4758_v24, %v3706_v4 }
 0xfc1   :  { %v6864_v63 = vadd.f32 %v4759_v58, %v3712_v36 }
 0xfc3   :  { %v3719_v17 = vpack.c.bf16 %v6864_v63, %v6862_v13 }
 0xfc5   :  { %3967 = vmatmul.mubr.bf16.vlgmr.msra.gmra.mxu1 %v3719_v17  ;;  %4010 = vmatmul.mubr.bf16.vlgmr.msra.gmra.mxu0 %v3719_v17 }
 0xfc6   :  { %5015 = vmatpush3.bf16.msra.mxu1 %v5668_v32  ;;  %5037 = vmatpush3.bf16.msra.mxu0 %v5669_v29 }
 0xfc7   :  { %5016 = vmatprep.subr.bf16.mxu1 %v5670_v26  ;;  %5038 = vmatprep.subr.bf16.mxu0 %v5671_v15  ;;  %v4792_v15 = vld [vmem:[%s4448_s4] ss:$0 sm:$0xff] }
 0xfca   :  { %5017 = vmatpush3.bf16.msra.mxu1 %v5672_v7  ;;  %5039 = vmatpush3.bf16.msra.mxu0 %v5673_v16 }
 0xfcb   :  { %5018 = vmatprep.subr.bf16.mxu1 %v5674_v9  ;;  %5040 = vmatprep.subr.bf16.mxu0 %v5675_v18 }
 0xfce   :  { %5019 = vmatpush3.bf16.msra.mxu1 %v5676_v23  ;;  %5041 = vmatpush3.bf16.msra.mxu0 %v5677_v45 }
 0xfcf   :  { %5020 = vmatprep.subr.bf16.mxu1 %v5678_v22  ;;  %5042 = vmatprep.subr.bf16.mxu0 %v5679_v6 }
 0xfd2   :  { %5021 = vmatpush3.bf16.msra.mxu1 %v5680_v0  ;;  %5043 = vmatpush3.bf16.msra.mxu0 %v5681_v33 }
 0xfd3   :  { %5022 = vmatprep.subr.bf16.mxu1 %v5682_v59  ;;  %5044 = vmatprep.subr.bf16.mxu0 %v5683_v42 }
 0xfd6   :  { %5023 = vmatpush3.bf16.msra.mxu1 %v5684_v62  ;;  %5045 = vmatpush3.bf16.msra.mxu0 %v5685_v25 }
 0xfd7   :  { %5024 = vmatprep.subr.bf16.mxu1 %v5686_v38  ;;  %5046 = vmatprep.subr.bf16.mxu0 %v5687_v54 }
 0xfda   :  { %5025 = vmatpush3.bf16.msra.mxu1 %v5688_v39  ;;  %5047 = vmatpush3.bf16.msra.mxu0 %v5689_v50 }
 0xfdb   :  { %5026 = vmatprep.subr.bf16.mxu1 %v5690_v37  ;;  %5048 = vmatprep.subr.bf16.mxu0 %v5691_v11 }
 0xfde   :  { %5027 = vmatpush3.bf16.msra.mxu1 %v5692_v52  ;;  %5049 = vmatpush3.bf16.msra.mxu0 %v5693_v8 }
 0xfdf   :  { %5028 = vmatprep.subr.bf16.mxu1 %v5694_v10  ;;  %5050 = vmatprep.subr.bf16.mxu0 %v5695_v19 }
 0xfe2   :  { %5029 = vmatpush3.bf16.msra.mxu1 %v5696_v1  ;;  %5051 = vmatpush3.bf16.msra.mxu0 %v5697_v44 }
0x1085   :  { %v3968_v12 = vpop.f32.mrf.mxu1  ;;  %v4011_v21 = vpop.f32.mrf.mxu0 }
0x1086   :  { %v3969_v14 = vadd.f32 %v3968_v12, %v3757_v49  ;;  %v4012_v55 = vadd.f32 %v4011_v21, %v3765_v30 }
0x1087   :  { %v3970_v35 = vpop.f32.mrf.mxu1  ;;  %v4013_v56 = vpop.f32.mrf.mxu0 }
0x1088   :  { %v3971_v34 = vadd.f32 %v3970_v35, %v3761_v20  ;;  %v4014_v43 = vadd.f32 %v4013_v56, %v3769_v60  ;;  %v4020_v4 = vmax.f32 %v3969_v14, 0.0  ;;  %v4022_v53 = vmax.f32 %v4012_v55, 0.0 }
0x1089   :  { %v3972_v27 = vpop.f32.mrf.mxu1  ;;  %v4015_v40 = vpop.f32.mrf.mxu0 }
0x108a   :  { %v3973_v41 = vadd.f32 %v3972_v27, %v3757_v49  ;;  %v4016_v57 = vadd.f32 %v4015_v40, %v3765_v30  ;;  %v4021_v24 = vmax.f32 %v3971_v34, 0.0  ;;  %v4023_v47 = vmax.f32 %v4014_v43, 0.0  ;;  %v4826_v49 = vld [vmem:[%s6856_s27 + $0x3] ss:$0 sm:$0xff] }
0x108b   :  { %v3974_v46 = vpop.f32.mrf.mxu1  ;;  %v4017_v28 = vpop.f32.mrf.mxu0 }
0x108c   :  { %v3975_v61 = vadd.f32 %v3974_v46, %v3761_v20  ;;  %v4018_v48 = vadd.f32 %v4017_v28, %v3769_v60  ;;  %v4024_v5 = vmax.f32 %v3973_v41, 0.0  ;;  %v4026_v3 = vmax.f32 %v4016_v57, 0.0  ;;  %v4825_v20 = vld [vmem:[%s6856_s27 + $0x2] ss:$0 sm:$0xff] }
0x108e   :  { %v4025_v2 = vmax.f32 %v3975_v61, 0.0  ;;  %v4027_v51 = vmax.f32 %v4018_v48, 0.0  ;;  %v4028_v32 = vpack.c.bf16 %v4024_v5, %v4020_v4  ;;  %v4030_v29 = vpack.c.bf16 %v4026_v3, %v4022_v53 }
0x1090   :  { %v4029_v58 = vpack.c.bf16 %v4025_v2, %v4021_v24  ;;  %v4031_v36 = vpack.c.bf16 %v4027_v51, %v4023_v47 }
0x1092   :  { %4327 = vmatprep.mubr.bf16.mxu1 %v4029_v58  ;;  %4368 = vmatprep.mubr.bf16.mxu0 %v4031_v36 }
0x1093   :  { %4328 = vmatmul.mubr.bf16.vlgmr.msra.gmra.mxu1 %v4028_v32  ;;  %4369 = vmatmul.mubr.bf16.vlgmr.msra.gmra.mxu0 %v4030_v29 }
0x1153   :  { %v5030_v17 = vpop.f32.mrf.mxu1  ;;  %v5052_v26 = vpop.f32.mrf.mxu0 }
0x1155   :  { %v5031_v7 = vpop.f32.mrf.mxu1  ;;  %v5053_v16 = vpop.f32.mrf.mxu0 }
0x1156   :  { %v5032_v9 = vadd.f32 %v5031_v7, %v5030_v17  ;;  %v5054_v22 = vadd.f32 %v5053_v16, %v5052_v26 }
0x1157   :  { %v5033_v18 = vpop.f32.mrf.mxu1  ;;  %v5055_v23 = vpop.f32.mrf.mxu0 }
0x1158   :  { %v4330_v45 = vadd.f32 %v5032_v9, %v4792_v15 }
0x1159   :  { %v5034_v6 = vpop.f32.mrf.mxu1  ;;  %v5056_v0 = vpop.f32.mrf.mxu0 }
0x115a   :  { %v4371_v33 = vadd.f32 %v5054_v22, %v4330_v45  ;;  %v5035_v59 = vadd.f32 %v5034_v6, %v5033_v18  ;;  %v5057_v62 = vadd.f32 %v5056_v0, %v5055_v23 }
0x115c   :  { %v4333_v42 = vadd.f32 %v5035_v59, %v4792_v15  ;;  %v4377_v25 = vadd.f32 %v4371_v33, %v6862_v13 }
0x115e   :  { %v4374_v38 = vadd.f32 %v5057_v62, %v4333_v42  ;;  %4381 = vadd.xlane.f32.xlu0 %v4377_v25 }
0x1160   :  { %v4378_v54 = vadd.f32 %v4374_v38, %v6864_v63 }
0x1162   :  { %4383 = vadd.xlane.f32.xlu1 %v4378_v54 }
0x11e7   :  { %v4382_v39 = vpop.xlane.xlu0 %4381 }
0x11e8   :  { %v4385_v50 = vmul.f32 0.0078125, %v4382_v39 }
0x11ea   :  { %v4387_v37 = vsub.f32 %v4377_v25, %v4385_v50 }
0x11eb   :  { %v4384_v11 = vpop.xlane.xlu1 %4383 }
0x11ec   :  { %v4386_v52 = vmul.f32 0.0078125, %v4384_v11  ;;  %v4389_v8 = vmul.f32 %v4387_v37, %v4387_v37 }
0x11ee   :  { %v4388_v10 = vsub.f32 %v4378_v54, %v4386_v52  ;;  %4391 = vadd.xlane.f32.xlu0 %v4389_v8 }
0x11f0   :  { %v4390_v19 = vmul.f32 %v4388_v10, %v4388_v10 }
0x11f2   :  { %4393 = vadd.xlane.f32.xlu1 %v4390_v19 }
0x1277   :  { %v4392_v1 = vpop.xlane.xlu0 %4391 }
0x1278   :  { %v4395_v44 = vmul.f32 0.0078125, %v4392_v1 }
0x127a   :  { %v4397_v13 = vadd.f32 1e-05, %v4395_v44 }
0x127b   :  { %v4394_v31 = vpop.xlane.xlu1 %4393 }
0x127c   :  { %5815 = vrsqrt.f32 %v4397_v13  ;;  %v4396_v12 = vmul.f32 0.0078125, %v4394_v31 }
0x127e   :  { %v4398_v63 = vadd.f32 1e-05, %v4396_v12 }
0x1280   :  { %5817 = vrsqrt.f32 %v4398_v63 }
0x1289   :  { %v5816_v21 = vpop.eup %5815 }
0x128a   :  { %v4401_v60 = vmul.f32 %v5816_v21, %v4387_v37 }
0x128c   :  { %v4407_v30 = vmul.f32 %v4825_v20, %v4401_v60 }
0x128d   :  { %v5818_v35 = vpop.eup %5817 }
0x128e   :  { %v4413_v56 = vadd.f32 %v4826_v49, %v4407_v30  ;;  %v4402_v27 = vmul.f32 %v5818_v35, %v4388_v10 }
0x1290   :  { %4415 = vst [vmem:[%s4450_s7] sm:$0xff] %v4413_v56  ;;  %v4408_v40 = vmul.f32 %v4825_v20, %v4402_v27 }
0x1292   :  { %v4414_v34 = vadd.f32 %v4826_v49, %v4408_v40 }
0x1294   :  { %4416 = vst [vmem:[%s4450_s7 + $0x8] sm:$0xff] %v4414_v34 }

</bundles_post_ra>
